<compile_context>
chip_gen: v5e
topology: v5e:2x2
jax: 0.10.0
libtpu: 0.0.40
codegen_flags: <defaults>
</compile_context>

<pallas_src>
import jax
import jax.numpy as jnp
from jax import lax
from jax.experimental import pallas as pl
from jax.experimental.pallas import tpu as pltpu

GAMMAS = (0.001, 0.01, 0.1, 1.0, 10.0)
CLAMP_MIN = 1e-30
# Added to the squared norm of padded rows/cols.  Must exceed ~1.1e5 so even the
# smallest gamma (0.001) flushes exp(-gamma*d) to exactly 0 in f32.
POISON = 1e7


def _round_up(x, m):
    return (x + m - 1) // m * m


def _pow10(x):
    # x**10 with 4 VPU multiplies (x^10 = x^8 * x^2); replaces one EUP exp for
    # gamma=0.01 (exp(-0.01 d) = exp(-0.001 d)**10).
    x2 = x * x
    x4 = x2 * x2
    x8 = x4 * x4
    return x8 * x2


def _pick_tile(Nmax, D):
    if Nmax <= 128:
        return 128
    if Nmax <= 512:
        return 256
    # Prefer T=512 (quarters the ~0.35 us per-grid-step overhead) whenever the
    # double-buffered input slabs + the (T,T) f32 accumulator fit ~40 MiB.
    for T in (512, 256):
        inputs = 4 * 2 * T * D * 4            # 4 feature slabs, double-buffered
        norms = 4 * 2 * (T + 128) * 4         # tiny norm blocks
        acc = T * T * 4                       # f32 accumulator scratch
        if inputs + norms + acc <= 40 * 1024 * 1024:
            return T
    return 128


def _make_kernel(Ns, Nt, T, G):
    f32 = jnp.float32
    w_xx = float(1.0 / (Ns * Ns))
    w_yy = float(1.0 / (Nt * Nt))
    w_xy = float(-2.0 / (Ns * Nt))

    def kernel_tile(xi, xi_norm, yj, yj_norm):
        # x @ y.T on the MXU: contract dim 1 of both operands (no materialized
        # transpose), f32 accumulate, HIGHEST precision to preserve the
        # xn + yn - 2*x.y cancellation on the (near-zero) self-distance diagonal.
        xy = lax.dot_general(
            xi, yj, (((1,), (1,)), ((), ())),
            preferred_element_type=f32,
            precision=lax.Precision.HIGHEST)
        d = jnp.maximum(xi_norm + yj_norm - 2.0 * xy, CLAMP_MIN)
        # 5 gammas with 4 EUP exps + one pow10 VPU chain.
        e_a = jnp.exp(d * (-0.001))   # gamma = 0.001
        e_b = jnp.exp(d * (-0.1))     # gamma = 0.1
        e_c = jnp.exp(-d)             # gamma = 1
        e_d = jnp.exp(d * (-10.0))    # gamma = 10
        return e_a + _pow10(e_a) + e_b + e_c + e_d   # + gamma = 0.01 via pow10

    def kernel(fs_i_ref, fs_j_ref, ft_i_ref, ft_j_ref,
               ns_i_ref, ns_j_ref, nt_i_ref, nt_j_ref,
               out_ref, acc_ref):
        i = pl.program_id(0)
        j = pl.program_id(1)

        @pl.when(j == 0)
        def _init():
            acc_ref[...] = jnp.zeros_like(acc_ref)

        fs_i = fs_i_ref[...]
        fs_j = fs_j_ref[...]
        ft_i = ft_i_ref[...]
        ft_j = ft_j_ref[...]
        ns_i = ns_i_ref[...]   # (T, 1) |f_s|^2 rows (poisoned on padding)
        ns_j = ns_j_ref[...]   # (1, T) |f_s|^2 cols
        nt_i = nt_i_ref[...]   # (T, 1) |f_t|^2 rows
        nt_j = nt_j_ref[...]   # (1, T) |f_t|^2 cols

        # Cross term (not symmetric): every (i, j) tile contributes.
        cross = w_xy * kernel_tile(fs_i, ns_i, ft_j, nt_j)

        # Self terms: cover each unordered tile pair {i, j} exactly once, using a
        # parity-balanced schedule so per-i-row work is even (v7x megacore balance).
        same = i == j
        par = (i + j) & 1
        covered = same | ((j > i) & (par == 1)) | ((j < i) & (par == 0))

        @pl.when(covered)
        def _cross_and_self():
            k_xx = kernel_tile(fs_i, ns_i, fs_j, ns_j)
            k_yy = kernel_tile(ft_i, nt_i, ft_j, nt_j)
            # Off-diagonal covered tiles stand in for (i,j) AND (j,i) -> weight 2.
            sxx = jnp.where(same, w_xx, 2.0 * w_xx).astype(f32)
            syy = jnp.where(same, w_yy, 2.0 * w_yy).astype(f32)
            acc_ref[...] += cross + sxx * k_xx + syy * k_yy

        @pl.when(jnp.logical_not(covered))
        def _cross_only():
            acc_ref[...] += cross

        @pl.when(j == G - 1)
        def _finalize():
            total = jnp.sum(acc_ref[...])
            out_ref[...] = jnp.full(out_ref.shape, total, f32)

    return kernel


@jax.jit
def mmd_loss(f_s, f_t):
    assert f_s.ndim == 2 and f_t.ndim == 2 and f_s.shape[1] == f_t.shape[1]
    Ns, D = f_s.shape
    Nt, _ = f_t.shape
    Nmax = max(Ns, Nt)

    T = _pick_tile(Nmax, D)
    Np = _round_up(Nmax, T)
    G = Np // T
    f32 = jnp.float32

    # Zero-pad features (required by norm poisoning: padded rows must dot to 0).
    fs_p = jnp.pad(f_s, ((0, Np - Ns), (0, 0)))
    ft_p = jnp.pad(f_t, ((0, Np - Nt), (0, 0)))

    # Squared norms hoisted out of the kernel, with padded entries poisoned so all
    # five exp terms underflow to exactly 0 for any padded pair (no in-kernel masks).
    ns = jnp.sum(f_s.astype(f32) ** 2, axis=-1)
    nt = jnp.sum(f_t.astype(f32) ** 2, axis=-1)
    ns_p = jnp.pad(ns, (0, Np - Ns), constant_values=POISON)
    nt_p = jnp.pad(nt, (0, Np - Nt), constant_values=POISON)
    ns_row = ns_p.reshape(Np, 1)
    ns_col = ns_p.reshape(1, Np)
    nt_row = nt_p.reshape(Np, 1)
    nt_col = nt_p.reshape(1, Np)

    kernel = _make_kernel(Ns, Nt, T, G)

    # Advisory cost estimate (cross term visits all tiles, self terms each
    # unordered tile pair once; i-resident slabs are DMA'd once per row).
    tiles_self = G * (G + 1) // 2
    elems = G * G * T * T + 2 * tiles_self * T * T
    itemsize = f_s.dtype.itemsize
    bytes_in = (2 * G + 2 * G * G) * T * D * itemsize
    bytes_norm = (2 * G + 2 * G * G) * T * 4
    bytes_out = G * 8 * 128 * 4
    cost = pl.CostEstimate(
        flops=2 * D * elems + 30 * elems,
        transcendentals=4 * elems,
        bytes_accessed=bytes_in + bytes_norm + bytes_out,
    )

    partial = pl.pallas_call(
        kernel,
        out_shape=jax.ShapeDtypeStruct((G, 8, 128), jnp.float32),
        grid_spec=pltpu.PrefetchScalarGridSpec(
            num_scalar_prefetch=0,
            grid=(G, G),                                    # j (reduction axis) last
            in_specs=[
                pl.BlockSpec((T, D), lambda i, j: (i, 0)),   # f_s row-tile i (resident)
                pl.BlockSpec((T, D), lambda i, j: (j, 0)),   # f_s row-tile j
                pl.BlockSpec((T, D), lambda i, j: (i, 0)),   # f_t row-tile i (resident)
                pl.BlockSpec((T, D), lambda i, j: (j, 0)),   # f_t row-tile j
                pl.BlockSpec((T, 1), lambda i, j: (i, 0)),   # |f_s|^2 rows
                pl.BlockSpec((1, T), lambda i, j: (0, j)),   # |f_s|^2 cols
                pl.BlockSpec((T, 1), lambda i, j: (i, 0)),   # |f_t|^2 rows
                pl.BlockSpec((1, T), lambda i, j: (0, j)),   # |f_t|^2 cols
            ],
            out_specs=pl.BlockSpec((1, 8, 128), lambda i, j: (i, 0, 0)),
            scratch_shapes=[pltpu.VMEM((T, T), jnp.float32)],
        ),
        compiler_params=pltpu.CompilerParams(
            dimension_semantics=("parallel", "arbitrary"),   # i across v7x cores
            vmem_limit_bytes=48 * 1024 * 1024,
        ),
        cost_estimate=cost,
    )(fs_p, fs_p, ft_p, ft_p, ns_row, ns_col, nt_row, nt_col)

    # Each i-tile's combined partial (already divided by the true Ns*Ns / Nt*Nt /
    # Ns*Nt) lives in its own lane-dense output block; sum the per-tile partials.
    return jnp.sum(partial[:, 0, 0])


def _mmd_loss_ref(f_s, f_t):
    """Pure-JAX reference mirroring the PyTorch module (f32, highest precision)."""
    hp = lax.Precision.HIGHEST

    def kmean(x, y):
        xn = jnp.sum(x * x, axis=-1, keepdims=True)
        yn = jnp.sum(y * y, axis=-1, keepdims=True)
        d = jnp.maximum(xn + yn.T - 2.0 * jnp.dot(x, y.T, precision=hp), CLAMP_MIN)
        return jnp.mean(sum(jnp.exp(-g * d) for g in GAMMAS))

    return kmean(f_s, f_s) + kmean(f_t, f_t) - 2.0 * kmean(f_s, f_t)


if __name__ == "__main__":
    key = jax.random.PRNGKey(0)
    k1, k2, k3, k4 = jax.random.split(key, 4)

    # Small (batch, features) inputs consistent with the module's 2-D usage.
    f_s = jax.random.normal(k1, (8, 32), dtype=jnp.float32)
    f_t = 0.5 * jax.random.normal(k2, (8, 32), dtype=jnp.float32) + 0.3

    loss = mmd_loss(f_s, f_t)
    jax.block_until_ready(loss)
    ref = _mmd_loss_ref(f_s, f_t)
    # Tolerance note: the self-distance diagonal (||x_i - x_i||^2 ~ 0) goes through
    # the same catastrophic cancellation torch's addmm uses; its ~1e-5 residual
    # swings the gamma=10 term by ~1e-4, inherent to the algorithm, not the kernel.
    assert jnp.allclose(loss, ref, rtol=1e-3, atol=1e-3), (loss, ref)

    # Second config: multi-tile grid, unequal batch sizes, padding (poisoned norms)
    # and the parity-balanced self-term schedule.
    g_s = jax.random.normal(k3, (300, 64), dtype=jnp.float32)
    g_t = 0.7 * jax.random.normal(k4, (260, 64), dtype=jnp.float32) - 0.1
    loss2 = mmd_loss(g_s, g_t)
    jax.block_until_ready(loss2)
    ref2 = _mmd_loss_ref(g_s, g_t)
    assert jnp.allclose(loss2, ref2, rtol=1e-3, atol=1e-3), (loss2, ref2)

    print("KERNEL_OK")
</pallas_src>

<mosaic_0001>
module attributes {stable_mosaic.version = 11 : i64} {
  func.func @kernel(%arg0: i32, %arg1: i32, %arg2: memref<128x32xf32, #tpu.memory_space<vmem>>, %arg3: memref<128x32xf32, #tpu.memory_space<vmem>>, %arg4: memref<128x32xf32, #tpu.memory_space<vmem>>, %arg5: memref<128x32xf32, #tpu.memory_space<vmem>>, %arg6: memref<128x1xf32, #tpu.memory_space<vmem>>, %arg7: memref<1x128xf32, #tpu.memory_space<vmem>>, %arg8: memref<128x1xf32, #tpu.memory_space<vmem>>, %arg9: memref<1x128xf32, #tpu.memory_space<vmem>>, %arg10: memref<1x8x128xf32, #tpu.memory_space<vmem>>, %arg11: memref<128x128xf32, #tpu.memory_space<vmem>>) attributes {dimension_semantics = [#tpu.dimension_semantics<parallel>, #tpu.dimension_semantics<arbitrary>], iteration_bounds = array<i64: 1, 1>, scalar_prefetch = 0 : i64, scratch_operands = 1 : i64, tpu.core_type = #tpu.core_type<tc>, window_params = [{transform_indices = @transform_0, window_bounds = array<i64: 128, 32>}, {transform_indices = @transform_1, window_bounds = array<i64: 128, 32>}, {transform_indices = @transform_2, window_bounds = array<i64: 128, 32>}, {transform_indices = @transform_3, window_bounds = array<i64: 128, 32>}, {transform_indices = @transform_4, window_bounds = array<i64: 128, 1>}, {transform_indices = @transform_5, window_bounds = array<i64: 1, 128>}, {transform_indices = @transform_6, window_bounds = array<i64: 128, 1>}, {transform_indices = @transform_7, window_bounds = array<i64: 1, 128>}, {transform_indices = @transform_8, window_bounds = array<i64: 1, 8, 128>}]} {
    %c0_i32 = arith.constant 0 : i32
    %0 = arith.cmpi eq, %arg1, %c0_i32 : i32
    %1 = arith.extui %0 : i1 to i32
    %c0_i32_0 = arith.constant 0 : i32
    %2 = arith.cmpi ne, %1, %c0_i32_0 : i32
    scf.if %2 {
      %cst_29 = arith.constant 0.000000e+00 : f32
      %61 = vector.broadcast %cst_29 : f32 to vector<128x128xf32>
      %c0_30 = arith.constant 0 : index
      %c0_31 = arith.constant 0 : index
      %62 = vector.load %arg11[%c0_30, %c0_31] : memref<128x128xf32, #tpu.memory_space<vmem>>, vector<128x128xf32>
      tpu.vector_store %arg11[%c0_30, %c0_31], %61 {strides = array<i32>} : memref<128x128xf32, #tpu.memory_space<vmem>>, vector<128x128xf32>,
    } else {
    }
    %c0 = arith.constant 0 : index
    %c0_1 = arith.constant 0 : index
    %3 = vector.load %arg2[%c0, %c0_1] : memref<128x32xf32, #tpu.memory_space<vmem>>, vector<128x32xf32>
    %c0_2 = arith.constant 0 : index
    %c0_3 = arith.constant 0 : index
    %4 = vector.load %arg3[%c0_2, %c0_3] : memref<128x32xf32, #tpu.memory_space<vmem>>, vector<128x32xf32>
    %c0_4 = arith.constant 0 : index
    %c0_5 = arith.constant 0 : index
    %5 = vector.load %arg4[%c0_4, %c0_5] : memref<128x32xf32, #tpu.memory_space<vmem>>, vector<128x32xf32>
    %c0_6 = arith.constant 0 : index
    %c0_7 = arith.constant 0 : index
    %6 = vector.load %arg5[%c0_6, %c0_7] : memref<128x32xf32, #tpu.memory_space<vmem>>, vector<128x32xf32>
    %c0_8 = arith.constant 0 : index
    %c0_9 = arith.constant 0 : index
    %7 = vector.load %arg6[%c0_8, %c0_9] : memref<128x1xf32, #tpu.memory_space<vmem>>, vector<128x1xf32>
    %c0_10 = arith.constant 0 : index
    %c0_11 = arith.constant 0 : index
    %8 = vector.load %arg7[%c0_10, %c0_11] : memref<1x128xf32, #tpu.memory_space<vmem>>, vector<1x128xf32>
    %c0_12 = arith.constant 0 : index
    %c0_13 = arith.constant 0 : index
    %9 = vector.load %arg8[%c0_12, %c0_13] : memref<128x1xf32, #tpu.memory_space<vmem>>, vector<128x1xf32>
    %c0_14 = arith.constant 0 : index
    %c0_15 = arith.constant 0 : index
    %10 = vector.load %arg9[%c0_14, %c0_15] : memref<1x128xf32, #tpu.memory_space<vmem>>, vector<1x128xf32>
    %cst = arith.constant dense<0.000000e+00> : vector<128x128xf32>
    %11 = tpu.matmul %3, %6, %cst {dimension_numbers = #tpu.dot_dimension_numbers<[1], [1], [0], [0], [0, 0, 1, 0], [], []>, precision = #tpu.contract_precision<fp32>} : vector<128x32xf32>, vector<128x32xf32>, vector<128x128xf32> -> vector<128x128xf32>
    %12 = vector.broadcast %7 : vector<128x1xf32> to vector<128x128xf32>
    %13 = vector.broadcast %10 : vector<1x128xf32> to vector<128x128xf32>
    %14 = arith.addf %12, %13 : vector<128x128xf32>
    %cst_16 = arith.constant 2.000000e+00 : f32
    %15 = vector.broadcast %cst_16 : f32 to vector<128x128xf32>
    %16 = arith.mulf %15, %11 : vector<128x128xf32>
    %17 = arith.subf %14, %16 : vector<128x128xf32>
    %cst_17 = arith.constant 1.000000e-30 : f32
    %18 = vector.broadcast %cst_17 : f32 to vector<128x128xf32>
    %19 = arith.maximumf %17, %18 : vector<128x128xf32>
    %cst_18 = arith.constant -1.000000e-03 : f32
    %20 = vector.broadcast %cst_18 : f32 to vector<128x128xf32>
    %21 = arith.mulf %19, %20 : vector<128x128xf32>
    %22 = math.exp %21 : vector<128x128xf32>
    %cst_19 = arith.constant -1.000000e-01 : f32
    %23 = vector.broadcast %cst_19 : f32 to vector<128x128xf32>
    %24 = arith.mulf %19, %23 : vector<128x128xf32>
    %25 = math.exp %24 : vector<128x128xf32>
    %cst_20 = arith.constant 0.000000e+00 : f32
    %26 = vector.broadcast %cst_20 : f32 to vector<128x128xf32>
    %27 = arith.subf %26, %19 : vector<128x128xf32>
    %28 = math.exp %27 : vector<128x128xf32>
    %cst_21 = arith.constant -1.000000e+01 : f32
    %29 = vector.broadcast %cst_21 : f32 to vector<128x128xf32>
    %30 = arith.mulf %19, %29 : vector<128x128xf32>
    %31 = math.exp %30 : vector<128x128xf32>
    %32 = arith.mulf %22, %22 : vector<128x128xf32>
    %33 = arith.mulf %32, %32 : vector<128x128xf32>
    %34 = arith.mulf %33, %33 : vector<128x128xf32>
    %35 = arith.mulf %34, %32 : vector<128x128xf32>
    %36 = arith.addf %22, %35 : vector<128x128xf32>
    %37 = arith.addf %36, %25 : vector<128x128xf32>
    %38 = arith.addf %37, %28 : vector<128x128xf32>
    %39 = arith.addf %38, %31 : vector<128x128xf32>
    %cst_22 = arith.constant -3.125000e-02 : f32
    %40 = vector.broadcast %cst_22 : f32 to vector<128x128xf32>
    %41 = arith.mulf %40, %39 : vector<128x128xf32>
    %42 = arith.cmpi eq, %arg0, %arg1 : i32
    %43 = arith.addi %arg0, %arg1 : i32
    %c1_i32 = arith.constant 1 : i32
    %44 = arith.andi %43, %c1_i32 : i32
    %45 = arith.cmpi sgt, %arg1, %arg0 : i32
    %c1_i32_23 = arith.constant 1 : i32
    %46 = arith.cmpi eq, %44, %c1_i32_23 : i32
    %47 = arith.andi %45, %46 : i1
    %48 = arith.ori %42, %47 : i1
    %49 = arith.cmpi slt, %arg1, %arg0 : i32
    %c0_i32_24 = arith.constant 0 : i32
    %50 = arith.cmpi eq, %44, %c0_i32_24 : i32
    %51 = arith.andi %49, %50 : i1
    %52 = arith.ori %48, %51 : i1
    %53 = arith.extui %52 : i1 to i32
    %c0_i32_25 = arith.constant 0 : i32
    %54 = arith.cmpi ne, %53, %c0_i32_25 : i32
    scf.if %54 {
      %cst_29 = arith.constant dense<0.000000e+00> : vector<128x128xf32>
      %61 = tpu.matmul %3, %4, %cst_29 {dimension_numbers = #tpu.dot_dimension_numbers<[1], [1], [0], [0], [0, 0, 1, 0], [], []>, precision = #tpu.contract_precision<fp32>} : vector<128x32xf32>, vector<128x32xf32>, vector<128x128xf32> -> vector<128x128xf32>
      %62 = vector.broadcast %7 : vector<128x1xf32> to vector<128x128xf32>
      %63 = vector.broadcast %8 : vector<1x128xf32> to vector<128x128xf32>
      %64 = arith.addf %62, %63 : vector<128x128xf32>
      %cst_30 = arith.constant 2.000000e+00 : f32
      %65 = vector.broadcast %cst_30 : f32 to vector<128x128xf32>
      %66 = arith.mulf %65, %61 : vector<128x128xf32>
      %67 = arith.subf %64, %66 : vector<128x128xf32>
      %cst_31 = arith.constant 1.000000e-30 : f32
      %68 = vector.broadcast %cst_31 : f32 to vector<128x128xf32>
      %69 = arith.maximumf %67, %68 : vector<128x128xf32>
      %cst_32 = arith.constant -1.000000e-03 : f32
      %70 = vector.broadcast %cst_32 : f32 to vector<128x128xf32>
      %71 = arith.mulf %69, %70 : vector<128x128xf32>
      %72 = math.exp %71 : vector<128x128xf32>
      %cst_33 = arith.constant -1.000000e-01 : f32
      %73 = vector.broadcast %cst_33 : f32 to vector<128x128xf32>
      %74 = arith.mulf %69, %73 : vector<128x128xf32>
      %75 = math.exp %74 : vector<128x128xf32>
      %cst_34 = arith.constant 0.000000e+00 : f32
      %76 = vector.broadcast %cst_34 : f32 to vector<128x128xf32>
      %77 = arith.subf %76, %69 : vector<128x128xf32>
      %78 = math.exp %77 : vector<128x128xf32>
      %cst_35 = arith.constant -1.000000e+01 : f32
      %79 = vector.broadcast %cst_35 : f32 to vector<128x128xf32>
      %80 = arith.mulf %69, %79 : vector<128x128xf32>
      %81 = math.exp %80 : vector<128x128xf32>
      %82 = arith.mulf %72, %72 : vector<128x128xf32>
      %83 = arith.mulf %82, %82 : vector<128x128xf32>
      %84 = arith.mulf %83, %83 : vector<128x128xf32>
      %85 = arith.mulf %84, %82 : vector<128x128xf32>
      %86 = arith.addf %72, %85 : vector<128x128xf32>
      %87 = arith.addf %86, %75 : vector<128x128xf32>
      %88 = arith.addf %87, %78 : vector<128x128xf32>
      %89 = arith.addf %88, %81 : vector<128x128xf32>
      %cst_36 = arith.constant dense<0.000000e+00> : vector<128x128xf32>
      %90 = tpu.matmul %5, %6, %cst_36 {dimension_numbers = #tpu.dot_dimension_numbers<[1], [1], [0], [0], [0, 0, 1, 0], [], []>, precision = #tpu.contract_precision<fp32>} : vector<128x32xf32>, vector<128x32xf32>, vector<128x128xf32> -> vector<128x128xf32>
      %91 = vector.broadcast %9 : vector<128x1xf32> to vector<128x128xf32>
      %92 = vector.broadcast %10 : vector<1x128xf32> to vector<128x128xf32>
      %93 = arith.addf %91, %92 : vector<128x128xf32>
      %cst_37 = arith.constant 2.000000e+00 : f32
      %94 = vector.broadcast %cst_37 : f32 to vector<128x128xf32>
      %95 = arith.mulf %94, %90 : vector<128x128xf32>
      %96 = arith.subf %93, %95 : vector<128x128xf32>
      %cst_38 = arith.constant 1.000000e-30 : f32
      %97 = vector.broadcast %cst_38 : f32 to vector<128x128xf32>
      %98 = arith.maximumf %96, %97 : vector<128x128xf32>
      %cst_39 = arith.constant -1.000000e-03 : f32
      %99 = vector.broadcast %cst_39 : f32 to vector<128x128xf32>
      %100 = arith.mulf %98, %99 : vector<128x128xf32>
      %101 = math.exp %100 : vector<128x128xf32>
      %cst_40 = arith.constant -1.000000e-01 : f32
      %102 = vector.broadcast %cst_40 : f32 to vector<128x128xf32>
      %103 = arith.mulf %98, %102 : vector<128x128xf32>
      %104 = math.exp %103 : vector<128x128xf32>
      %cst_41 = arith.constant 0.000000e+00 : f32
      %105 = vector.broadcast %cst_41 : f32 to vector<128x128xf32>
      %106 = arith.subf %105, %98 : vector<128x128xf32>
      %107 = math.exp %106 : vector<128x128xf32>
      %cst_42 = arith.constant -1.000000e+01 : f32
      %108 = vector.broadcast %cst_42 : f32 to vector<128x128xf32>
      %109 = arith.mulf %98, %108 : vector<128x128xf32>
      %110 = math.exp %109 : vector<128x128xf32>
      %111 = arith.mulf %101, %101 : vector<128x128xf32>
      %112 = arith.mulf %111, %111 : vector<128x128xf32>
      %113 = arith.mulf %112, %112 : vector<128x128xf32>
      %114 = arith.mulf %113, %111 : vector<128x128xf32>
      %115 = arith.addf %101, %114 : vector<128x128xf32>
      %116 = arith.addf %115, %104 : vector<128x128xf32>
      %117 = arith.addf %116, %107 : vector<128x128xf32>
      %118 = arith.addf %117, %110 : vector<128x128xf32>
      %cst_43 = arith.constant 1.562500e-02 : f32
      %cst_44 = arith.constant 3.125000e-02 : f32
      %119 = arith.select %42, %cst_43, %cst_44 : f32
      %cst_45 = arith.constant 1.562500e-02 : f32
      %cst_46 = arith.constant 3.125000e-02 : f32
      %120 = arith.select %42, %cst_45, %cst_46 : f32
      %c0_47 = arith.constant 0 : index
      %c0_48 = arith.constant 0 : index
      %121 = vector.load %arg11[%c0_47, %c0_48] : memref<128x128xf32, #tpu.memory_space<vmem>>, vector<128x128xf32>
      %122 = vector.broadcast %119 : f32 to vector<128x128xf32>
      %123 = arith.mulf %122, %89 : vector<128x128xf32>
      %124 = arith.addf %41, %123 : vector<128x128xf32>
      %125 = vector.broadcast %120 : f32 to vector<128x128xf32>
      %126 = arith.mulf %125, %118 : vector<128x128xf32>
      %127 = arith.addf %124, %126 : vector<128x128xf32>
      %128 = arith.addf %121, %127 : vector<128x128xf32>
      %c0_49 = arith.constant 0 : index
      %c0_50 = arith.constant 0 : index
      %129 = vector.load %arg11[%c0_49, %c0_50] : memref<128x128xf32, #tpu.memory_space<vmem>>, vector<128x128xf32>
      tpu.vector_store %arg11[%c0_49, %c0_50], %128 {strides = array<i32>} : memref<128x128xf32, #tpu.memory_space<vmem>>, vector<128x128xf32>,
    } else {
    }
    %true = arith.constant true
    %55 = arith.xori %52, %true : i1
    %56 = arith.extui %55 : i1 to i32
    %c0_i32_26 = arith.constant 0 : i32
    %57 = arith.cmpi ne, %56, %c0_i32_26 : i32
    scf.if %57 {
      %c0_29 = arith.constant 0 : index
      %c0_30 = arith.constant 0 : index
      %61 = vector.load %arg11[%c0_29, %c0_30] : memref<128x128xf32, #tpu.memory_space<vmem>>, vector<128x128xf32>
      %62 = arith.addf %61, %41 : vector<128x128xf32>
      %c0_31 = arith.constant 0 : index
      %c0_32 = arith.constant 0 : index
      %63 = vector.load %arg11[%c0_31, %c0_32] : memref<128x128xf32, #tpu.memory_space<vmem>>, vector<128x128xf32>
      tpu.vector_store %arg11[%c0_31, %c0_32], %62 {strides = array<i32>} : memref<128x128xf32, #tpu.memory_space<vmem>>, vector<128x128xf32>,
    } else {
    }
    %c0_i32_27 = arith.constant 0 : i32
    %58 = arith.cmpi eq, %arg1, %c0_i32_27 : i32
    %59 = arith.extui %58 : i1 to i32
    %c0_i32_28 = arith.constant 0 : i32
    %60 = arith.cmpi ne, %59, %c0_i32_28 : i32
    scf.if %60 {
      %c0_29 = arith.constant 0 : index
      %c0_30 = arith.constant 0 : index
      %61 = vector.load %arg11[%c0_29, %c0_30] : memref<128x128xf32, #tpu.memory_space<vmem>>, vector<128x128xf32>
      %62 = vector.shape_cast %61 : vector<128x128xf32> to vector<1x128x128xf32>
      %cst_31 = arith.constant dense<0.000000e+00> : vector<1xf32>
      %63 = vector.multi_reduction <add>, %62, %cst_31 [1, 2] : vector<1x128x128xf32> to vector<1xf32>
      %64 = vector.shape_cast %63 : vector<1xf32> to vector<1x1x1xf32>
      %65 = vector.extract %64[0, 0, 0] : f32 from vector<1x1x1xf32>
      %66 = vector.broadcast %65 : f32 to vector<1x8x128xf32>
      %c0_32 = arith.constant 0 : index
      %c0_33 = arith.constant 0 : index
      %c0_34 = arith.constant 0 : index
      %67 = vector.load %arg10[%c0_32, %c0_33, %c0_34] : memref<1x8x128xf32, #tpu.memory_space<vmem>>, vector<1x8x128xf32>
      tpu.vector_store %arg10[%c0_32, %c0_33, %c0_34], %66 {strides = array<i32>} : memref<1x8x128xf32, #tpu.memory_space<vmem>>, vector<1x8x128xf32>,
    } else {
    }
    return
  }
  func.func @transform_0(%arg0: i32, %arg1: i32) -> (i32, i32) {
    %c0_i32 = arith.constant 0 : i32
    %c0_i32_0 = arith.constant 0 : i32
    return %arg0, %c0_i32 : i32, i32
  }
  func.func @transform_1(%arg0: i32, %arg1: i32) -> (i32, i32) {
    %c0_i32 = arith.constant 0 : i32
    %c0_i32_0 = arith.constant 0 : i32
    return %arg1, %c0_i32 : i32, i32
  }
  func.func @transform_2(%arg0: i32, %arg1: i32) -> (i32, i32) {
    %c0_i32 = arith.constant 0 : i32
    %c0_i32_0 = arith.constant 0 : i32
    return %arg0, %c0_i32 : i32, i32
  }
  func.func @transform_3(%arg0: i32, %arg1: i32) -> (i32, i32) {
    %c0_i32 = arith.constant 0 : i32
    %c0_i32_0 = arith.constant 0 : i32
    return %arg1, %c0_i32 : i32, i32
  }
  func.func @transform_4(%arg0: i32, %arg1: i32) -> (i32, i32) {
    %c0_i32 = arith.constant 0 : i32
    %c0_i32_0 = arith.constant 0 : i32
    return %arg0, %c0_i32 : i32, i32
  }
  func.func @transform_5(%arg0: i32, %arg1: i32) -> (i32, i32) {
    %c0_i32 = arith.constant 0 : i32
    %c0_i32_0 = arith.constant 0 : i32
    return %c0_i32, %arg1 : i32, i32
  }
  func.func @transform_6(%arg0: i32, %arg1: i32) -> (i32, i32) {
    %c0_i32 = arith.constant 0 : i32
    %c0_i32_0 = arith.constant 0 : i32
    return %arg0, %c0_i32 : i32, i32
  }
  func.func @transform_7(%arg0: i32, %arg1: i32) -> (i32, i32) {
    %c0_i32 = arith.constant 0 : i32
    %c0_i32_0 = arith.constant 0 : i32
    return %c0_i32, %arg1 : i32, i32
  }
  func.func @transform_8(%arg0: i32, %arg1: i32) -> (i32, i32, i32) {
    %c0_i32 = arith.constant 0 : i32
    %c0_i32_0 = arith.constant 0 : i32
    %c0_i32_1 = arith.constant 0 : i32
    return %arg0, %c0_i32, %c0_i32_0 : i32, i32, i32
  }
}

</mosaic_0001>

<bundles_post_ra>
// kernel: mmd_loss.1
= control target key start
LH: loop header
LB: loop body
LE: loop exit
PB: predicated region body
PF: predicated region fallthrough
CT: control target
= control target key end

     0   :  { %vm147_vm0 = vcmask 261120   ;;  %s7566_s3 = inlined_call_operand.vmem [shape: f32[128,32], index: 3, kind: input, shape index: {}, may-alias: {2,3}]   ;;  %s7567_s0 = inlined_call_operand.vmem [shape: f32[128,32], index: 0, kind: input, shape index: {}, may-alias: {0,1}]   ;;  %s7568_s1 = inlined_call_operand.vmem [shape: f32[128,32], index: 1, kind: input, shape index: {}, may-alias: {0,1}]   ;;  %s7569_s4 = inlined_call_operand.vmem [shape: f32[128,1], index: 4, kind: input, shape index: {}]   ;;  %s7570_s6 = inlined_call_operand.vmem [shape: f32[128,1], index: 6, kind: input, shape index: {}]   ;;  %s7571_s7 = inlined_call_operand.vmem [shape: f32[1,128], index: 7, kind: input, shape index: {}]   ;;  %s7572_s5 = inlined_call_operand.vmem [shape: f32[1,128], index: 5, kind: input, shape index: {}]   ;;  %s7573_s2 = inlined_call_operand.vmem [shape: f32[128,32], index: 2, kind: input, shape index: {}, may-alias: {2,3}]   ;;  %s7574_s8 = inlined_call_operand.vmem [shape: f32[1,8,128], index: 8, kind: output, shape index: {}]  }
   0x1   :  { %v112_v0 = vld [vmem:[%s7566_s3 + $0x78] sm:$0xff]  ;;  %v111_v1 = vld [vmem:[%s7566_s3 + $0x70] sm:$0xff]  ;;  %v110_v2 = vld [vmem:[%s7566_s3 + $0x68] sm:$0xff] }
   0x2   :  { %v242_v3 = vsel %vm147_vm0, %v112_v0, 0  ;;  %v239_v4 = vsel %vm147_vm0, %v111_v1, 0  ;;  %v236_v5 = vsel %vm147_vm0, %v110_v2, 0  ;;  %v109_v6 = vld [vmem:[%s7566_s3 + $0x60] sm:$0xff]  ;;  %v108_v7 = vld [vmem:[%s7566_s3 + $0x58] sm:$0xff]  ;;  %v107_v17 = vld [vmem:[%s7566_s3 + $0x50] sm:$0xff] }
   0x3   :  { %v4813_v8 = vand.u32 4294901760, %v242_v3  ;;  %v4815_v9 = vand.u32 4294901760, %v239_v4  ;;  %v4817_v10 = vand.u32 4294901760, %v236_v5  ;;  %v233_v11 = vsel %vm147_vm0, %v109_v6, 0  ;;  %v106_v26 = vld [vmem:[%s7566_s3 + $0x48] sm:$0xff]  ;;  %v105_v34 = vld [vmem:[%s7566_s3 + $0x40] sm:$0xff] }
   0x4   :  { %v4820_v12 = vand.u32 4294901760, %v233_v11  ;;  %v230_v15 = vsel %vm147_vm0, %v108_v7, 0  ;;  %v227_v21 = vsel %vm147_vm0, %v107_v17, 0  ;;  %v224_v29 = vsel %vm147_vm0, %v106_v26, 0  ;;  %v104_v41 = vld [vmem:[%s7566_s3 + $0x38] sm:$0xff]  ;;  %v103_v48 = vld [vmem:[%s7566_s3 + $0x30] sm:$0xff] }
   0x5   :  { %7813 = vst [vmem:[#allocation3_spill] sm:$0xff] %v4813_v8  ;;  %4322 = vmatpush.xpose.msra.mxu2 %v4813_v8  ;;  %v4824_v13 = vsub.f32 %v242_v3, %v4813_v8  ;;  %v4827_v14 = vsub.f32 %v239_v4, %v4815_v9  ;;  %245 = vmatpush.xpose.msra.mxu0 %v4813_v8  ;;  %v4843_v20 = vand.u32 4294901760, %v230_v15  ;;  %v4863_v28 = vand.u32 4294901760, %v227_v21  ;;  %v102_v55 = vld [vmem:[%s7566_s3 + $0x28] sm:$0xff]  ;;  %v101_v62 = vld [vmem:[%s7566_s3 + $0x20] sm:$0xff] }
   0x6   :  { %7814 = vst [vmem:[#allocation4_spill] sm:$0xff] %v4815_v9  ;;  %v4832_v16 = vsub.f32 %v236_v5, %v4817_v10  ;;  %v4856_v25 = vsub.f32 %v233_v11, %v4820_v12  ;;  %v4883_v35 = vand.u32 4294901760, %v224_v29  ;;  %v221_v40 = vsel %vm147_vm0, %v105_v34, 0  ;;  %v100_v5 = vld [vmem:[%s7566_s3 + $0x18] sm:$0xff] }
   0x7   :  { %7815 = vst [vmem:[#allocation5_spill] sm:$0xff] %v4817_v10  ;;  %v4838_v18 = vand.u32 4294901760, %v4824_v13  ;;  %v4841_v19 = vand.u32 4294901760, %v4827_v14  ;;  %v4876_v33 = vsub.f32 %v230_v15, %v4843_v20  ;;  %v4886_v36 = vsub.f32 %v227_v21, %v4863_v28 }
   0x8   :  { %7816 = vst [vmem:[#allocation6_spill] sm:$0xff] %v4820_v12  ;;  %v4852_v24 = vand.u32 4294901760, %v4832_v16  ;;  %v4873_v32 = vand.u32 4294901760, %v4856_v25  ;;  %v4903_v42 = vand.u32 4294901760, %v221_v40  ;;  %v218_v46 = vsel %vm147_vm0, %v104_v41, 0  ;;  %v98_v41 = vld [vmem:[%s7566_s3 + $0x8] sm:$0xff] }
   0x9   :  { %7817 = vst [vmem:[#allocation7_spill] sm:$0xff] %v4824_v13  ;;  %4323 = vmatpush.xpose.msra.mxu2 %v4815_v9  ;;  %v408_v22 = vsub.f32 %v4824_v13, %v4838_v18  ;;  %v414_v23 = vsub.f32 %v4827_v14, %v4841_v19  ;;  %247 = vmatpush.xpose.msra.mxu0 %v4815_v9  ;;  %v4895_v39 = vand.u32 4294901760, %v4876_v33  ;;  %v4906_v43 = vand.u32 4294901760, %v4886_v36 }
   0xa   :  { %7818 = vst [vmem:[#allocation8_spill] sm:$0xff] %v4827_v14  ;;  %v420_v31 = vsub.f32 %v4832_v16, %v4852_v24  ;;  %v426_v38 = vsub.f32 %v4856_v25, %v4873_v32  ;;  %v4916_v47 = vsub.f32 %v224_v29, %v4883_v35  ;;  %v4925_v50 = vand.u32 4294901760, %v218_v46 }
   0xb   :  { %7819 = vst [vmem:[#allocation9_spill] sm:$0xff] %v4832_v16  ;;  %v4861_v27 = vand.u32 4294901760, %v408_v22  ;;  %v4868_v30 = vand.u32 4294901760, %v414_v23  ;;  %v432_v45 = vsub.f32 %v4876_v33, %v4895_v39  ;;  %v438_v49 = vsub.f32 %v4886_v36, %v4906_v43  ;;  %v99_v22 = vld [vmem:[%s7566_s3 + $0x10] sm:$0xff] }
   0xc   :  { %7820 = vst [vmem:[#allocation10_spill] sm:$0xff] %v4838_v18  ;;  %v4890_v37 = vand.u32 4294901760, %v420_v31  ;;  %v4910_v44 = vand.u32 4294901760, %v426_v38  ;;  %v4932_v52 = vand.u32 4294901760, %v4916_v47  ;;  %v215_v53 = vsel %vm147_vm0, %v103_v48, 0 }
   0xd   :  { %7821 = vst [vmem:[#allocation11_spill] sm:$0xff] %v4841_v19  ;;  %4324 = vmatpush.xpose.msra.mxu2 %v4817_v10  ;;  %4338 = vmatpush.xpose.msra.mxu3 %v4861_v27  ;;  %v4929_v51 = vand.u32 4294901760, %v432_v45  ;;  %v4936_v54 = vsub.f32 %v221_v40, %v4903_v42  ;;  %v4943_v56 = vand.u32 4294901760, %v215_v53  ;;  %v212_v57 = vsel %vm147_vm0, %v102_v55, 0  ;;  %v57_v40 = vld [vmem:[%s7567_s0 + $0x40] sm:$0xff] }
   0xe   :  { %7822 = vst [vmem:[#allocation12_spill] sm:$0xff] %v4843_v20  ;;  %410 = vmatpush.xpose.msra.mxu1 %v4861_v27  ;;  %249 = vmatpush.xpose.msra.mxu0 %v4817_v10  ;;  %v4948_v58 = vand.u32 4294901760, %v438_v49  ;;  %v444_v59 = vsub.f32 %v4916_v47, %v4932_v52  ;;  %v4956_v61 = vsub.f32 %v218_v46, %v4925_v50  ;;  %v4963_v63 = vand.u32 4294901760, %v212_v57 }
   0xf   :  { %7823 = vst [vmem:[#allocation13_spill] sm:$0xff] %v4852_v24  ;;  %v4953_v60 = vand.u32 4294901760, %v4936_v54  ;;  %v209_v0 = vsel %vm147_vm0, %v101_v62, 0  ;;  %v4976_v4 = vsub.f32 %v215_v53, %v4943_v56  ;;  %v206_v21 = vsel %vm147_vm0, %v100_v5, 0  ;;  %v97_v62 = vld [vmem:[%s7566_s3] sm:$0xff] }
  0x10   :  { %7824 = vst [vmem:[#allocation14_spill] sm:$0xff] %v4856_v25  ;;  %v4968_v1 = vand.u32 4294901760, %v444_v59  ;;  %v4973_v3 = vand.u32 4294901760, %v4956_v61  ;;  %v4983_v6 = vand.u32 4294901760, %v209_v0  ;;  %v4986_v7 = vsub.f32 %v212_v57, %v4963_v63  ;;  %v49_v57 = vld [vmem:[%s7567_s0] sm:$0xff] }
  0x11   :  { %7825 = vst [vmem:[#allocation15_spill] sm:$0xff] %v4861_v27  ;;  %4325 = vmatpush.xpose.msra.mxu2 %v4820_v12  ;;  %4339 = vmatpush.xpose.msra.mxu3 %v4868_v30  ;;  %v450_v2 = vsub.f32 %v4936_v54, %v4953_v60  ;;  %v4995_v17 = vand.u32 4294901760, %v4976_v4  ;;  %v5003_v23 = vand.u32 4294901760, %v206_v21  ;;  %v203_v38 = vsel %vm147_vm0, %v99_v22, 0 }
  0x12   :  { %7826 = vst [vmem:[#allocation16_spill] sm:$0xff] %v4868_v30  ;;  %416 = vmatpush.xpose.msra.mxu1 %v4868_v30  ;;  %251 = vmatpush.xpose.msra.mxu0 %v4820_v12  ;;  %v456_v15 = vsub.f32 %v4956_v61, %v4973_v3  ;;  %v5006_v26 = vsub.f32 %v209_v0, %v4983_v6  ;;  %v5015_v34 = vand.u32 4294901760, %v4986_v7  ;;  %v5038_v53 = vand.u32 4294901760, %v203_v38 }
  0x13   :  { %7827 = vst [vmem:[#allocation17_spill] sm:$0xff] %v4873_v32  ;;  %v4990_v11 = vand.u32 4294901760, %v450_v2  ;;  %v462_v31 = vsub.f32 %v4976_v4, %v4995_v17  ;;  %v5030_v46 = vsub.f32 %v206_v21, %v5003_v23  ;;  %v173_v55 = vsel %vm147_vm0, %v57_v40, 0 }
  0x14   :  { %7828 = vst [vmem:[#allocation18_spill] sm:$0xff] %v4876_v33  ;;  %v5010_v29 = vand.u32 4294901760, %v456_v15  ;;  %v5027_v45 = vand.u32 4294901760, %v5006_v26  ;;  %v468_v49 = vsub.f32 %v4986_v7, %v5015_v34  ;;  %v200_v59 = vsel %vm147_vm0, %v98_v41, 0  ;;  %v58_v41 = vld [vmem:[%s7567_s0 + $0x48] sm:$0xff] }
  0x15   :  { %7829 = vst [vmem:[#allocation19_spill] sm:$0xff] %v4883_v35  ;;  %4326 = vmatpush.xpose.msra.mxu2 %v4843_v20  ;;  %4340 = vmatpush.xpose.msra.mxu3 %v4890_v37  ;;  %v5034_v48 = vand.u32 4294901760, %v462_v31  ;;  %v5053_v2 = vand.u32 4294901760, %v5030_v46  ;;  %v5055_v5 = vand.u32 4294901760, %v173_v55  ;;  %v149_v15 = vsel %vm147_vm0, %v49_v57, 0 }
  0x16   :  { %7830 = vst [vmem:[#allocation20_spill] sm:$0xff] %v4886_v36  ;;  %422 = vmatpush.xpose.msra.mxu1 %v4890_v37  ;;  %253 = vmatpush.xpose.msra.mxu0 %v4843_v20  ;;  %v474_v0 = vsub.f32 %v5006_v26, %v5027_v45  ;;  %v5060_v21 = vand.u32 4294901760, %v468_v49  ;;  %v5062_v22 = vand.u32 4294901760, %v200_v59  ;;  %v5065_v31 = vsub.f32 %v203_v38, %v5038_v53 }
  0x17   :  { %7831 = vst [vmem:[#allocation21_spill] sm:$0xff] %v4890_v37  ;;  %v197_v40 = vsel %vm147_vm0, %v97_v62, 0  ;;  %v5073_v57 = vand.u32 4294901760, %v149_v15  ;;  %v480_v49 = vsub.f32 %v5030_v46, %v5053_v2  ;;  %v5080_v38 = vsub.f32 %v173_v55, %v5055_v5 }
  0x18   :  { %7832 = vst [vmem:[#allocation22_spill] sm:$0xff] %v4895_v39  ;;  %v5087_v62 = vand.u32 4294901760, %v5065_v31 }
  0x19   :  { %7833 = vst [vmem:[#allocation23_spill] sm:$0xff] %v4903_v42  ;;  %4327 = vmatpush.xpose.msra.mxu2 %v4863_v28  ;;  %4341 = vmatpush.xpose.msra.mxu3 %v4910_v44  ;;  %v5099_v55 = vsub.f32 %v149_v15, %v5073_v57 }
  0x1a   :  { %7834 = vst [vmem:[#allocation24_spill] sm:$0xff] %v4906_v43  ;;  %428 = vmatpush.xpose.msra.mxu1 %v4910_v44  ;;  %255 = vmatpush.xpose.msra.mxu0 %v4863_v28 }
  0x1b   :  { %7835 = vst [vmem:[#allocation25_spill] sm:$0xff] %v4910_v44 }
  0x1c   :  { %7836 = vst [vmem:[#allocation26_spill] sm:$0xff] %v4916_v47 }
  0x1d   :  { %7837 = vst [vmem:[#allocation27_spill] sm:$0xff] %v4925_v50  ;;  %4328 = vmatpush.xpose.msra.mxu2 %v4883_v35  ;;  %4342 = vmatpush.xpose.msra.mxu3 %v4929_v51 }
  0x1e   :  { %7838 = vst [vmem:[#allocation28_spill] sm:$0xff] %v4929_v51  ;;  %434 = vmatpush.xpose.msra.mxu1 %v4929_v51  ;;  %257 = vmatpush.xpose.msra.mxu0 %v4883_v35 }
  0x1f   :  { %7839 = vst [vmem:[#allocation29_spill] sm:$0xff] %v4932_v52 }
  0x20   :  { %7840 = vst [vmem:[#allocation30_spill] sm:$0xff] %v4936_v54 }
  0x21   :  { %7841 = vst [vmem:[#allocation31_spill] sm:$0xff] %v4943_v56  ;;  %4329 = vmatpush.xpose.msra.mxu2 %v4903_v42  ;;  %4343 = vmatpush.xpose.msra.mxu3 %v4948_v58 }
  0x22   :  { %7842 = vst [vmem:[#allocation32_spill] sm:$0xff] %v4948_v58  ;;  %440 = vmatpush.xpose.msra.mxu1 %v4948_v58  ;;  %259 = vmatpush.xpose.msra.mxu0 %v4903_v42  ;;  %v5102_v58 = vand.u32 4294901760, %v5080_v38 }
  0x23   :  { %7843 = vst [vmem:[#allocation33_spill] sm:$0xff] %v4953_v60 }
  0x24   :  { %7844 = vst [vmem:[#allocation34_spill] sm:$0xff] %v4956_v61  ;;  %v343_v30 = vsub.f32 %v5080_v38, %v5102_v58 }
  0x25   :  { %7845 = vst [vmem:[#allocation35_spill] sm:$0xff] %v4963_v63  ;;  %4330 = vmatpush.xpose.msra.mxu2 %v4925_v50  ;;  %4344 = vmatpush.xpose.msra.mxu3 %v4968_v1 }
  0x26   :  { %7846 = vst [vmem:[#allocation36_spill] sm:$0xff] %v4968_v1  ;;  %446 = vmatpush.xpose.msra.mxu1 %v4968_v1  ;;  %261 = vmatpush.xpose.msra.mxu0 %v4925_v50  ;;  %v50_v1 = vld [vmem:[%s7567_s0 + $0x8] sm:$0xff] }
  0x27   :  { %7847 = vst [vmem:[#allocation37_spill] sm:$0xff] %v4973_v3 }
  0x28   :  { %7848 = vst [vmem:[#allocation38_spill] sm:$0xff] %v4976_v4 }
  0x29   :  { %7849 = vst [vmem:[#allocation39_spill] sm:$0xff] %v4983_v6  ;;  %4331 = vmatpush.xpose.msra.mxu2 %v4943_v56  ;;  %4345 = vmatpush.xpose.msra.mxu3 %v4990_v11 }
  0x2a   :  { %7850 = vst [vmem:[#allocation40_spill] sm:$0xff] %v4986_v7  ;;  %452 = vmatpush.xpose.msra.mxu1 %v4990_v11  ;;  %263 = vmatpush.xpose.msra.mxu0 %v4943_v56 }
  0x2b   :  { %7851 = vst [vmem:[#allocation41_spill] sm:$0xff] %v4990_v11  ;;  %v5090_v11 = vsub.f32 %v200_v59, %v5062_v22  ;;  %v152_v59 = vsel %vm147_vm0, %v50_v1, 0  ;;  %v59_v1 = vld [vmem:[%s7567_s0 + $0x50] sm:$0xff] }
  0x2c   :  { %7852 = vst [vmem:[#allocation42_spill] sm:$0xff] %v4995_v17  ;;  %v5127_v37 = vand.u32 4294901760, %v152_v59 }
  0x2d   :  { %7853 = vst [vmem:[#allocation43_spill] sm:$0xff] %v5003_v23  ;;  %4332 = vmatpush.xpose.msra.mxu2 %v4963_v63  ;;  %4346 = vmatpush.xpose.msra.mxu3 %v5010_v29  ;;  %v5114_v44 = vand.u32 4294901760, %v5090_v11 }
  0x2e   :  { %7854 = vst [vmem:[#allocation44_spill] sm:$0xff] %v5006_v26  ;;  %458 = vmatpush.xpose.msra.mxu1 %v5010_v29  ;;  %265 = vmatpush.xpose.msra.mxu0 %v4963_v63 }
  0x2f   :  { %7855 = vst [vmem:[#allocation45_spill] sm:$0xff] %v5010_v29  ;;  %v5075_v29 = vand.u32 4294901760, %v474_v0  ;;  %v176_v0 = vsel %vm147_vm0, %v58_v41, 0  ;;  %v5109_v41 = vand.u32 4294901760, %v480_v49  ;;  %v5125_v49 = vand.u32 4294901760, %v5099_v55 }
  0x30   :  { %7856 = vst [vmem:[#allocation46_spill] sm:$0xff] %v5015_v34  ;;  %v5104_v51 = vand.u32 4294901760, %v176_v0 }
  0x31   :  { %7857 = vst [vmem:[#allocation47_spill] sm:$0xff] %v5027_v45  ;;  %4333 = vmatpush.xpose.msra.mxu2 %v4983_v6  ;;  %4347 = vmatpush.xpose.msra.mxu3 %v5034_v48 }
  0x32   :  { %7858 = vst [vmem:[#allocation48_spill] sm:$0xff] %v5030_v46  ;;  %464 = vmatpush.xpose.msra.mxu1 %v5034_v48  ;;  %267 = vmatpush.xpose.msra.mxu0 %v4983_v6  ;;  %v5132_v27 = vsub.f32 %v176_v0, %v5104_v51  ;;  %v5152_v0 = vsub.f32 %v152_v59, %v5127_v37 }
  0x33   :  { %7859 = vst [vmem:[#allocation49_spill] sm:$0xff] %v5034_v48  ;;  %v5084_v48 = vand.u32 4294901760, %v197_v40 }
  0x34   :  { %7860 = vst [vmem:[#allocation50_spill] sm:$0xff] %v5038_v53  ;;  %v5177_v59 = vand.u32 4294901760, %v5152_v0 }
  0x35   :  { %7861 = vst [vmem:[#allocation51_spill] sm:$0xff] %v5053_v2  ;;  %4334 = vmatpush.xpose.msra.mxu2 %v5003_v23  ;;  %4348 = vmatpush.xpose.msra.mxu3 %v5060_v21  ;;  %v5117_v15 = vsub.f32 %v197_v40, %v5084_v48 }
  0x36   :  { %7862 = vst [vmem:[#allocation52_spill] sm:$0xff] %v5055_v5  ;;  %470 = vmatpush.xpose.msra.mxu1 %v5060_v21  ;;  %269 = vmatpush.xpose.msra.mxu0 %v5003_v23  ;;  %v179_v23 = vsel %vm147_vm0, %v59_v1, 0 }
  0x37   :  { %7863 = vst [vmem:[#allocation53_spill] sm:$0xff] %v5060_v21  ;;  %v486_v21 = vsub.f32 %v5065_v31, %v5087_v62  ;;  %v5159_v1 = vand.u32 4294901760, %v179_v23 }
  0x38   :  { %7864 = vst [vmem:[#allocation54_spill] sm:$0xff] %v5062_v22 }
  0x39   :  { %7865 = vst [vmem:[#allocation55_spill] sm:$0xff] %v5065_v31  ;;  %4335 = vmatpush.xpose.msra.mxu2 %v5038_v53  ;;  %4349 = vmatpush.xpose.msra.mxu3 %v5075_v29  ;;  %v5136_v40 = vand.u32 4294901760, %v486_v21  ;;  %v279_v21 = vsub.f32 %v5099_v55, %v5125_v49 }
  0x3a   :  { %7866 = vst [vmem:[#allocation56_spill] sm:$0xff] %v5075_v29  ;;  %476 = vmatpush.xpose.msra.mxu1 %v5075_v29  ;;  %271 = vmatpush.xpose.msra.mxu0 %v5038_v53  ;;  %v492_v29 = vsub.f32 %v5090_v11, %v5114_v44  ;;  %v5141_v53 = vand.u32 4294901760, %v5117_v15 }
  0x3b   :  { %7867 = vst [vmem:[#allocation57_spill] sm:$0xff] %v5080_v38  ;;  %v5154_v38 = vand.u32 4294901760, %v343_v30  ;;  %v60_v30 = vld [vmem:[%s7567_s0 + $0x58] sm:$0xff] }
  0x3c   :  { %7868 = vst [vmem:[#allocation58_spill] sm:$0xff] %v5084_v48 }
  0x3d   :  { %7869 = vst [vmem:[#allocation59_spill] sm:$0xff] %v5087_v62  ;;  %4336 = vmatpush.xpose.msra.mxu2 %v5062_v22  ;;  %4350 = vmatpush.xpose.msra.mxu3 %v5109_v41 }
  0x3e   :  { %7870 = vst [vmem:[#allocation60_spill] sm:$0xff] %v5090_v11  ;;  %482 = vmatpush.xpose.msra.mxu1 %v5109_v41  ;;  %273 = vmatpush.xpose.msra.mxu0 %v5062_v22 }
  0x3f   :  { %7871 = vst [vmem:[#allocation61_spill] sm:$0xff] %v5099_v55  ;;  %v52_v55 = vld [vmem:[%s7567_s0 + $0x18] sm:$0xff] }
  0x40   :  { %7872 = vst [vmem:[#allocation62_spill] sm:$0xff] %v5102_v58  ;;  %v51_v58 = vld [vmem:[%s7567_s0 + $0x10] sm:$0xff] }
  0x41   :  { %7873 = vst [vmem:[#allocation63_spill] sm:$0xff] %v5104_v51  ;;  %v155_v11 = vsel %vm147_vm0, %v51_v58, 0  ;;  %4337 = vmatpush.xpose.msra.mxu2 %v5084_v48  ;;  %4351 = vmatpush.xpose.msra.mxu3 %v5136_v40  ;;  %v5174_v58 = vand.u32 4294901760, %v279_v21  ;;  %v182_v21 = vsel %vm147_vm0, %v60_v30, 0 }
  0x42   :  { %7874 = vst [vmem:[#allocation64_spill] sm:$0xff] %v5109_v41  ;;  %v5164_v41 = vand.u32 4294901760, %v492_v29  ;;  %488 = vmatpush.xpose.msra.mxu1 %v5136_v40  ;;  %275 = vmatpush.xpose.msra.mxu0 %v5084_v48  ;;  %v5179_v29 = vand.u32 4294901760, %v155_v11 }
  0x43   :  { %7875 = vst [vmem:[#allocation65_spill] sm:$0xff] %v5114_v44  ;;  %v5157_v44 = vand.u32 4294901760, %v5132_v27 }
  0x44   :  { %7876 = vst [vmem:[#allocation66_spill] sm:$0xff] %v5117_v15  ;;  %345 = vmatmul.f32.vlgmr.msra.gmra.mxu2 %v5154_v38 }
  0x45   :  { %7877 = vst [vmem:[#allocation67_spill] sm:$0xff] %v5125_v49  ;;  %v498_v49 = vsub.f32 %v5117_v15, %v5141_v53  ;;  %568 = vmatpush.xpose.msrb.mxu2 %v4824_v13  ;;  %v351_v13 = vsub.f32 %v5132_v27, %v5157_v44  ;;  %4352 = vmatpush.xpose.msra.mxu3 %v5164_v41 }
  0x46   :  { %7878 = vst [vmem:[#allocation68_spill] sm:$0xff] %v5132_v27  ;;  %827 = vmatpush.xpose.msrb.mxu0 %v4838_v18  ;;  %494 = vmatpush.xpose.msra.mxu1 %v5164_v41  ;;  %v5209_v18 = vand.u32 4294901760, %v182_v21 }
  0x47   :  { %7879 = vst [vmem:[#allocation69_spill] sm:$0xff] %v5136_v40  ;;  %v5185_v40 = vsub.f32 %v179_v23, %v5159_v1  ;;  %v5189_v48 = vand.u32 4294901760, %v498_v49  ;;  %281 = vmatmul.f32.vlgmr.msra.gmra.mxu0 %v5174_v58  ;;  %v287_v23 = vsub.f32 %v5152_v0, %v5177_v59  ;;  %v5203_v49 = vand.u32 4294901760, %v351_v13  ;;  %v61_v13 = vld [vmem:[%s7567_s0 + $0x60] sm:$0xff] }
  0x48   :  { %7880 = vst [vmem:[#allocation70_spill] sm:$0xff] %v5141_v53 }
  0x49   :  { %7881 = vst [vmem:[#allocation71_spill] sm:$0xff] %v5154_v38  ;;  %571 = vmatpush.xpose.msrb.mxu2 %v4827_v14  ;;  %v5201_v38 = vsub.f32 %v155_v11, %v5179_v29  ;;  %v5206_v30 = vand.u32 4294901760, %v5185_v40  ;;  %v158_v14 = vsel %vm147_vm0, %v52_v55, 0  ;;  %4353 = vmatpush.xpose.msra.mxu3 %v5189_v48  ;;  %v5219_v11 = vand.u32 4294901760, %v287_v23 }
  0x4a   :  { %7882 = vst [vmem:[#allocation72_spill] sm:$0xff] %v5157_v44  ;;  %831 = vmatpush.xpose.msrb.mxu0 %v4841_v19  ;;  %500 = vmatpush.xpose.msra.mxu1 %v5189_v48  ;;  %v185_v23 = vsel %vm147_vm0, %v61_v13, 0 }
  0x4b   :  { %7883 = vst [vmem:[#allocation73_spill] sm:$0xff] %v5159_v1  ;;  %v5222_v19 = vand.u32 4294901760, %v5201_v38  ;;  %v359_v55 = vsub.f32 %v5185_v40, %v5206_v30 }
  0x4c   :  { %7884 = vst [vmem:[#allocation74_spill] sm:$0xff] %v5164_v41  ;;  %v5224_v41 = vand.u32 4294901760, %v158_v14  ;;  %353 = vmatmul.f32.gmra.mxu2 %v5203_v49  ;;  %534 = vmatmul.f32.vlgmr.msra.gmra.mxu3 %v5055_v5 }
  0x4d   :  { %7885 = vst [vmem:[#allocation75_spill] sm:$0xff] %v5174_v58  ;;  %696 = vmatpush.xpose.msrb.mxu3 %v4813_v8  ;;  %574 = vmatpush.xpose.msrb.mxu2 %v4832_v16  ;;  %v5231_v16 = vsub.f32 %v182_v21, %v5209_v18  ;;  %v295_v21 = vsub.f32 %v5201_v38, %v5222_v19  ;;  %v5253_v58 = vand.u32 4294901760, %v185_v23 }
  0x4e   :  { %7886 = vst [vmem:[#allocation76_spill] sm:$0xff] %v5179_v29  ;;  %954 = vmatpush.xpose.msrb.mxu1 %v4813_v8  ;;  %835 = vmatpush.xpose.msrb.mxu0 %v4852_v24  ;;  %v5248_v24 = vand.u32 4294901760, %v359_v55 }
  0x4f   :  { %7887 = vst [vmem:[#allocation77_spill] sm:$0xff] %v5185_v40  ;;  %502 = vmatmul.f32.vlgmr.msra.gmra.mxu1 %v5073_v57  ;;  %289 = vmatmul.f32.gmra.mxu0 %v5219_v11  ;;  %v5251_v13 = vand.u32 4294901760, %v5231_v16  ;;  %v5263_v55 = vand.u32 4294901760, %v295_v21 }
  0x50   :  { %7888 = vst [vmem:[#allocation78_spill] sm:$0xff] %v5189_v48  ;;  %v53_v48 = vld [vmem:[%s7567_s0 + $0x20] sm:$0xff] }
  0x51   :  { %7889 = vst [vmem:[#allocation79_spill] sm:$0xff] %v5201_v38  ;;  %698 = vmatpush.xpose.msrb.mxu3 %v4815_v9  ;;  %577 = vmatpush.xpose.msrb.mxu2 %v4856_v25  ;;  %v161_v8 = vsel %vm147_vm0, %v53_v48, 0  ;;  %v367_v48 = vsub.f32 %v5231_v16, %v5251_v13 }
  0x52   :  { %7890 = vst [vmem:[#allocation80_spill] sm:$0xff] %v5203_v49  ;;  %v5246_v49 = vsub.f32 %v158_v14, %v5224_v41  ;;  %956 = vmatpush.xpose.msrb.mxu1 %v4815_v9  ;;  %839 = vmatpush.xpose.msrb.mxu0 %v4873_v32  ;;  %v62_v14 = vld [vmem:[%s7567_s0 + $0x68] sm:$0xff]  ;;  %v5275_v32 = vsub.f32 %v185_v23, %v5253_v58 }
  0x53   :  { %7891 = vst [vmem:[#allocation81_spill] sm:$0xff] %v5206_v30  ;;  %v188_v21 = vsel %vm147_vm0, %v62_v14, 0 }
  0x54   :  { %7892 = vst [vmem:[#allocation82_spill] sm:$0xff] %v5219_v11  ;;  %v5266_v25 = vand.u32 4294901760, %v5246_v49  ;;  %v5268_v11 = vand.u32 4294901760, %v161_v8  ;;  %361 = vmatmul.f32.gmra.mxu2 %v5248_v24  ;;  %538 = vmatmul.f32.gmra.mxu3 %v5104_v51  ;;  %v5295_v14 = vand.u32 4294901760, %v5275_v32 }
  0x55   :  { %7893 = vst [vmem:[#allocation83_spill] sm:$0xff] %v5222_v19  ;;  %700 = vmatpush.xpose.msrb.mxu3 %v4817_v10  ;;  %580 = vmatpush.xpose.msrb.mxu2 %v4876_v33  ;;  %v54_v33 = vld [vmem:[%s7567_s0 + $0x28] sm:$0xff] }
  0x56   :  { %7894 = vst [vmem:[#allocation84_spill] sm:$0xff] %v5224_v41  ;;  %958 = vmatpush.xpose.msrb.mxu1 %v4817_v10  ;;  %843 = vmatpush.xpose.msrb.mxu0 %v4895_v39  ;;  %v303_v23 = vsub.f32 %v5246_v49, %v5266_v25  ;;  %v5292_v39 = vand.u32 4294901760, %v367_v48  ;;  %v5297_v10 = vand.u32 4294901760, %v188_v21  ;;  %v164_v9 = vsel %vm147_vm0, %v54_v33, 0 }
  0x57   :  { %7895 = vst [vmem:[#allocation85_spill] sm:$0xff] %v5231_v16  ;;  %506 = vmatmul.f32.gmra.mxu1 %v5127_v37  ;;  %297 = vmatmul.f32.gmra.mxu0 %v5263_v55  ;;  %v375_v33 = vsub.f32 %v5275_v32, %v5295_v14 }
  0x58   :  { %7896 = vst [vmem:[#allocation86_spill] sm:$0xff] %v5246_v49  ;;  %v5307_v48 = vand.u32 4294901760, %v303_v23 }
  0x59   :  { %7897 = vst [vmem:[#allocation87_spill] sm:$0xff] %v5248_v24  ;;  %702 = vmatpush.xpose.msrb.mxu3 %v4820_v12  ;;  %583 = vmatpush.xpose.msrb.mxu2 %v4886_v36  ;;  %v5290_v24 = vsub.f32 %v161_v8, %v5268_v11  ;;  %v63_v8 = vld [vmem:[%s7567_s0 + $0x70] sm:$0xff] }
  0x5a   :  { %7898 = vst [vmem:[#allocation88_spill] sm:$0xff] %v5251_v13  ;;  %960 = vmatpush.xpose.msrb.mxu1 %v4820_v12  ;;  %847 = vmatpush.xpose.msrb.mxu0 %v4906_v43  ;;  %v5319_v43 = vsub.f32 %v188_v21, %v5297_v10  ;;  %v191_v23 = vsel %vm147_vm0, %v63_v8, 0 }
  0x5b   :  { %7899 = vst [vmem:[#allocation89_spill] sm:$0xff] %v5263_v55  ;;  %v5310_v36 = vand.u32 4294901760, %v5290_v24  ;;  %v5312_v55 = vand.u32 4294901760, %v164_v9 }
  0x5c   :  { %7900 = vst [vmem:[#allocation90_spill] sm:$0xff] %v5266_v25  ;;  %369 = vmatmul.f32.gmra.mxu2 %v5292_v39  ;;  %542 = vmatmul.f32.gmra.mxu3 %v5159_v1  ;;  %v5339_v8 = vand.u32 4294901760, %v5319_v43 }
  0x5d   :  { %7901 = vst [vmem:[#allocation91_spill] sm:$0xff] %v5268_v11  ;;  %704 = vmatpush.xpose.msrb.mxu3 %v4843_v20  ;;  %586 = vmatpush.xpose.msrb.mxu2 %v4916_v47  ;;  %v55_v47 = vld [vmem:[%s7567_s0 + $0x30] sm:$0xff]  ;;  %v311_v21 = vsub.f32 %v5290_v24, %v5310_v36 }
  0x5e   :  { %7902 = vst [vmem:[#allocation92_spill] sm:$0xff] %v5275_v32  ;;  %962 = vmatpush.xpose.msrb.mxu1 %v4843_v20  ;;  %851 = vmatpush.xpose.msrb.mxu0 %v4932_v52  ;;  %v5336_v52 = vand.u32 4294901760, %v375_v33  ;;  %v5341_v20 = vand.u32 4294901760, %v191_v23  ;;  %v167_v12 = vsel %vm147_vm0, %v55_v47, 0  ;;  %v383_v47 = vsub.f32 %v5319_v43, %v5339_v8 }
  0x5f   :  { %7903 = vst [vmem:[#allocation93_spill] sm:$0xff] %v5290_v24  ;;  %510 = vmatmul.f32.gmra.mxu1 %v5179_v29  ;;  %305 = vmatmul.f32.gmra.mxu0 %v5307_v48  ;;  %v5351_v33 = vand.u32 4294901760, %v311_v21 }
  0x60   :  { %7904 = vst [vmem:[#allocation94_spill] sm:$0xff] %v5292_v39  ;;  %v5334_v39 = vsub.f32 %v164_v9, %v5312_v55  ;;  %v64_v9 = vld [vmem:[%s7567_s0 + $0x78] sm:$0xff] }
  0x61   :  { %7905 = vst [vmem:[#allocation95_spill] sm:$0xff] %v5307_v48  ;;  %706 = vmatpush.xpose.msrb.mxu3 %v4863_v28  ;;  %589 = vmatpush.xpose.msrb.mxu2 %v4936_v54  ;;  %v5356_v48 = vand.u32 4294901760, %v167_v12  ;;  %v194_v21 = vsel %vm147_vm0, %v64_v9, 0 }
  0x62   :  { %7906 = vst [vmem:[#allocation96_spill] sm:$0xff] %v5310_v36  ;;  %964 = vmatpush.xpose.msrb.mxu1 %v4863_v28  ;;  %855 = vmatpush.xpose.msrb.mxu0 %v4953_v60  ;;  %v5354_v54 = vand.u32 4294901760, %v5334_v39  ;;  %v5363_v60 = vsub.f32 %v191_v23, %v5341_v20 }
  0x63   :  { %7907 = vst [vmem:[#allocation97_spill] sm:$0xff] %v5312_v55 }
  0x64   :  { %7908 = vst [vmem:[#allocation98_spill] sm:$0xff] %v5334_v39  ;;  %377 = vmatmul.f32.gmra.mxu2 %v5336_v52  ;;  %546 = vmatmul.f32.gmra.mxu3 %v5209_v18  ;;  %v319_v23 = vsub.f32 %v5334_v39, %v5354_v54  ;;  %v5383_v9 = vand.u32 4294901760, %v5363_v60 }
  0x65   :  { %7909 = vst [vmem:[#allocation99_spill] sm:$0xff] %v5336_v52  ;;  %708 = vmatpush.xpose.msrb.mxu3 %v4883_v35  ;;  %592 = vmatpush.xpose.msrb.mxu2 %v4956_v61  ;;  %v56_v52 = vld [vmem:[%s7567_s0 + $0x38] sm:$0xff]  ;;  %v5378_v61 = vsub.f32 %v167_v12, %v5356_v48 }
  0x66   :  { %7910 = vst [vmem:[#allocation100_spill] sm:$0xff] %v5351_v33  ;;  %966 = vmatpush.xpose.msrb.mxu1 %v4883_v35  ;;  %859 = vmatpush.xpose.msrb.mxu0 %v4973_v3  ;;  %v5380_v3 = vand.u32 4294901760, %v383_v47  ;;  %v170_v35 = vsel %vm147_vm0, %v56_v52, 0  ;;  %v391_v47 = vsub.f32 %v5363_v60, %v5383_v9 }
  0x67   :  { %7911 = vst [vmem:[#allocation101_spill] sm:$0xff] %v5354_v54  ;;  %514 = vmatmul.f32.gmra.mxu1 %v5224_v41  ;;  %313 = vmatmul.f32.gmra.mxu0 %v5351_v33  ;;  %v5392_v33 = vand.u32 4294901760, %v319_v23  ;;  %v5395_v12 = vand.u32 4294901760, %v5378_v61  ;;  %v5404_v52 = vand.u32 4294901760, %v170_v35  ;;  %v80_v23 = vld [vmem:[%s7568_s1 + $0x78] sm:$0xff] }
  0x68   :  { %7912 = vst [vmem:[#allocation102_spill] sm:$0xff] %v5356_v48 }
  0x69   :  { %7913 = vst [vmem:[#allocation103_spill] sm:$0xff] %v5363_v60  ;;  %710 = vmatpush.xpose.msrb.mxu3 %v4903_v42  ;;  %595 = vmatpush.xpose.msrb.mxu2 %v4976_v4  ;;  %v5385_v4 = vand.u32 4294901760, %v194_v21 }
  0x6a   :  { %7914 = vst [vmem:[#allocation104_spill] sm:$0xff] %v5378_v61  ;;  %968 = vmatpush.xpose.msrb.mxu1 %v4903_v42  ;;  %863 = vmatpush.xpose.msrb.mxu0 %v4995_v17  ;;  %v7933_v42 = vld [vmem:[#allocation61_spill] sm:$0xff] }
  0x6b   :  { %7915 = vst [vmem:[#allocation105_spill] sm:$0xff] %v5380_v3  ;;  %v5402_v17 = vsub.f32 %v194_v21, %v5385_v4  ;;  %v327_v21 = vsub.f32 %v5378_v61, %v5395_v12 }
  0x6c   :  { %7916 = vst [vmem:[#allocation106_spill] sm:$0xff] %v5383_v9  ;;  %385 = vmatmul.f32.gmra.mxu2 %v5380_v3  ;;  %550 = vmatmul.f32.gmra.mxu3 %v5253_v58  ;;  %v5417_v3 = vand.u32 4294901760, %v391_v47 }
  0x6d   :  { %712 = vmatpush.xpose.msrb.mxu3 %v4925_v50  ;;  %598 = vmatpush.xpose.msrb.mxu2 %v4986_v7  ;;  %7917 = vst [vmem:[#allocation107_spill] sm:$0xff] %v5392_v33  ;;  %v5420_v7 = vand.u32 4294901760, %v5402_v17  ;;  %v5433_v47 = vand.u32 4294901760, %v327_v21  ;;  %v78_v21 = vld [vmem:[%s7568_s1 + $0x68] sm:$0xff] }
  0x6e   :  { %7918 = vst [vmem:[#allocation108_spill] sm:$0xff] %v5395_v12  ;;  %970 = vmatpush.xpose.msrb.mxu1 %v4925_v50  ;;  %867 = vmatpush.xpose.msrb.mxu0 %v5015_v34  ;;  %v1595_v34 = vsel %vm147_vm0, %v80_v23, 0  ;;  %v5424_v50 = vsub.f32 %v170_v35, %v5404_v52 }
  0x6f   :  { %7919 = vst [vmem:[#allocation109_spill] sm:$0xff] %v5402_v17  ;;  %518 = vmatmul.f32.gmra.mxu1 %v5268_v11  ;;  %321 = vmatmul.f32.gmra.mxu0 %v5392_v33  ;;  %v5435_v33 = vand.u32 4294901760, %v1595_v34  ;;  %v399_v35 = vsub.f32 %v5402_v17, %v5420_v7 }
  0x70   :  { %7920 = vst [vmem:[#allocation110_spill] sm:$0xff] %v5404_v52  ;;  %v5442_v23 = vand.u32 4294901760, %v5424_v50 }
  0x71   :  { %714 = vmatpush.xpose.msrb.mxu3 %v4943_v56  ;;  %601 = vmatpush.xpose.msrb.mxu2 %v5006_v26  ;;  %7921 = vst [vmem:[#allocation111_spill] sm:$0xff] %v5417_v3  ;;  %v79_v26 = vld [vmem:[%s7568_s1 + $0x70] sm:$0xff] }
  0x72   :  { %7922 = vst [vmem:[#allocation112_spill] sm:$0xff] %v5420_v7  ;;  %972 = vmatpush.xpose.msrb.mxu1 %v4943_v56  ;;  %871 = vmatpush.xpose.msrb.mxu0 %v5027_v45  ;;  %v1592_v45 = vsel %vm147_vm0, %v79_v26, 0  ;;  %v7928_v56 = vld [vmem:[#allocation60_spill] sm:$0xff] }
  0x73   :  { %7923 = vst [vmem:[#allocation113_spill] sm:$0xff] %v5424_v50  ;;  %v5457_v26 = vand.u32 4294901760, %v1592_v45 }
  0x74   :  { %7924 = vst [vmem:[#allocation114_spill] sm:$0xff] %v5433_v47  ;;  %393 = vmatmul.f32.gmra.mxu2 %v5417_v3  ;;  %554 = vmatmul.f32.gmra.mxu3 %v5297_v10  ;;  %v5455_v3 = vsub.f32 %v1595_v34, %v5435_v33 }
  0x75   :  { %716 = vmatpush.xpose.msrb.mxu3 %v4963_v63  ;;  %604 = vmatpush.xpose.msrb.mxu2 %v5030_v46  ;;  %7925 = vst [vmem:[#allocation115_spill] sm:$0xff] %v5442_v23  ;;  %v5459_v46 = vand.u32 4294901760, %v399_v35 }
  0x76   :  { %974 = vmatpush.xpose.msrb.mxu1 %v4963_v63  ;;  %875 = vmatpush.xpose.msrb.mxu0 %v5053_v2  ;;  %v335_v2 = vsub.f32 %v5424_v50, %v5442_v23  ;;  %v1589_v63 = vsel %vm147_vm0, %v78_v21, 0 }
  0x77   :  { %522 = vmatmul.f32.gmra.mxu1 %v5312_v55  ;;  %329 = vmatmul.f32.gmra.mxu0 %v5433_v47  ;;  %7926 = vst [vmem:[#allocation116_spill] sm:$0xff] %v5459_v46  ;;  %v5470_v47 = vsub.f32 %v1592_v45, %v5457_v26  ;;  %v5472_v35 = vand.u32 4294901760, %v1589_v63  ;;  %v7931_v45 = vld [vmem:[#allocation50_spill] sm:$0xff] }
  0x78   :  { %v5476_v21 = vand.u32 4294901760, %v335_v2  ;;  %v7932_v2 = vand.u32 4294901760, %v5455_v3 }
  0x79   :  { %718 = vmatpush.xpose.msrb.mxu3 %v4983_v6  ;;  %607 = vmatpush.xpose.msrb.mxu2 %v5065_v31  ;;  %v7927_v31 = vld [vmem:[#allocation43_spill] sm:$0xff] }
  0x7a   :  { %976 = vmatpush.xpose.msrb.mxu1 %v4983_v6  ;;  %879 = vmatpush.xpose.msrb.mxu0 %v5087_v62  ;;  %7929 = vst [vmem:[#allocation117_spill] sm:$0xff] %v5476_v21  ;;  %v77_v62 = vld [vmem:[%s7568_s1 + $0x60] sm:$0xff]  ;;  %v7679_v6 = vand.u32 4294901760, %v5470_v47 }
  0x7b   :  { %v1586_v34 = vsel %vm147_vm0, %v77_v62, 0  ;;  %v4749_v62 = vmov 0  }
  0x7c   :  { %401 = vmatmul.f32.gmra.mxu2 %v5459_v46  ;;  %558 = vmatmul.f32.gmra.mxu3 %v5341_v20  ;;  %v1761_v46 = vsub.f32 %v5455_v3, %v7932_v2  ;;  %v1767_v2 = vsub.f32 %v5470_v47, %v7679_v6  ;;  %v7934_v6 = vld [vmem:[#allocation58_spill] sm:$0xff] }
  0x7d   :  { %720 = vmatpush.xpose.msrb.mxu3 %v7927_v31  ;;  %610 = vmatpush.xpose.msrb.mxu2 %v7928_v56  ;;  %v7930_v56 = vld [vmem:[#allocation65_spill] sm:$0xff] }
  0x7e   :  { %978 = vmatpush.xpose.msrb.mxu1 %v7927_v31  ;;  %883 = vmatpush.xpose.msrb.mxu0 %v7930_v56  ;;  %v5493_v31 = vsub.f32 %v1589_v63, %v5472_v35  ;;  %v5496_v56 = vand.u32 4294901760, %v1586_v34  ;;  %v1762_v63 = vand.u32 4294901760, %v1761_v46  ;;  %v76_v46 = vld [vmem:[%s7568_s1 + $0x58] sm:$0xff] }
  0x7f   :  { %526 = vmatmul.f32.gmra.mxu1 %v5356_v48  ;;  %337 = vmatmul.f32.gmra.mxu0 %v5476_v21 }
  0x80   :  { %4357 = vset.pattern.permute.xlu0 %v4749_v62  ;;  %v7682_v21 = vand.u32 4294901760, %v5493_v31  ;;  %4358 = vset.pattern.permute.xlu1 %v4749_v62 }
  0x81   :  { %722 = vmatpush.xpose.msrb.mxu3 %v7931_v45  ;;  %613 = vmatpush.xpose.msrb.mxu2 %v5117_v15  ;;  %v113_v15 = vld [vmem:[%s7569_s4] sm:$0xff] }
  0x82   :  { %980 = vmatpush.xpose.msrb.mxu1 %v7931_v45  ;;  %887 = vmatpush.xpose.msrb.mxu0 %v5141_v53  ;;  %v5513_v53 = vsub.f32 %v1586_v34, %v5496_v56  ;;  %v1583_v45 = vsel %vm147_vm0, %v76_v46, 0  ;;  %v1773_v34 = vsub.f32 %v5493_v31, %v7682_v21  ;;  %v7935_v21 = vld [vmem:[#allocation67_spill] sm:$0xff] }
  0x83   :  { %1052 = vperm.xlu0 %4357, %v113_v15   ;;  %v1768_v15 = vand.u32 4294901760, %v1767_v2  ;;  %v5529_v46 = vand.u32 4294901760, %v1583_v45  ;;  %4359 = vset.pattern.permute.xlu2 %v4749_v62  ;;  %v75_v62 = vld [vmem:[%s7568_s1 + $0x50] sm:$0xff] }
  0x84   :  { %562 = vmatmul.f32.gmra.mxu3 %v5385_v4  ;;  %616 = vmatmul.f32.vlgmr.msrb.gmra.mxu2 %v7933_v42  ;;  %v7685_v42 = vand.u32 4294901760, %v5513_v53 }
  0x85   :  { %1598 = vmatpush.xpose.msra.mxu2 %v5435_v33  ;;  %724 = vmatpush.xpose.msrb.mxu3 %v5062_v22  ;;  %v5543_v7 = vsub.f32 %v1583_v45, %v5529_v46 }
  0x86   :  { %1921 = vmatpush.xpose.msra.mxu0 %v5455_v3  ;;  %982 = vmatpush.xpose.msrb.mxu1 %v5062_v22  ;;  %v114_v22 = vld [vmem:[%s7569_s4 + $0x8] sm:$0xff]  ;;  %v1779_v2 = vsub.f32 %v5513_v53, %v7685_v42 }
  0x87   :  { %530 = vmatmul.f32.gmra.mxu1 %v5404_v52  ;;  %889 = vmatmul.f32.vlgmr.msrb.gmra.mxu0 %v5073_v57 }
  0x88   :  { %v1780_v45 = vand.u32 4294901760, %v1779_v2  ;;  %v74_v2 = vld [vmem:[%s7568_s1 + $0x48] sm:$0xff] }
  0x89   :  { %1600 = vmatpush.xpose.msra.mxu2 %v5457_v26  ;;  %726 = vmatpush.xpose.msrb.mxu3 %v7934_v6 }
  0x8a   :  { %1924 = vmatpush.xpose.msra.mxu0 %v5470_v47  ;;  %984 = vmatpush.xpose.msrb.mxu1 %v7934_v6 }
  0x8b   :  { %1057 = vperm.xlu0 %4357, %v114_v22   ;;  %v7687_v22 = vand.u32 4294901760, %v5543_v7 }
  0x8c   :  { %621 = vmatmul.f32.gmra.mxu2 %v5152_v0  ;;  %730 = vmatmul.f32.vlgmr.msrb.gmra.mxu3 %v7935_v21 }
  0x8d   :  { %1763 = vmatpush.xpose.msra.mxu3 %v1762_v63  ;;  %1602 = vmatpush.xpose.msra.mxu2 %v5472_v35  ;;  %v1774_v63 = vand.u32 4294901760, %v1773_v34  ;;  %v1580_v34 = vsel %vm147_vm0, %v75_v62, 0  ;;  %v1785_v42 = vsub.f32 %v5543_v7, %v7687_v22 }
  0x8e   :  { %2049 = vmatpush.xpose.msra.mxu1 %v5435_v33  ;;  %1927 = vmatpush.xpose.msra.mxu0 %v5493_v31  ;;  %v5561_v6 = vand.u32 4294901760, %v1580_v34 }
  0x8f   :  { %986 = vmatmul.f32.vlgmr.msrb.gmra.mxu1 %v5073_v57  ;;  %893 = vmatmul.f32.gmra.mxu0 %v5127_v37  ;;  %v1786_v62 = vand.u32 4294901760, %v1785_v42 }
  0x91   :  { %1769 = vmatpush.xpose.msra.mxu3 %v1768_v15  ;;  %v115_v15 = vld [vmem:[%s7569_s4 + $0x10] sm:$0xff]  ;;  %1604 = vmatpush.xpose.msra.mxu2 %v5496_v56 }
  0x92   :  { %1062 = vperm.xlu1 %4358, %v115_v15   ;;  %2051 = vmatpush.xpose.msra.mxu1 %v5457_v26  ;;  %v130_v15 = vld [vmem:[%s7570_s6] sm:$0xff] }
  0x93   :  { %1930 = vmatpush.xpose.msra.mxu0 %v5513_v53 }
  0x94   :  { %626 = vmatmul.f32.gmra.mxu2 %v5201_v38  ;;  %736 = vmatmul.f32.gmra.mxu3 %v5177_v59 }
  0x95   :  { %1775 = vmatpush.xpose.msra.mxu3 %v1774_v63  ;;  %1606 = vmatpush.xpose.msra.mxu2 %v5529_v46  ;;  %v5569_v63 = vsub.f32 %v1580_v34, %v5561_v6 }
  0x96   :  { %2053 = vmatpush.xpose.msra.mxu1 %v5472_v35 }
  0x97   :  { %1933 = vmatpush.xpose.msra.mxu0 %v5543_v7  ;;  %v7688_v42 = vand.u32 4294901760, %v5569_v63  ;;  %990 = vmatmul.f32.gmra.mxu1 %v5127_v37 }
  0x98   :  { %897 = vmatmul.f32.gmra.mxu0 %v5179_v29 }
  0x99   :  { %1781 = vmatpush.xpose.msra.mxu3 %v1780_v45  ;;  %1608 = vmatpush.xpose.msra.mxu2 %v5561_v6  ;;  %v1577_v45 = vsel %vm147_vm0, %v74_v2, 0  ;;  %v1791_v34 = vsub.f32 %v5569_v63, %v7688_v42  ;;  %v117_v42 = vld [vmem:[%s7569_s4 + $0x20] sm:$0xff] }
  0x9a   :  { %3646 = vperm.xlu1 %4358, %v130_v15   ;;  %2055 = vmatpush.xpose.msra.mxu1 %v5496_v56  ;;  %v5581_v22 = vand.u32 4294901760, %v1577_v45 }
  0x9b   :  { %1936 = vmatpush.xpose.msra.mxu0 %v5569_v63  ;;  %v1792_v2 = vand.u32 4294901760, %v1791_v34  ;;  %v132_v34 = vld [vmem:[%s7570_s6 + $0x10] sm:$0xff] }
  0x9c   :  { %631 = vmatmul.f32.gmra.mxu2 %v5246_v49  ;;  %742 = vmatmul.f32.gmra.mxu3 %v5222_v19  ;;  %v5594_v15 = vsub.f32 %v1577_v45, %v5581_v22 }
  0x9d   :  { %1787 = vmatpush.xpose.msra.mxu3 %v1786_v62  ;;  %1610 = vmatpush.xpose.msra.mxu2 %v5581_v22  ;;  %v73_v62 = vld [vmem:[%s7568_s1 + $0x40] sm:$0xff] }
  0x9e   :  { %2057 = vmatpush.xpose.msra.mxu1 %v5529_v46  ;;  %v1574_v49 = vsel %vm147_vm0, %v73_v62, 0  ;;  %v7691_v19 = vand.u32 4294901760, %v5594_v15  ;;  %3656 = vperm.xlu0 %4357, %v132_v34  }
  0x9f   :  { %v5608_v45 = vand.u32 4294901760, %v1574_v49  ;;  %994 = vmatmul.f32.gmra.mxu1 %v5179_v29  ;;  %1939 = vmatpush.xpose.msra.mxu0 %v5594_v15 }
  0xa0   :  { %901 = vmatmul.f32.gmra.mxu0 %v5224_v41 }
  0xa1   :  { %1793 = vmatpush.xpose.msra.mxu3 %v1792_v2  ;;  %v1797_v2 = vsub.f32 %v5594_v15, %v7691_v19  ;;  %1612 = vmatpush.xpose.msra.mxu2 %v5608_v45  ;;  %v5621_v62 = vsub.f32 %v1574_v49, %v5608_v45  ;;  %v131_v19 = vld [vmem:[%s7570_s6 + $0x8] sm:$0xff] }
  0xa2   :  { %1072 = vperm.xlu1 %4358, %v117_v42   ;;  %2059 = vmatpush.xpose.msra.mxu1 %v5561_v6  ;;  %v118_v49 = vld [vmem:[%s7569_s4 + $0x28] sm:$0xff] }
  0xa3   :  { %v1798_v42 = vand.u32 4294901760, %v1797_v2  ;;  %v7698_v34 = vand.u32 4294901760, %v5621_v62  ;;  %1942 = vmatpush.xpose.msra.mxu0 %v5621_v62  ;;  %v72_v2 = vld [vmem:[%s7568_s1 + $0x38] sm:$0xff]  ;;  %3651 = vperm.xlu2 %4359, %v131_v19  }
  0xa4   :  { %636 = vmatmul.f32.gmra.mxu2 %v5290_v24  ;;  %748 = vmatmul.f32.gmra.mxu3 %v5266_v25  ;;  %v1571_v24 = vsel %vm147_vm0, %v72_v2, 0  ;;  %v71_v2 = vld [vmem:[%s7568_s1 + $0x30] sm:$0xff] }
  0xa5   :  { %1799 = vmatpush.xpose.msra.mxu3 %v1798_v42  ;;  %v1803_v42 = vsub.f32 %v5621_v62, %v7698_v34  ;;  %v5641_v25 = vand.u32 4294901760, %v1571_v24 }
  0xa6   :  { %2061 = vmatpush.xpose.msra.mxu1 %v5581_v22  ;;  %1077 = vperm.xlu0 %4357, %v118_v49   ;;  %v1568_v49 = vsel %vm147_vm0, %v71_v2, 0  ;;  %v70_v2 = vld [vmem:[%s7568_s1 + $0x28] sm:$0xff] }
  0xa7   :  { %998 = vmatmul.f32.gmra.mxu1 %v5224_v41  ;;  %v1804_v41 = vand.u32 4294901760, %v1803_v42  ;;  %1614 = vmatpush.xpose.msra.mxu2 %v5641_v25  ;;  %v5648_v29 = vsub.f32 %v1571_v24, %v5641_v25  ;;  %v116_v24 = vld [vmem:[%s7569_s4 + $0x18] sm:$0xff] }
  0xa8   :  { %905 = vmatmul.f32.gmra.mxu0 %v5268_v11 }
  0xa9   :  { %1805 = vmatpush.xpose.msra.mxu3 %v1804_v41  ;;  %v7700_v34 = vand.u32 4294901760, %v5648_v29  ;;  %1945 = vmatpush.xpose.msra.mxu0 %v5648_v29  ;;  %v134_v41 = vld [vmem:[%s7570_s6 + $0x20] sm:$0xff] }
  0xaa   :  { %2063 = vmatpush.xpose.msra.mxu1 %v5608_v45  ;;  %3666 = vperm.xlu1 %4358, %v134_v41   ;;  %v135_v41 = vld [vmem:[%s7570_s6 + $0x28] sm:$0xff] }
  0xab   :  { %v1809_v19 = vsub.f32 %v5648_v29, %v7700_v34  ;;  %1067 = vperm.xlu2 %4359, %v116_v24   ;;  %v120_v24 = vld [vmem:[%s7569_s4 + $0x38] sm:$0xff] }
  0xac   :  { %641 = vmatmul.f32.gmra.mxu2 %v5334_v39  ;;  %754 = vmatmul.f32.gmra.mxu3 %v5310_v36  ;;  %v5667_v39 = vand.u32 4294901760, %v1568_v49 }
  0xad   :  { %v1810_v42 = vand.u32 4294901760, %v1809_v19 }
  0xae   :  { %2065 = vmatpush.xpose.msra.mxu1 %v5641_v25  ;;  %v5672_v34 = vsub.f32 %v1568_v49, %v5667_v39  ;;  %1616 = vmatpush.xpose.msra.mxu2 %v5667_v39  ;;  %v1565_v49 = vsel %vm147_vm0, %v70_v2, 0  ;;  %v69_v2 = vld [vmem:[%s7568_s1 + $0x20] sm:$0xff] }
  0xaf   :  { %1002 = vmatmul.f32.gmra.mxu1 %v5268_v11  ;;  %1811 = vmatpush.xpose.msra.mxu3 %v1810_v42 }
  0xb0   :  { %909 = vmatmul.f32.gmra.mxu0 %v5312_v55  ;;  %v7703_v36 = vand.u32 4294901760, %v5672_v34  ;;  %3671 = vperm.xlu0 %4357, %v135_v41   ;;  %v121_v41 = vld [vmem:[%s7569_s4 + $0x40] sm:$0xff] }
  0xb1   :  { %1948 = vmatpush.xpose.msra.mxu0 %v5672_v34 }
  0xb2   :  { %2067 = vmatpush.xpose.msra.mxu1 %v5667_v39  ;;  %v1815_v19 = vsub.f32 %v5672_v34, %v7703_v36  ;;  %1087 = vperm.xlu1 %4358, %v120_v24   ;;  %v133_v24 = vld [vmem:[%s7570_s6 + $0x18] sm:$0xff] }
  0xb3   :  { %3661 = vperm.xlu2 %4359, %v133_v24   ;;  %v68_v24 = vld [vmem:[%s7568_s1 + $0x18] sm:$0xff] }
  0xb4   :  { %646 = vmatmul.f32.gmra.mxu2 %v5378_v61  ;;  %760 = vmatmul.f32.gmra.mxu3 %v5354_v54  ;;  %v1816_v42 = vand.u32 4294901760, %v1815_v19  ;;  %v5693_v61 = vand.u32 4294901760, %v1565_v49 }
  0xb6   :  { %v5698_v36 = vsub.f32 %v1565_v49, %v5693_v61  ;;  %1817 = vmatpush.xpose.msra.mxu3 %v1816_v42  ;;  %1618 = vmatpush.xpose.msra.mxu2 %v5693_v61  ;;  %v1562_v49 = vsel %vm147_vm0, %v69_v2, 0 }
  0xb7   :  { %1006 = vmatmul.f32.gmra.mxu1 %v5312_v55 }
  0xb8   :  { %913 = vmatmul.f32.gmra.mxu0 %v5356_v48  ;;  %v7706_v54 = vand.u32 4294901760, %v5698_v36  ;;  %2069 = vmatpush.xpose.msra.mxu1 %v5693_v61 }
  0xb9   :  { %1951 = vmatpush.xpose.msra.mxu0 %v5698_v36  ;;  %1092 = vperm.xlu0 %4357, %v121_v41   ;;  %v119_v41 = vld [vmem:[%s7569_s4 + $0x30] sm:$0xff] }
  0xba   :  { %v1821_v19 = vsub.f32 %v5698_v36, %v7706_v54  ;;  %v7936_v54 = vld [vmem:[#allocation57_spill] sm:$0xff] }
  0xbb   :  { %1082 = vperm.xlu2 %4359, %v119_v41  }
  0xbc   :  { %651 = vmatmul.f32.gmra.mxu2 %v5424_v50  ;;  %766 = vmatmul.f32.gmra.mxu3 %v5395_v12  ;;  %v1822_v42 = vand.u32 4294901760, %v1821_v19  ;;  %v5719_v50 = vand.u32 4294901760, %v1562_v49 }
  0xbe   :  { %1823 = vmatpush.xpose.msra.mxu3 %v1822_v42  ;;  %1620 = vmatpush.xpose.msra.mxu2 %v5719_v50  ;;  %v1559_v42 = vsel %vm147_vm0, %v68_v24, 0 }
  0xbf   :  { %1010 = vmatmul.f32.gmra.mxu1 %v5356_v48  ;;  %v5726_v48 = vsub.f32 %v1562_v49, %v5719_v50  ;;  %v137_v49 = vld [vmem:[%s7570_s6 + $0x38] sm:$0xff] }
  0xc0   :  { %917 = vmatmul.f32.gmra.mxu0 %v5404_v52  ;;  %2071 = vmatpush.xpose.msra.mxu1 %v5719_v50 }
  0xc1   :  { %v7713_v55 = vand.u32 4294901760, %v5726_v48  ;;  %1954 = vmatpush.xpose.msra.mxu0 %v5726_v48  ;;  %3681 = vperm.xlu1 %4358, %v137_v49  }
  0xc3   :  { %v1827_v2 = vsub.f32 %v5726_v48, %v7713_v55  ;;  %v7938_v55 = vld [vmem:[#allocation62_spill] sm:$0xff] }
  0xc4   :  { %656 = vmatmul.f32.gmra.mxu2 %v7936_v54  ;;  %772 = vmatmul.f32.gmra.mxu3 %v5442_v23  ;;  %v5723_v12 = vpop.f32.mrf.mxu0  ;;  %v5747_v23 = vand.u32 4294901760, %v1559_v42 }
  0xc5   :  { %v1828_v54 = vand.u32 4294901760, %v1827_v2 }
  0xc6   :  { %7937 = vst [vmem:[#allocation67_spill] sm:$0xff] %v5747_v23  ;;  %v5756_v38 = vsub.f32 %v1559_v42, %v5747_v23  ;;  %1622 = vmatpush.xpose.msra.mxu2 %v5747_v23  ;;  %2073 = vmatpush.xpose.msra.mxu1 %v5747_v23  ;;  %v67_v42 = vld [vmem:[%s7568_s1 + $0x10] sm:$0xff] }
  0xc7   :  { %v346_v19 = vpop.f32.mrf.mxu2  ;;  %1014 = vmatmul.f32.gmra.mxu1 %v5404_v52  ;;  %1829 = vmatpush.xpose.msra.mxu3 %v1828_v54 }
  0xc8   :  { %921 = vmatmul.f32.gmra.mxu0 %v5055_v5  ;;  %v7722_v24 = vand.u32 4294901760, %v5756_v38 }
  0xc9   :  { %1957 = vmatpush.xpose.msra.mxu0 %v5756_v38 }
  0xca   :  { %v1833_v54 = vsub.f32 %v5756_v38, %v7722_v24 }
  0xcc   :  { %661 = vmatmul.f32.gmra.mxu2 %v5132_v27  ;;  %778 = vmatmul.f32.gmra.mxu3 %v7938_v55  ;;  %v5751_v52 = vpop.f32.mrf.mxu1  ;;  %v5753_v11 = vpop.f32.mrf.mxu0  ;;  %v123_v27 = vld [vmem:[%s7569_s4 + $0x50] sm:$0xff]  ;;  %v138_v55 = vld [vmem:[%s7570_s6 + $0x40] sm:$0xff] }
  0xcd   :  { %1102 = vperm.xlu1 %4358, %v123_v27   ;;  %3686 = vperm.xlu0 %4357, %v138_v55  }
  0xcf   :  { %v354_v2 = vpop.f32.mrf.mxu2  ;;  %v535_v41 = vpop.f32.mrf.mxu3  ;;  %1018 = vmatmul.f32.gmra.mxu1 %v5055_v5 }
  0xd0   :  { %v5763_v49 = vadd.f32 %v535_v41, %v346_v19  ;;  %925 = vmatmul.f32.gmra.mxu0 %v5104_v51  ;;  %v1556_v19 = vsel %vm147_vm0, %v67_v42, 0  ;;  %v1834_v41 = vand.u32 4294901760, %v1833_v54 }
  0xd1   :  { %v5779_v5 = vand.u32 4294901760, %v1556_v19 }
  0xd2   :  { %7939 = vst [vmem:[#allocation118_spill] sm:$0xff] %v5763_v49  ;;  %1835 = vmatpush.xpose.msra.mxu3 %v1834_v41  ;;  %v66_v41 = vld [vmem:[%s7568_s1 + $0x8] sm:$0xff] }
  0xd3   :  { %7940 = vst [vmem:[#allocation119_spill] sm:$0xff] %v5779_v5  ;;  %v5788_v23 = vsub.f32 %v1556_v19, %v5779_v5  ;;  %1624 = vmatpush.xpose.msra.mxu2 %v5779_v5  ;;  %2075 = vmatpush.xpose.msra.mxu1 %v5779_v5 }
  0xd4   :  { %666 = vmatmul.f32.gmra.mxu2 %v5185_v40  ;;  %784 = vmatmul.f32.gmra.mxu3 %v5157_v44  ;;  %v5783_v24 = vpop.f32.mrf.mxu1  ;;  %v5785_v49 = vpop.f32.mrf.mxu0  ;;  %v136_v40 = vld [vmem:[%s7570_s6 + $0x30] sm:$0xff]  ;;  %v124_v44 = vld [vmem:[%s7569_s4 + $0x58] sm:$0xff] }
  0xd5   :  { %v7728_v27 = vand.u32 4294901760, %v5788_v23  ;;  %1960 = vmatpush.xpose.msra.mxu0 %v5788_v23  ;;  %3676 = vperm.xlu2 %4359, %v136_v40  }
  0xd6   :  { %1107 = vperm.xlu0 %4357, %v124_v44   ;;  %v65_v44 = vld [vmem:[%s7568_s1] sm:$0xff] }
  0xd7   :  { %v362_v55 = vpop.f32.mrf.mxu2  ;;  %v539_v54 = vpop.f32.mrf.mxu3  ;;  %1022 = vmatmul.f32.gmra.mxu1 %v5104_v51  ;;  %v1839_v19 = vsub.f32 %v5788_v23, %v7728_v27 }
  0xd8   :  { %v5795_v42 = vadd.f32 %v539_v54, %v354_v2  ;;  %929 = vmatmul.f32.gmra.mxu0 %v5159_v1  ;;  %v1553_v2 = vsel %vm147_vm0, %v66_v41, 0 }
  0xd9   :  { %v1840_v54 = vand.u32 4294901760, %v1839_v19  ;;  %v5811_v51 = vand.u32 4294901760, %v1553_v2  ;;  %v1550_v19 = vsel %vm147_vm0, %v65_v44, 0  ;;  %v122_v44 = vld [vmem:[%s7569_s4 + $0x48] sm:$0xff] }
  0xda   :  { %7941 = vst [vmem:[#allocation120_spill] sm:$0xff] %v5795_v42 }
  0xdb   :  { %7942 = vst [vmem:[#allocation121_spill] sm:$0xff] %v5811_v51  ;;  %v5820_v5 = vsub.f32 %v1553_v2, %v5811_v51  ;;  %1841 = vmatpush.xpose.msra.mxu3 %v1840_v54  ;;  %1626 = vmatpush.xpose.msra.mxu2 %v5811_v51  ;;  %v5831_v2 = vand.u32 4294901760, %v1550_v19 }
  0xdc   :  { %671 = vmatmul.f32.gmra.mxu2 %v5231_v16  ;;  %790 = vmatmul.f32.gmra.mxu3 %v5206_v30  ;;  %v5815_v27 = vpop.f32.mrf.mxu1  ;;  %v5817_v42 = vpop.f32.mrf.mxu0 }
  0xdd   :  { %v7735_v40 = vand.u32 4294901760, %v5820_v5  ;;  %1963 = vmatpush.xpose.msra.mxu0 %v5820_v5  ;;  %2077 = vmatpush.xpose.msra.mxu1 %v5811_v51  ;;  %7943 = vst [vmem:[#allocation122_spill] sm:$0xff] %v5831_v2  ;;  %v140_v51 = vld [vmem:[%s7570_s6 + $0x50] sm:$0xff] }
  0xde   :  { %1097 = vperm.xlu2 %4359, %v122_v44   ;;  %3696 = vperm.xlu1 %4358, %v140_v51  }
  0xdf   :  { %v370_v41 = vpop.f32.mrf.mxu2  ;;  %v543_v16 = vpop.f32.mrf.mxu3  ;;  %1026 = vmatmul.f32.gmra.mxu1 %v5159_v1  ;;  %v1845_v30 = vsub.f32 %v5820_v5, %v7735_v40  ;;  %1628 = vmatpush.xpose.msra.mxu2 %v5831_v2  ;;  %v7945_v1 = vand.u32 4294901760, %v5455_v3  ;;  %v7946_v3 = vld [vmem:[#allocation3_spill] sm:$0xff] }
  0xe0   :  { %v5833_v54 = vadd.f32 %v543_v16, %v362_v55  ;;  %933 = vmatmul.f32.gmra.mxu0 %v5209_v18  ;;  %v5847_v16 = vsub.f32 %v1550_v19, %v5831_v2 }
  0xe1   :  { %v1846_v55 = vand.u32 4294901760, %v1845_v30  ;;  %2079 = vmatpush.xpose.msra.mxu1 %v5831_v2  ;;  %v7948_v30 = vld [vmem:[#allocation15_spill] sm:$0xff] }
  0xe2   :  { %7944 = vst [vmem:[#allocation123_spill] sm:$0xff] %v5833_v54  ;;  %v7739_v40 = vand.u32 4294901760, %v5847_v16  ;;  %1966 = vmatpush.xpose.msra.mxu0 %v5847_v16 }
  0xe3   :  { %2180 = vmatpush.xpose.msrb.mxu2 %v7945_v1  ;;  %1847 = vmatpush.xpose.msra.mxu3 %v1846_v55  ;;  %v7947_v1 = vand.u32 4294901760, %v5470_v47  ;;  %v126_v55 = vld [vmem:[%s7569_s4 + $0x68] sm:$0xff]  ;;  %v141_v47 = vld [vmem:[%s7570_s6 + $0x58] sm:$0xff] }
  0xe4   :  { %676 = vmatmul.f32.gmra.mxu2 %v5275_v32  ;;  %796 = vmatmul.f32.gmra.mxu3 %v5251_v13  ;;  %v5856_v54 = vpop.f32.mrf.mxu1  ;;  %v5858_v44 = vpop.f32.mrf.mxu0  ;;  %v1851_v51 = vsub.f32 %v5847_v16, %v7739_v40  ;;  %v7958_v40 = vand.u32 4294901760, %v5569_v63  ;;  %v7961_v63 = vand.u32 4294901760, %v5594_v15  ;;  %v7964_v15 = vld [vmem:[#allocation19_spill] sm:$0xff] }
  0xe5   :  { %3004 = vmatpush.xpose.msrb.mxu1 %v7948_v30  ;;  %3701 = vperm.xlu0 %4357, %v141_v47   ;;  %v7951_v30 = vld [vmem:[#allocation16_spill] sm:$0xff]  ;;  %v7953_v47 = vld [vmem:[#allocation5_spill] sm:$0xff] }
  0xe6   :  { %2839 = vmatpush.xpose.msrb.mxu0 %v7946_v3  ;;  %v1852_v13 = vand.u32 4294901760, %v1851_v51  ;;  %1117 = vperm.xlu1 %4358, %v126_v55  }
  0xe7   :  { %2184 = vmatpush.xpose.msrb.mxu2 %v7947_v1  ;;  %v378_v19 = vpop.f32.mrf.mxu2  ;;  %v547_v32 = vpop.f32.mrf.mxu3  ;;  %1030 = vmatmul.f32.gmra.mxu1 %v5209_v18  ;;  %v7949_v1 = vand.u32 4294901760, %v5493_v31  ;;  %v7952_v31 = vand.u32 4294901760, %v5513_v53 }
  0xe8   :  { %v5868_v2 = vadd.f32 %v547_v32, %v370_v41  ;;  %937 = vmatmul.f32.gmra.mxu0 %v5253_v58  ;;  %1853 = vmatpush.xpose.msra.mxu3 %v1852_v13  ;;  %v7950_v32 = vld [vmem:[#allocation4_spill] sm:$0xff] }
  0xe9   :  { %3010 = vmatpush.xpose.msrb.mxu1 %v7951_v30  ;;  %v139_v30 = vld [vmem:[%s7570_s6 + $0x48] sm:$0xff] }
  0xea   :  { %2841 = vmatpush.xpose.msrb.mxu0 %v7950_v32  ;;  %3691 = vperm.xlu2 %4359, %v139_v30  }
  0xeb   :  { %2188 = vmatpush.xpose.msrb.mxu2 %v7949_v1  ;;  %v7954_v1 = vld [vmem:[#allocation21_spill] sm:$0xff] }
  0xec   :  { %2307 = vmatpush.xpose.msrb.mxu3 %v5435_v33  ;;  %681 = vmatmul.f32.gmra.mxu2 %v5319_v43  ;;  %v5883_v41 = vpop.f32.mrf.mxu1  ;;  %v5885_v51 = vpop.f32.mrf.mxu0 }
  0xed   :  { %802 = vmatmul.f32.gmra.mxu3 %v5295_v14  ;;  %3016 = vmatpush.xpose.msrb.mxu1 %v7954_v1  ;;  %v7957_v1 = vld [vmem:[#allocation25_spill] sm:$0xff] }
  0xee   :  { %2843 = vmatpush.xpose.msrb.mxu0 %v7953_v47 }
  0xef   :  { %v386_v13 = vpop.f32.mrf.mxu2  ;;  %v551_v55 = vpop.f32.mrf.mxu3  ;;  %1034 = vmatmul.f32.gmra.mxu1 %v5253_v58  ;;  %2192 = vmatpush.xpose.msrb.mxu2 %v7952_v31  ;;  %v7956_v31 = vld [vmem:[#allocation6_spill] sm:$0xff] }
  0xf0   :  { %2309 = vmatpush.xpose.msrb.mxu3 %v5457_v26  ;;  %v5892_v33 = vadd.f32 %v551_v55, %v378_v19  ;;  %941 = vmatmul.f32.gmra.mxu0 %v5297_v10  ;;  %v127_v26 = vld [vmem:[%s7569_s4 + $0x70] sm:$0xff]  ;;  %v7955_v55 = vand.u32 4294901760, %v5543_v7  ;;  %v7960_v7 = vld [vmem:[#allocation28_spill] sm:$0xff] }
  0xf1   :  { %1122 = vperm.xlu0 %4357, %v127_v26   ;;  %3022 = vmatpush.xpose.msrb.mxu1 %v7957_v1 }
  0xf2   :  { %2845 = vmatpush.xpose.msrb.mxu0 %v7956_v31 }
  0xf3   :  { %2196 = vmatpush.xpose.msrb.mxu2 %v7955_v55 }
  0xf4   :  { %2311 = vmatpush.xpose.msrb.mxu3 %v5472_v35  ;;  %686 = vmatmul.f32.gmra.mxu2 %v5363_v60  ;;  %v5906_v53 = vpop.f32.mrf.mxu1  ;;  %v5908_v19 = vpop.f32.mrf.mxu0  ;;  %v7959_v60 = vld [vmem:[#allocation12_spill] sm:$0xff] }
  0xf5   :  { %808 = vmatmul.f32.gmra.mxu3 %v5339_v8  ;;  %3028 = vmatpush.xpose.msrb.mxu1 %v7960_v7  ;;  %v7963_v7 = vand.u32 4294901760, %v5621_v62  ;;  %v504_v62 = vadd.f32 %v5751_v52, %v5723_v12  ;;  %v7973_v12 = vld [vmem:[#allocation27_spill] sm:$0xff]  ;;  %v7974_v52 = vld [vmem:[#allocation82_spill] sm:$0xff] }
  0xf6   :  { %2847 = vmatpush.xpose.msrb.mxu0 %v7959_v60 }
  0xf7   :  { %v394_v35 = vpop.f32.mrf.mxu2  ;;  %v555_v30 = vpop.f32.mrf.mxu3  ;;  %1038 = vmatmul.f32.gmra.mxu1 %v5297_v10  ;;  %2200 = vmatpush.xpose.msrb.mxu2 %v7958_v40 }
  0xf8   :  { %2313 = vmatpush.xpose.msrb.mxu3 %v5496_v56  ;;  %v5916_v26 = vadd.f32 %v555_v30, %v386_v13  ;;  %945 = vmatmul.f32.gmra.mxu0 %v5341_v20  ;;  %v125_v13 = vld [vmem:[%s7569_s4 + $0x60] sm:$0xff]  ;;  %v7962_v30 = vld [vmem:[#allocation32_spill] sm:$0xff] }
  0xf9   :  { %1112 = vperm.xlu2 %4359, %v125_v13   ;;  %3034 = vmatpush.xpose.msrb.mxu1 %v7962_v30  ;;  %v7965_v13 = vld [vmem:[#allocation112_spill] sm:$0xff]  ;;  %v7969_v30 = vld [vmem:[#allocation23_spill] sm:$0xff] }
  0xfa   :  { %2849 = vmatpush.xpose.msrb.mxu0 %v4863_v28 }
  0xfb   :  { %2204 = vmatpush.xpose.msrb.mxu2 %v7961_v63 }
  0xfc   :  { %2315 = vmatpush.xpose.msrb.mxu3 %v5529_v46  ;;  %691 = vmatmul.f32.gmra.mxu2 %v5402_v17  ;;  %v5926_v56 = vpop.f32.mrf.mxu1  ;;  %v5928_v55 = vpop.f32.mrf.mxu0 }
  0xfd   :  { %814 = vmatmul.f32.gmra.mxu3 %v5383_v9  ;;  %v7970_v9 = vld [vmem:[#allocation61_spill] sm:$0xff] }
  0xfe   :  { %2851 = vmatpush.xpose.msrb.mxu0 %v7964_v15 }
  0xff   :  { %v402_v46 = vpop.f32.mrf.mxu2  ;;  %v559_v40 = vpop.f32.mrf.mxu3  ;;  %1042 = vmatmul.f32.gmra.mxu1 %v5341_v20  ;;  %2208 = vmatpush.xpose.msrb.mxu2 %v7963_v7 }
 0x100   :  { %2317 = vmatpush.xpose.msrb.mxu3 %v5561_v6  ;;  %v5938_v1 = vadd.f32 %v559_v40, %v394_v35  ;;  %949 = vmatmul.f32.gmra.mxu0 %v5385_v4  ;;  %v7966_v6 = vld [vmem:[#allocation75_spill] sm:$0xff]  ;;  %v7967_v35 = vld [vmem:[#allocation36_spill] sm:$0xff]  ;;  %v7968_v40 = vand.u32 4294901760, %v5648_v29  ;;  %v7972_v29 = vand.u32 4294901760, %v5672_v34 }
 0x101   :  { %3040 = vmatpush.xpose.msrb.mxu1 %v7967_v35  ;;  %v7971_v35 = vld [vmem:[#allocation41_spill] sm:$0xff]  ;;  %v7977_v34 = vld [vmem:[#allocation31_spill] sm:$0xff] }
 0x102   :  { %2853 = vmatpush.xpose.msrb.mxu0 %v7969_v30 }
 0x103   :  { %2212 = vmatpush.xpose.msrb.mxu2 %v7968_v40 }
 0x104   :  { %2319 = vmatpush.xpose.msrb.mxu3 %v5581_v22  ;;  %1634 = vmatmul.f32.vlgmr.msra.gmra.mxu2 %v7966_v6  ;;  %v5948_v63 = vpop.f32.mrf.mxu1  ;;  %v890_v17 = vpop.f32.mrf.mxu0 }
 0x105   :  { %820 = vmatmul.f32.gmra.mxu3 %v7965_v13  ;;  %3046 = vmatpush.xpose.msrb.mxu1 %v7971_v35 }
 0x106   :  { %2855 = vmatpush.xpose.msrb.mxu0 %v7973_v12 }
 0x107   :  { %v563_v22 = vpop.f32.mrf.mxu3  ;;  %v617_v7 = vpop.f32.mrf.mxu2  ;;  %1046 = vmatmul.f32.gmra.mxu1 %v5385_v4  ;;  %2216 = vmatpush.xpose.msrb.mxu2 %v7972_v29 }
 0x108   :  { %2321 = vmatpush.xpose.msrb.mxu3 %v5608_v45  ;;  %v5958_v6 = vadd.f32 %v563_v22, %v402_v46  ;;  %v618_v13 = vadd.f32 %v617_v7, %v504_v62  ;;  %1969 = vmatmul.f32.vlgmr.msra.gmra.mxu0 %v7970_v9  ;;  %v7975_v46 = vld [vmem:[#allocation45_spill] sm:$0xff]  ;;  %v7976_v62 = vand.u32 4294901760, %v5698_v36  ;;  %v508_v9 = vadd.f32 %v5783_v24, %v5753_v11 }
 0x109   :  { %3052 = vmatpush.xpose.msrb.mxu1 %v7975_v46  ;;  %v7978_v36 = vld [vmem:[#allocation49_spill] sm:$0xff]  ;;  %v7979_v11 = vand.u32 4294901760, %v5726_v48  ;;  %v7984_v48 = vld [vmem:[#allocation39_spill] sm:$0xff] }
 0x10a   :  { %2857 = vmatpush.xpose.msrb.mxu0 %v7977_v34  ;;  %v7981_v46 = vld [vmem:[#allocation89_spill] sm:$0xff] }
 0x10b   :  { %2220 = vmatpush.xpose.msrb.mxu2 %v7976_v62  ;;  %v7982_v62 = vld [vmem:[#allocation53_spill] sm:$0xff] }
 0x10c   :  { %2323 = vmatpush.xpose.msrb.mxu3 %v5641_v25  ;;  %1642 = vmatmul.f32.gmra.mxu2 %v7974_v52  ;;  %v987_v45 = vpop.f32.mrf.mxu1  ;;  %v894_v40 = vpop.f32.mrf.mxu0  ;;  %v142_v25 = vld [vmem:[%s7570_s6 + $0x60] sm:$0xff] }
 0x10d   :  { %1855 = vmatmul.f32.vlgmr.msra.gmra.mxu3 %v5073_v57  ;;  %3706 = vperm.xlu2 %4359, %v142_v25  }
 0x10e   :  { %3058 = vmatpush.xpose.msrb.mxu1 %v7978_v36  ;;  %v7990_v36 = vld [vmem:[#allocation95_spill] sm:$0xff] }
 0x10f   :  { %v622_v22 = vpop.f32.mrf.mxu2  ;;  %v731_v7 = vpop.f32.mrf.mxu3  ;;  %2083 = vmatmul.f32.vlgmr.msra.gmra.mxu1 %v7935_v21  ;;  %2224 = vmatpush.xpose.msrb.mxu2 %v7979_v11  ;;  %v7991_v11 = vld [vmem:[#allocation76_spill] sm:$0xff] }
 0x110   :  { %2325 = vmatpush.xpose.msrb.mxu3 %v5667_v39  ;;  %v623_v35 = vadd.f32 %v622_v22, %v508_v9  ;;  %v732_v29 = vadd.f32 %v731_v7, %v618_v13  ;;  %1974 = vmatmul.f32.gmra.mxu0 %v5152_v0  ;;  %v7980_v39 = vld [vmem:[#allocation35_spill] sm:$0xff]  ;;  %v7983_v0 = vand.u32 4294901760, %v5756_v38  ;;  %v7986_v7 = vld [vmem:[#allocation56_spill] sm:$0xff] }
 0x111   :  { %2859 = vmatpush.xpose.msrb.mxu0 %v7980_v39  ;;  %v7985_v38 = vld [vmem:[#allocation79_spill] sm:$0xff] }
 0x112   :  { %v891_v24 = vadd.f32 %v890_v17, %v732_v29  ;;  %3064 = vmatpush.xpose.msrb.mxu1 %v7982_v62  ;;  %v512_v17 = vadd.f32 %v5815_v27, %v5785_v49  ;;  %v7987_v49 = vand.u32 4294901760, %v5788_v23  ;;  %v7988_v29 = vld [vmem:[#allocation67_spill] sm:$0xff]  ;;  %v7993_v62 = vand.u32 4294901760, %v5820_v5 }
 0x113   :  { %2228 = vmatpush.xpose.msrb.mxu2 %v7983_v0  ;;  %v516_v23 = vadd.f32 %v5856_v54, %v5817_v42  ;;  %v7995_v0 = vld [vmem:[#allocation50_spill] sm:$0xff]  ;;  %v7999_v5 = vand.u32 4294901760, %v5847_v16  ;;  %v8002_v54 = vld [vmem:[#allocation7_spill] sm:$0xff]  ;;  %v520_v16 = vadd.f32 %v5883_v41, %v5858_v44 }
 0x114   :  { %2327 = vmatpush.xpose.msrb.mxu3 %v5693_v61  ;;  %v5985_v52 = vadd.f32 %v987_v45, %v891_v24  ;;  %1650 = vmatmul.f32.gmra.mxu2 %v7981_v46  ;;  %v991_v21 = vpop.f32.mrf.mxu1  ;;  %v128_v61 = vld [vmem:[%s7569_s4 + $0x78] sm:$0xff]  ;;  %v7992_v46 = vld [vmem:[#allocation64_spill] sm:$0xff]  ;;  %v8013_v41 = vld [vmem:[#allocation107_spill] sm:$0xff] }
 0x115   :  { %1859 = vmatmul.f32.gmra.mxu3 %v5127_v37  ;;  %v898_v13 = vpop.f32.mrf.mxu0  ;;  %2861 = vmatpush.xpose.msrb.mxu0 %v7984_v48  ;;  %v8001_v42 = vld [vmem:[#allocation54_spill] sm:$0xff] }
 0x116   :  { %1127 = vperm.xlu2 %4359, %v128_v61   ;;  %3070 = vmatpush.xpose.msrb.mxu1 %v7986_v7 }
 0x117   :  { %v627_v45 = vpop.f32.mrf.mxu2  ;;  %v737_v9 = vpop.f32.mrf.mxu3  ;;  %2089 = vmatmul.f32.gmra.mxu1 %v5177_v59  ;;  %2232 = vmatpush.xpose.msrb.mxu2 %v7987_v49  ;;  %v8000_v49 = vld [vmem:[#allocation121_spill] sm:$0xff] }
 0x118   :  { %2329 = vmatpush.xpose.msrb.mxu3 %v5719_v50  ;;  %v628_v25 = vadd.f32 %v627_v45, %v512_v17  ;;  %v738_v22 = vadd.f32 %v737_v9, %v623_v35  ;;  %1979 = vmatmul.f32.gmra.mxu0 %v7985_v38  ;;  %v7989_v50 = vld [vmem:[#allocation43_spill] sm:$0xff]  ;;  %v7998_v38 = vld [vmem:[#allocation69_spill] sm:$0xff] }
 0x119   :  { %2863 = vmatpush.xpose.msrb.mxu0 %v7989_v50  ;;  %v7996_v45 = vld [vmem:[#allocation83_spill] sm:$0xff] }
 0x11a   :  { %v895_v27 = vadd.f32 %v894_v40, %v738_v22  ;;  %3076 = vmatpush.xpose.msrb.mxu1 %v7992_v46  ;;  %v7994_v40 = vld [vmem:[#allocation119_spill] sm:$0xff]  ;;  %v7997_v22 = vld [vmem:[#allocation86_spill] sm:$0xff] }
 0x11b   :  { %2236 = vmatpush.xpose.msrb.mxu2 %v7993_v62  ;;  %v8005_v62 = vld [vmem:[#allocation74_spill] sm:$0xff] }
 0x11c   :  { %2331 = vmatpush.xpose.msrb.mxu3 %v7988_v29  ;;  %1658 = vmatmul.f32.gmra.mxu2 %v7990_v36  ;;  %v995_v59 = vpop.f32.mrf.mxu1  ;;  %v6008_v24 = vadd.f32 %v991_v21, %v895_v27  ;;  %v8003_v29 = vld [vmem:[#allocation100_spill] sm:$0xff] }
 0x11d   :  { %1863 = vmatmul.f32.gmra.mxu3 %v7991_v11  ;;  %v902_v35 = vpop.f32.mrf.mxu0  ;;  %2865 = vmatpush.xpose.msrb.mxu0 %v7995_v0  ;;  %v8004_v36 = vld [vmem:[#allocation84_spill] sm:$0xff] }
 0x11e   :  { %3082 = vmatpush.xpose.msrb.mxu1 %v7998_v38  ;;  %v8011_v38 = vld [vmem:[#allocation78_spill] sm:$0xff] }
 0x11f   :  { %v632_v17 = vpop.f32.mrf.mxu2  ;;  %v743_v61 = vpop.f32.mrf.mxu3  ;;  %2095 = vmatmul.f32.gmra.mxu1 %v7996_v45  ;;  %2240 = vmatpush.xpose.msrb.mxu2 %v7999_v5  ;;  %v8009_v45 = vld [vmem:[#allocation93_spill] sm:$0xff]  ;;  %v8012_v5 = vld [vmem:[#allocation10_spill] sm:$0xff] }
 0x120   :  { %2333 = vmatpush.xpose.msrb.mxu3 %v7994_v40  ;;  %v633_v9 = vadd.f32 %v632_v17, %v516_v23  ;;  %v744_v21 = vadd.f32 %v743_v61, %v628_v25  ;;  %1984 = vmatmul.f32.gmra.mxu0 %v7997_v22  ;;  %v8007_v23 = vld [vmem:[#allocation58_spill] sm:$0xff] }
 0x121   :  { %2867 = vmatpush.xpose.msrb.mxu0 %v8001_v42  ;;  %v8008_v61 = vld [vmem:[#allocation90_spill] sm:$0xff] }
 0x122   :  { %v899_v7 = vadd.f32 %v898_v13, %v744_v21  ;;  %3088 = vmatpush.xpose.msrb.mxu1 %v8005_v62  ;;  %v8006_v13 = vld [vmem:[#allocation122_spill] sm:$0xff]  ;;  %v8010_v21 = vld [vmem:[#allocation8_spill] sm:$0xff]  ;;  %v8015_v62 = vld [vmem:[#allocation9_spill] sm:$0xff] }
 0x123   :  { %3162 = vmatpush.xpose.msra.mxu2 %v8002_v54 }
 0x124   :  { %2335 = vmatpush.xpose.msrb.mxu3 %v8000_v49  ;;  %v6025_v27 = vadd.f32 %v995_v59, %v899_v7  ;;  %1666 = vmatmul.f32.gmra.mxu2 %v8003_v29  ;;  %v999_v25 = vpop.f32.mrf.mxu1  ;;  %v8014_v7 = vld [vmem:[#allocation91_spill] sm:$0xff] }
 0x125   :  { %1867 = vmatmul.f32.gmra.mxu3 %v8004_v36  ;;  %v906_v46 = vpop.f32.mrf.mxu0  ;;  %2869 = vmatpush.xpose.msrb.mxu0 %v8007_v23 }
 0x126   :  { %3094 = vmatpush.xpose.msrb.mxu1 %v8011_v38  ;;  %v8023_v38 = vld [vmem:[#allocation18_spill] sm:$0xff] }
 0x127   :  { %v637_v40 = vpop.f32.mrf.mxu2  ;;  %v749_v17 = vpop.f32.mrf.mxu3  ;;  %2101 = vmatmul.f32.gmra.mxu1 %v8008_v61  ;;  %3165 = vmatpush.xpose.msra.mxu2 %v8010_v21  ;;  %v8020_v61 = vld [vmem:[#allocation13_spill] sm:$0xff] }
 0x128   :  { %2337 = vmatpush.xpose.msrb.mxu3 %v8006_v13  ;;  %v638_v59 = vadd.f32 %v637_v40, %v520_v16  ;;  %1989 = vmatmul.f32.gmra.mxu0 %v8009_v45  ;;  %v750_v22 = vadd.f32 %v749_v17, %v633_v9  ;;  %v8016_v9 = vld [vmem:[#allocation11_spill] sm:$0xff]  ;;  %v8017_v13 = vld [vmem:[#allocation96_spill] sm:$0xff]  ;;  %v8018_v40 = vld [vmem:[#allocation98_spill] sm:$0xff] }
 0x129   :  { %3421 = vmatpush.xpose.msra.mxu0 %v8012_v5  ;;  %v8019_v17 = vld [vmem:[#allocation14_spill] sm:$0xff]  ;;  %v8024_v5 = vld [vmem:[#allocation17_spill] sm:$0xff] }
 0x12a   :  { %3548 = vmatpush.xpose.msra.mxu1 %v7946_v3  ;;  %v903_v44 = vadd.f32 %v902_v35, %v750_v22 }
 0x12b   :  { %3168 = vmatpush.xpose.msra.mxu2 %v8015_v62  ;;  %v8026_v62 = vld [vmem:[#allocation104_spill] sm:$0xff] }
 0x12c   :  { %3290 = vmatpush.xpose.msra.mxu3 %v7946_v3  ;;  %1674 = vmatmul.f32.gmra.mxu2 %v8013_v41  ;;  %v1003_v49 = vpop.f32.mrf.mxu1  ;;  %v6044_v54 = vadd.f32 %v999_v25, %v903_v44  ;;  %v524_v3 = vadd.f32 %v5906_v53, %v5885_v51  ;;  %v8021_v51 = vld [vmem:[#allocation114_spill] sm:$0xff]  ;;  %v8022_v53 = vld [vmem:[#allocation97_spill] sm:$0xff] }
 0x12d   :  { %1871 = vmatmul.f32.gmra.mxu3 %v8014_v7  ;;  %v910_v29 = vpop.f32.mrf.mxu0  ;;  %3425 = vmatpush.xpose.msra.mxu0 %v8016_v9  ;;  %v8027_v9 = vld [vmem:[#allocation20_spill] sm:$0xff] }
 0x12e   :  { %3550 = vmatpush.xpose.msra.mxu1 %v7950_v32 }
 0x12f   :  { %v642_v35 = vpop.f32.mrf.mxu2  ;;  %v755_v16 = vpop.f32.mrf.mxu3  ;;  %2107 = vmatmul.f32.gmra.mxu1 %v8017_v13  ;;  %3171 = vmatpush.xpose.msra.mxu2 %v8019_v17 }
 0x130   :  { %3292 = vmatpush.xpose.msra.mxu3 %v7950_v32  ;;  %1994 = vmatmul.f32.gmra.mxu0 %v8018_v40  ;;  %v643_v25 = vadd.f32 %v642_v35, %v524_v3  ;;  %v756_v45 = vadd.f32 %v755_v16, %v638_v59  ;;  %v8028_v3 = vld [vmem:[#allocation22_spill] sm:$0xff] }
 0x131   :  { %3429 = vmatpush.xpose.msra.mxu0 %v8020_v61  ;;  %v8030_v16 = vld [vmem:[#allocation102_spill] sm:$0xff] }
 0x132   :  { %3552 = vmatpush.xpose.msra.mxu1 %v7953_v47  ;;  %v907_v32 = vadd.f32 %v906_v46, %v756_v45  ;;  %v528_v46 = vadd.f32 %v5926_v56, %v5908_v19  ;;  %v8031_v19 = vld [vmem:[#allocation26_spill] sm:$0xff]  ;;  %v8032_v56 = vld [vmem:[#allocation24_spill] sm:$0xff] }
 0x133   :  { %3174 = vmatpush.xpose.msra.mxu2 %v8023_v38  ;;  %v8036_v38 = vld [vmem:[#allocation29_spill] sm:$0xff] }
 0x134   :  { %3294 = vmatpush.xpose.msra.mxu3 %v7953_v47  ;;  %1682 = vmatmul.f32.gmra.mxu2 %v8021_v51  ;;  %v1007_v21 = vpop.f32.mrf.mxu1  ;;  %v6062_v44 = vadd.f32 %v1003_v49, %v907_v32  ;;  %v8025_v47 = vld [vmem:[#allocation101_spill] sm:$0xff]  ;;  %v532_v32 = vadd.f32 %v5948_v63, %v5928_v55  ;;  %v8039_v55 = vld [vmem:[#allocation34_spill] sm:$0xff] }
 0x135   :  { %1875 = vmatmul.f32.gmra.mxu3 %v8022_v53  ;;  %v914_v22 = vpop.f32.mrf.mxu0  ;;  %3433 = vmatpush.xpose.msra.mxu0 %v8024_v5  ;;  %v8034_v51 = vld [vmem:[#allocation113_spill] sm:$0xff] }
 0x136   :  { %3554 = vmatpush.xpose.msra.mxu1 %v7956_v31  ;;  %v8040_v63 = vld [vmem:[#allocation33_spill] sm:$0xff] }
 0x137   :  { %v647_v59 = vpop.f32.mrf.mxu2  ;;  %v761_v41 = vpop.f32.mrf.mxu3  ;;  %2113 = vmatmul.f32.gmra.mxu1 %v8025_v47  ;;  %3177 = vmatpush.xpose.msra.mxu2 %v8027_v9 }
 0x138   :  { %3296 = vmatpush.xpose.msra.mxu3 %v7956_v31  ;;  %1999 = vmatmul.f32.gmra.mxu0 %v8026_v62  ;;  %v648_v35 = vadd.f32 %v647_v59, %v528_v46  ;;  %v762_v49 = vadd.f32 %v761_v41, %v643_v25  ;;  %v8029_v31 = vld [vmem:[#allocation117_spill] sm:$0xff]  ;;  %v8033_v25 = vld [vmem:[#allocation108_spill] sm:$0xff]  ;;  %v8038_v59 = vld [vmem:[#allocation110_spill] sm:$0xff] }
 0x139   :  { %3437 = vmatpush.xpose.msra.mxu0 %v8028_v3  ;;  %v8041_v3 = vld [vmem:[#allocation115_spill] sm:$0xff] }
 0x13a   :  { %3556 = vmatpush.xpose.msra.mxu1 %v7959_v60  ;;  %v911_v40 = vadd.f32 %v910_v29, %v762_v49  ;;  %v8035_v29 = vld [vmem:[#allocation30_spill] sm:$0xff] }
 0x13b   :  { %3180 = vmatpush.xpose.msra.mxu2 %v8031_v19 }
 0x13c   :  { %3298 = vmatpush.xpose.msra.mxu3 %v7959_v60  ;;  %1690 = vmatmul.f32.gmra.mxu2 %v8029_v31  ;;  %v1011_v13 = vpop.f32.mrf.mxu1  ;;  %v6079_v61 = vadd.f32 %v1007_v21, %v911_v40  ;;  %v8037_v21 = vld [vmem:[#allocation71_spill] sm:$0xff]  ;;  %v8043_v31 = vld [vmem:[#allocation57_spill] sm:$0xff] }
 0x13d   :  { %1879 = vmatmul.f32.gmra.mxu3 %v8030_v16  ;;  %v918_v17 = vpop.f32.mrf.mxu0  ;;  %3441 = vmatpush.xpose.msra.mxu0 %v8032_v56  ;;  %v8045_v40 = vld [vmem:[#allocation37_spill] sm:$0xff]  ;;  %v8046_v56 = vld [vmem:[#allocation80_spill] sm:$0xff] }
 0x13e   :  { %3558 = vmatpush.xpose.msra.mxu1 %v4863_v28 }
 0x13f   :  { %v652_v45 = vpop.f32.mrf.mxu2  ;;  %v767_v60 = vpop.f32.mrf.mxu3  ;;  %2119 = vmatmul.f32.gmra.mxu1 %v8033_v25  ;;  %3183 = vmatpush.xpose.msra.mxu2 %v8035_v29  ;;  %v8048_v25 = vld [vmem:[#allocation40_spill] sm:$0xff] }
 0x140   :  { %3300 = vmatpush.xpose.msra.mxu3 %v4863_v28  ;;  %2004 = vmatmul.f32.gmra.mxu0 %v8034_v51  ;;  %v653_v5 = vadd.f32 %v652_v45, %v532_v32  ;;  %v768_v28 = vadd.f32 %v767_v60, %v648_v35  ;;  %v8042_v35 = vld [vmem:[#allocation118_spill] sm:$0xff]  ;;  %v8047_v45 = vld [vmem:[#allocation52_spill] sm:$0xff] }
 0x141   :  { %3445 = vmatpush.xpose.msra.mxu0 %v8036_v38  ;;  %v8049_v32 = vld [vmem:[#allocation42_spill] sm:$0xff] }
 0x142   :  { %3560 = vmatpush.xpose.msra.mxu1 %v7964_v15  ;;  %v915_v47 = vadd.f32 %v914_v22, %v768_v28  ;;  %v8044_v22 = vld [vmem:[#allocation38_spill] sm:$0xff] }
 0x143   :  { %3186 = vmatpush.xpose.msra.mxu2 %v8039_v55  ;;  %v8056_v55 = vld [vmem:[#allocation63_spill] sm:$0xff] }
 0x144   :  { %3302 = vmatpush.xpose.msra.mxu3 %v7964_v15  ;;  %1698 = vmatmul.f32.gmra.mxu2 %v8037_v21  ;;  %v1015_v41 = vpop.f32.mrf.mxu1  ;;  %v6097_v15 = vadd.f32 %v1011_v13, %v915_v47  ;;  %v8053_v21 = vld [vmem:[#allocation44_spill] sm:$0xff]  ;;  %v8054_v47 = vld [vmem:[#allocation46_spill] sm:$0xff] }
 0x145   :  { %1883 = vmatmul.f32.gmra.mxu3 %v8038_v59  ;;  %v922_v46 = vpop.f32.mrf.mxu0  ;;  %3449 = vmatpush.xpose.msra.mxu0 %v8040_v63 }
 0x146   :  { %3562 = vmatpush.xpose.msra.mxu1 %v7969_v30 }
 0x147   :  { %v657_v62 = vpop.f32.mrf.mxu2  ;;  %v773_v9 = vpop.f32.mrf.mxu3  ;;  %2125 = vmatmul.f32.gmra.mxu1 %v8041_v3  ;;  %3189 = vmatpush.xpose.msra.mxu2 %v8044_v22  ;;  %v8058_v3 = vld [vmem:[#allocation47_spill] sm:$0xff] }
 0x148   :  { %3304 = vmatpush.xpose.msra.mxu3 %v7969_v30  ;;  %v658_v49 = vadd.f32 %v657_v62, %v8042_v35  ;;  %2009 = vmatmul.f32.gmra.mxu0 %v8043_v31  ;;  %v774_v19 = vadd.f32 %v773_v9, %v653_v5  ;;  %v8052_v5 = vld [vmem:[#allocation120_spill] sm:$0xff] }
 0x149   :  { %3453 = vmatpush.xpose.msra.mxu0 %v8045_v40  ;;  %v8057_v9 = vld [vmem:[#allocation48_spill] sm:$0xff] }
 0x14a   :  { %3564 = vmatpush.xpose.msra.mxu1 %v7973_v12  ;;  %v919_v30 = vadd.f32 %v918_v17, %v774_v19  ;;  %v8051_v17 = vld [vmem:[#allocation68_spill] sm:$0xff]  ;;  %v8061_v19 = vld [vmem:[#allocation123_spill] sm:$0xff] }
 0x14b   :  { %3192 = vmatpush.xpose.msra.mxu2 %v8048_v25  ;;  %v8059_v40 = vld [vmem:[#allocation72_spill] sm:$0xff]  ;;  %v8063_v25 = vld [vmem:[#allocation51_spill] sm:$0xff] }
 0x14c   :  { %3306 = vmatpush.xpose.msra.mxu3 %v7973_v12  ;;  %1706 = vmatmul.f32.gmra.mxu2 %v8046_v56  ;;  %v1019_v13 = vpop.f32.mrf.mxu1  ;;  %v6109_v51 = vadd.f32 %v1015_v41, %v919_v30  ;;  %v8050_v12 = vld [vmem:[#allocation62_spill] sm:$0xff]  ;;  %v8062_v56 = vld [vmem:[#allocation55_spill] sm:$0xff] }
 0x14d   :  { %1887 = vmatmul.f32.gmra.mxu3 %v8047_v45  ;;  %v926_v60 = vpop.f32.mrf.mxu0  ;;  %3457 = vmatpush.xpose.msra.mxu0 %v8049_v32  ;;  %v8065_v32 = vld [vmem:[#allocation73_spill] sm:$0xff] }
 0x14e   :  { %3566 = vmatpush.xpose.msra.mxu1 %v7977_v34 }
 0x14f   :  { %v662_v29 = vpop.f32.mrf.mxu2  ;;  %v779_v38 = vpop.f32.mrf.mxu3  ;;  %2131 = vmatmul.f32.gmra.mxu1 %v8050_v12  ;;  %3195 = vmatpush.xpose.msra.mxu2 %v8053_v21  ;;  %v8066_v12 = vld [vmem:[#allocation60_spill] sm:$0xff] }
 0x150   :  { %3308 = vmatpush.xpose.msra.mxu3 %v7977_v34  ;;  %2014 = vmatmul.f32.gmra.mxu0 %v8051_v17  ;;  %v663_v28 = vadd.f32 %v662_v29, %v8052_v5  ;;  %v780_v41 = vadd.f32 %v779_v38, %v658_v49  ;;  %v8055_v34 = vld [vmem:[#allocation87_spill] sm:$0xff]  ;;  %v8060_v49 = vld [vmem:[#allocation77_spill] sm:$0xff] }
 0x151   :  { %3461 = vmatpush.xpose.msra.mxu0 %v8054_v47  ;;  %v8067_v17 = vld [vmem:[#allocation59_spill] sm:$0xff]  ;;  %v8069_v47 = vld [vmem:[#allocation85_spill] sm:$0xff] }
 0x152   :  { %3568 = vmatpush.xpose.msra.mxu1 %v7980_v39  ;;  %v923_v35 = vadd.f32 %v922_v46, %v780_v41 }
 0x153   :  { %3198 = vmatpush.xpose.msra.mxu2 %v8057_v9 }
 0x154   :  { %3310 = vmatpush.xpose.msra.mxu3 %v7980_v39  ;;  %1714 = vmatmul.f32.gmra.mxu2 %v8055_v34  ;;  %v1023_v63 = vpop.f32.mrf.mxu1  ;;  %v6127_v39 = vadd.f32 %v1019_v13, %v923_v35  ;;  %v8071_v34 = vld [vmem:[#allocation65_spill] sm:$0xff]  ;;  %v8073_v35 = vld [vmem:[#allocation70_spill] sm:$0xff] }
 0x155   :  { %1891 = vmatmul.f32.gmra.mxu3 %v8056_v55  ;;  %v930_v62 = vpop.f32.mrf.mxu0  ;;  %3465 = vmatpush.xpose.msra.mxu0 %v8058_v3 }
 0x156   :  { %3570 = vmatpush.xpose.msra.mxu1 %v7984_v48 }
 0x157   :  { %v667_v31 = vpop.f32.mrf.mxu2  ;;  %v785_v22 = vpop.f32.mrf.mxu3  ;;  %2137 = vmatmul.f32.gmra.mxu1 %v8059_v40  ;;  %3201 = vmatpush.xpose.msra.mxu2 %v8062_v56  ;;  %v8074_v40 = vld [vmem:[#allocation88_spill] sm:$0xff]  ;;  %v8076_v56 = vld [vmem:[#allocation105_spill] sm:$0xff] }
 0x158   :  { %3312 = vmatpush.xpose.msra.mxu3 %v7984_v48  ;;  %2019 = vmatmul.f32.gmra.mxu0 %v8060_v49  ;;  %v668_v30 = vadd.f32 %v667_v31, %v8061_v19  ;;  %v786_v46 = vadd.f32 %v785_v22, %v663_v28  ;;  %v8064_v48 = vld [vmem:[#allocation94_spill] sm:$0xff]  ;;  %v8068_v28 = vld [vmem:[#allocation81_spill] sm:$0xff] }
 0x159   :  { %3469 = vmatpush.xpose.msra.mxu0 %v8063_v25 }
 0x15a   :  { %3572 = vmatpush.xpose.msra.mxu1 %v7989_v50  ;;  %v927_v13 = vadd.f32 %v926_v60, %v786_v46  ;;  %v8070_v60 = vld [vmem:[#allocation66_spill] sm:$0xff] }
 0x15b   :  { %3204 = vmatpush.xpose.msra.mxu2 %v8066_v12 }
 0x15c   :  { %3314 = vmatpush.xpose.msra.mxu3 %v7989_v50  ;;  %1722 = vmatmul.f32.gmra.mxu2 %v8064_v48  ;;  %v1027_v29 = vpop.f32.mrf.mxu1  ;;  %v6140_v5 = vadd.f32 %v1023_v63, %v927_v13  ;;  %v8072_v63 = vld [vmem:[#allocation99_spill] sm:$0xff] }
 0x15d   :  { %1895 = vmatmul.f32.gmra.mxu3 %v8065_v32  ;;  %v934_v38 = vpop.f32.mrf.mxu0  ;;  %3473 = vmatpush.xpose.msra.mxu0 %v8067_v17 }
 0x15e   :  { %3574 = vmatpush.xpose.msra.mxu1 %v7995_v0 }
 0x15f   :  { %v672_v21 = vpop.f32.mrf.mxu2  ;;  %v791_v50 = vpop.f32.mrf.mxu3  ;;  %2143 = vmatmul.f32.gmra.mxu1 %v8068_v28  ;;  %3207 = vmatpush.xpose.msra.mxu2 %v8070_v60 }
 0x160   :  { %3316 = vmatpush.xpose.msra.mxu3 %v7995_v0  ;;  %2024 = vmatmul.f32.gmra.mxu0 %v8069_v47  ;;  %v673_v41 = vadd.f32 %v672_v21, %v5868_v2  ;;  %v792_v0 = vadd.f32 %v791_v50, %v668_v30 }
 0x161   :  { %3477 = vmatpush.xpose.msra.mxu0 %v8071_v34 }
 0x162   :  { %3576 = vmatpush.xpose.msra.mxu1 %v8001_v42  ;;  %v931_v31 = vadd.f32 %v930_v62, %v792_v0 }
 0x164   :  { %3318 = vmatpush.xpose.msra.mxu3 %v8001_v42  ;;  %1730 = vmatmul.f32.gmra.mxu2 %v8072_v63  ;;  %v1031_v9 = vpop.f32.mrf.mxu1  ;;  %v6155_v49 = vadd.f32 %v1027_v29, %v931_v31  ;;  %v8075_v42 = vld [vmem:[#allocation92_spill] sm:$0xff]  ;;  %v81_v63 = vld [vmem:[%s7573_s2] sm:$0xff]  ;;  %v8082_v31 = vld [vmem:[#allocation109_spill] sm:$0xff] }
 0x165   :  { %1899 = vmatmul.f32.gmra.mxu3 %v5209_v18  ;;  %v938_v3 = vpop.f32.mrf.mxu0  ;;  %3481 = vmatpush.xpose.msra.mxu0 %v8073_v35  ;;  %v8081_v35 = vld [vmem:[#allocation106_spill] sm:$0xff] }
 0x166   :  { %3578 = vmatpush.xpose.msra.mxu1 %v8007_v23 }
 0x167   :  { %v677_v2 = vpop.f32.mrf.mxu2  ;;  %v797_v22 = vpop.f32.mrf.mxu3  ;;  %2149 = vmatmul.f32.gmra.mxu1 %v8074_v40  ;;  %v82_v40 = vld [vmem:[%s7573_s2 + $0x8] sm:$0xff] }
 0x168   :  { %3320 = vmatpush.xpose.msra.mxu3 %v8007_v23  ;;  %2029 = vmatmul.f32.gmra.mxu0 %v8075_v42  ;;  %v678_v19 = vadd.f32 %v677_v2, %v5892_v33  ;;  %v798_v30 = vadd.f32 %v797_v22, %v673_v41  ;;  %v8077_v33 = vld [vmem:[#allocation111_spill] sm:$0xff]  ;;  %v2791_v22 = vsel %vm147_vm0, %v81_v63, 0  ;;  %v84_v63 = vld [vmem:[%s7573_s2 + $0x18] sm:$0xff] }
 0x169   :  { %v8078_v41 = vld [vmem:[#allocation103_spill] sm:$0xff] }
 0x16a   :  { %v935_v46 = vadd.f32 %v934_v38, %v798_v30  ;;  %v6189_v30 = vand.u32 4294901760, %v2791_v22 }
 0x16c   :  { %1738 = vmatmul.f32.gmra.mxu2 %v8076_v56  ;;  %v1035_v25 = vpop.f32.mrf.mxu1  ;;  %v6161_v48 = vadd.f32 %v1031_v9, %v935_v46  ;;  %8083 = vst [vmem:[#allocation15_spill] sm:$0xff] %v6189_v30  ;;  %v2794_v56 = vsel %vm147_vm0, %v82_v40, 0 }
 0x16d   :  { %1903 = vmatmul.f32.gmra.mxu3 %v5253_v58  ;;  %v942_v62 = vpop.f32.mrf.mxu0  ;;  %v6194_v46 = vand.u32 4294901760, %v2794_v56 }
 0x16f   :  { %v682_v23 = vpop.f32.mrf.mxu2  ;;  %2155 = vmatmul.f32.gmra.mxu1 %v5295_v14  ;;  %8085 = vst [vmem:[#allocation16_spill] sm:$0xff] %v6194_v46 }
 0x170   :  { %v803_v13 = vpop.f32.mrf.mxu3  ;;  %2034 = vmatmul.f32.gmra.mxu0 %v5319_v43  ;;  %v683_v29 = vadd.f32 %v682_v23, %v5916_v26  ;;  %v8079_v26 = vld [vmem:[#allocation116_spill] sm:$0xff] }
 0x171   :  { %v804_v12 = vadd.f32 %v803_v13, %v678_v19  ;;  %v8086_v13 = vld [vmem:[#allocation112_spill] sm:$0xff] }
 0x173   :  { %v939_v50 = vadd.f32 %v938_v3, %v804_v12 }
 0x174   :  { %1746 = vmatmul.f32.gmra.mxu2 %v8077_v33  ;;  %v1039_v17 = vpop.f32.mrf.mxu1  ;;  %v6201_v33 = vsub.f32 %v2794_v56, %v6194_v46 }
 0x175   :  { %1907 = vmatmul.f32.gmra.mxu3 %v5297_v10  ;;  %v946_v21 = vpop.f32.mrf.mxu0  ;;  %v6169_v47 = vadd.f32 %v1035_v25, %v939_v50  ;;  %v83_v50 = vld [vmem:[%s7573_s2 + $0x10] sm:$0xff] }
 0x176   :  { %8087 = vst [vmem:[#allocation5_spill] sm:$0xff] %v6201_v33 }
 0x177   :  { %v687_v38 = vpop.f32.mrf.mxu2  ;;  %2161 = vmatmul.f32.gmra.mxu1 %v5339_v8 }
 0x178   :  { %v809_v28 = vpop.f32.mrf.mxu3  ;;  %2039 = vmatmul.f32.gmra.mxu0 %v8078_v41  ;;  %v688_v43 = vadd.f32 %v687_v38, %v5938_v1 }
 0x179   :  { %v810_v14 = vadd.f32 %v809_v28, %v683_v29  ;;  %v6198_v29 = vsub.f32 %v2791_v22, %v6189_v30 }
 0x17b   :  { %v943_v34 = vadd.f32 %v942_v62, %v810_v14  ;;  %v7745_v14 = vand.u32 4294901760, %v6201_v33 }
 0x17c   :  { %1754 = vmatmul.f32.gmra.mxu2 %v8079_v26  ;;  %v1043_v60 = vpop.f32.mrf.mxu1  ;;  %v2797_v26 = vsel %vm147_vm0, %v83_v50, 0 }
 0x17d   :  { %1911 = vmatmul.f32.gmra.mxu3 %v5341_v20  ;;  %v950_v0 = vpop.f32.mrf.mxu0  ;;  %v6178_v9 = vadd.f32 %v1039_v17, %v943_v34 }
 0x17f   :  { %8080 = vst [vmem:[#allocation3_spill] sm:$0xff] %v6178_v9  ;;  %v692_v8 = vpop.f32.mrf.mxu2  ;;  %2167 = vmatmul.f32.gmra.mxu1 %v8081_v35 }
 0x180   :  { %v815_v3 = vpop.f32.mrf.mxu3  ;;  %2044 = vmatmul.f32.gmra.mxu0 %v8082_v31  ;;  %v693_v1 = vadd.f32 %v692_v8, %v5958_v6  ;;  %v2881_v8 = vsub.f32 %v6201_v33, %v7745_v14  ;;  %v2800_v31 = vsel %vm147_vm0, %v84_v63, 0 }
 0x181   :  { %v816_v2 = vadd.f32 %v815_v3, %v688_v43  ;;  %v6223_v3 = vand.u32 4294901760, %v2797_v26 }
 0x183   :  { %v947_v42 = vadd.f32 %v946_v21, %v816_v2  ;;  %v7746_v21 = vand.u32 4294901760, %v6198_v29  ;;  %8089 = vst [vmem:[#allocation6_spill] sm:$0xff] %v6223_v3  ;;  %v6232_v2 = vld [vmem:[%s7571_s7] ss:$0 sm:$0xff] }
 0x184   :  { %2242 = vmatmul.f32.vlgmr.msrb.gmra.mxu2 %v5073_v57  ;;  %v1047_v19 = vpop.f32.mrf.mxu1 }
 0x185   :  { %1915 = vmatmul.f32.gmra.mxu3 %v5385_v4  ;;  %v6192_v25 = vadd.f32 %v1043_v60, %v947_v42  ;;  %v1970_v6 = vpop.f32.mrf.mxu0  ;;  %v2873_v41 = vsub.f32 %v6198_v29, %v7746_v21  ;;  %v6238_v42 = vpop.permute.xlu0 %1052 }
 0x186   :  { %v6302_v21 = vpop.permute.xlu2 %3651 }
 0x187   :  { %8084 = vst [vmem:[#allocation4_spill] sm:$0xff] %v6192_v25  ;;  %v1635_v23 = vpop.f32.mrf.mxu2  ;;  %2173 = vmatmul.f32.gmra.mxu1 %v8086_v13 }
 0x188   :  { %v821_v62 = vpop.f32.mrf.mxu3 }
 0x189   :  { %v822_v12 = vadd.f32 %v821_v62, %v693_v1  ;;  %v6227_v1 = vsub.f32 %v2797_v26, %v6223_v3 }
 0x18b   :  { %v951_v17 = vadd.f32 %v950_v0, %v822_v12  ;;  %v2874_v0 = vand.u32 4294901760, %v2873_v41  ;;  %8090 = vst [vmem:[#allocation25_spill] sm:$0xff] %v6227_v1  ;;  %v7744_v62 = vand.u32 4294901760, %v6227_v1  ;;  %v85_v12 = vld [vmem:[%s7573_s2 + $0x20] sm:$0xff] }
 0x18c   :  { %2246 = vmatmul.f32.gmra.mxu2 %v5127_v37  ;;  %v2084_v28 = vpop.f32.mrf.mxu1 }
 0x18d   :  { %v6207_v38 = vadd.f32 %v1047_v19, %v951_v17  ;;  %2339 = vmatmul.f32.vlgmr.msrb.gmra.mxu3 %v5073_v57  ;;  %v1975_v43 = vpop.f32.mrf.mxu0  ;;  %2875 = vmatmul.f32.vlgmr.msrb.gmra.mxu0 %v2874_v0  ;;  %v2882_v19 = vand.u32 4294901760, %v2881_v8  ;;  %v1149_v17 = vmul.f32 2.0, %v5985_v52 }
 0x18f   :  { %8088 = vst [vmem:[#allocation21_spill] sm:$0xff] %v6207_v38  ;;  %v1643_v60 = vpop.f32.mrf.mxu2  ;;  %3096 = vmatmul.f32.vlgmr.msrb.gmra.mxu1 %v6189_v30 }
 0x190   :  { %v1856_v34 = vpop.f32.mrf.mxu3 }
 0x191   :  { %v1857_v57 = vadd.f32 %v1856_v34, %v1635_v23  ;;  %v2803_v34 = vsel %vm147_vm0, %v85_v12, 0 }
 0x193   :  { %v1971_v35 = vadd.f32 %v1970_v6, %v1857_v57  ;;  %v6240_v6 = vand.u32 4294901760, %v2800_v31 }
 0x194   :  { %2250 = vmatmul.f32.gmra.mxu2 %v7991_v11  ;;  %v2090_v40 = vpop.f32.mrf.mxu1 }
 0x195   :  { %v6234_v22 = vadd.f32 %v2084_v28, %v1971_v35  ;;  %2343 = vmatmul.f32.gmra.mxu3 %v5127_v37  ;;  %v1980_v56 = vpop.f32.mrf.mxu0  ;;  %8091 = vst [vmem:[#allocation12_spill] sm:$0xff] %v6240_v6  ;;  %v1133_v37 = vadd.f32 %v6232_v2, %v6238_v42  ;;  %2883 = vmatmul.f32.gmra.mxu0 %v2882_v19  ;;  %v6262_v35 = vand.u32 4294901760, %v2803_v34 }
 0x196   :  { %v2889_v28 = vsub.f32 %v6227_v1, %v7744_v62  ;;  %v6254_v41 = vsub.f32 %v2800_v31, %v6240_v6 }
 0x197   :  { %v1651_v23 = vpop.f32.mrf.mxu2  ;;  %3100 = vmatmul.f32.gmra.mxu1 %v6194_v46  ;;  %v1165_v0 = vsub.f32 %v1133_v37, %v1149_v17  ;;  %8094 = vst [vmem:[#allocation19_spill] sm:$0xff] %v6262_v35  ;;  %v6274_v12 = vsub.f32 %v2803_v34, %v6262_v35 }
 0x198   :  { %v1860_v13 = vpop.f32.mrf.mxu3  ;;  %8092 = vst [vmem:[#allocation28_spill] sm:$0xff] %v6254_v41  ;;  %v7743_v8 = vand.u32 4294901760, %v6254_v41 }
 0x199   :  { %v1861_v50 = vadd.f32 %v1860_v13, %v1643_v60  ;;  %v2890_v60 = vand.u32 4294901760, %v2889_v28  ;;  %8095 = vst [vmem:[#allocation75_spill] sm:$0xff] %v6274_v12 }
 0x19b   :  { %v1976_v26 = vadd.f32 %v1975_v43, %v1861_v50  ;;  %v86_v43 = vld [vmem:[%s7573_s2 + $0x28] sm:$0xff]  ;;  %v6277_v50 = vpop.permute.xlu0 %1057 }
 0x19c   :  { %2254 = vmatmul.f32.gmra.mxu2 %v8004_v36  ;;  %v2096_v52 = vpop.f32.mrf.mxu1  ;;  %v2806_v37 = vsel %vm147_vm0, %v86_v43, 0  ;;  %v1134_v43 = vadd.f32 %v6232_v2, %v6277_v50 }
 0x19d   :  { %v6257_v63 = vadd.f32 %v2090_v40, %v1976_v26  ;;  %2347 = vmatmul.f32.gmra.mxu3 %v7991_v11  ;;  %v1985_v57 = vpop.f32.mrf.mxu0  ;;  %v6268_v40 = vmax.f32 %v1165_v0, 1e-30  ;;  %2891 = vmatmul.f32.gmra.mxu0 %v2890_v60  ;;  %v2897_v11 = vsub.f32 %v6254_v41, %v7743_v8  ;;  %v6285_v34 = vand.u32 4294901760, %v2806_v37 }
 0x19f   :  { %8093 = vst [vmem:[#allocation32_spill] sm:$0xff] %v6257_v63  ;;  %v1659_v19 = vpop.f32.mrf.mxu2  ;;  %3104 = vmatmul.f32.gmra.mxu1 %v6223_v3  ;;  %v1197_v28 = vmul.f32 -0.001, %v6268_v40  ;;  %v2898_v0 = vand.u32 4294901760, %v2897_v11  ;;  %v6300_v62 = vsub.f32 %v2806_v37, %v6285_v34 }
 0x1a0   :  { %v1864_v31 = vpop.f32.mrf.mxu3  ;;  %8097 = vst [vmem:[#allocation23_spill] sm:$0xff] %v6285_v34 }
 0x1a1   :  { %v1865_v13 = vadd.f32 %v1864_v31, %v1651_v23  ;;  %v7749_v31 = vand.u32 4294901760, %v6274_v12  ;;  %8098 = vst [vmem:[#allocation61_spill] sm:$0xff] %v6300_v62 }
 0x1a3   :  { %v1981_v17 = vadd.f32 %v1980_v56, %v1865_v13  ;;  %v1150_v56 = vmul.f32 2.0, %v6008_v24  ;;  %v2905_v24 = vsub.f32 %v6274_v12, %v7749_v31  ;;  %v6360_v3 = vpop.permute.xlu0 %3656 }
 0x1a4   :  { %2258 = vmatmul.f32.gmra.mxu2 %v8014_v7  ;;  %v2102_v23 = vpop.f32.mrf.mxu1 }
 0x1a5   :  { %v6280_v26 = vadd.f32 %v2096_v52, %v1981_v17  ;;  %2351 = vmatmul.f32.gmra.mxu3 %v8004_v36  ;;  %v1990_v60 = vpop.f32.mrf.mxu0  ;;  %v87_v36 = vld [vmem:[%s7573_s2 + $0x30] sm:$0xff]  ;;  %v1213_v52 = vmul.f32 1.442695, %v1197_v28  ;;  %v6294_v17 = vpop.permute.xlu1 %1062  ;;  %2899 = vmatmul.f32.gmra.mxu0 %v2898_v0  ;;  %v1166_v14 = vsub.f32 %v1134_v43, %v1150_v56  ;;  %v7754_v0 = vand.u32 4294901760, %v6300_v62 }
 0x1a6   :  { %v1135_v43 = vadd.f32 %v6232_v2, %v6294_v17 }
 0x1a7   :  { %8096 = vst [vmem:[#allocation36_spill] sm:$0xff] %v6280_v26  ;;  %v1667_v13 = vpop.f32.mrf.mxu2  ;;  %3108 = vmatmul.f32.gmra.mxu1 %v6240_v6  ;;  %v2809_v6 = vsel %vm147_vm0, %v87_v36, 0  ;;  %4362 = vpow2.f32 %v1213_v52  ;;  %v6312_v56 = vmax.f32 %v1166_v14, 1e-30  ;;  %v2913_v14 = vsub.f32 %v6300_v62, %v7754_v0  ;;  %v6366_v26 = vld [vmem:[%s7572_s5] ss:$0 sm:$0xff] }
 0x1a8   :  { %v1868_v8 = vpop.f32.mrf.mxu3  ;;  %v6310_v37 = vand.u32 4294901760, %v2809_v6 }
 0x1a9   :  { %v1869_v11 = vadd.f32 %v1868_v8, %v1659_v19  ;;  %v2906_v19 = vand.u32 4294901760, %v2905_v24  ;;  %v1246_v63 = vmul.f32 -0.1, %v6312_v56 }
 0x1aa   :  { %8100 = vst [vmem:[#allocation27_spill] sm:$0xff] %v6310_v37  ;;  %v6325_v52 = vsub.f32 %v2809_v6, %v6310_v37 }
 0x1ab   :  { %v1986_v38 = vadd.f32 %v1985_v57, %v1869_v11  ;;  %v1151_v57 = vmul.f32 2.0, %v6025_v27  ;;  %v1198_v11 = vmul.f32 -0.001, %v6312_v56 }
 0x1ac   :  { %2262 = vmatmul.f32.gmra.mxu2 %v8022_v53  ;;  %v2108_v8 = vpop.f32.mrf.mxu1  ;;  %8101 = vst [vmem:[#allocation82_spill] sm:$0xff] %v6325_v52 }
 0x1ad   :  { %v6305_v25 = vadd.f32 %v2102_v23, %v1986_v38  ;;  %2355 = vmatmul.f32.gmra.mxu3 %v8014_v7  ;;  %v1995_v28 = vpop.f32.mrf.mxu0  ;;  %v88_v7 = vld [vmem:[%s7573_s2 + $0x38] sm:$0xff]  ;;  %2907 = vmatmul.f32.gmra.mxu0 %v2906_v19  ;;  %v6327_v27 = vpop.eup %4362 }
 0x1ae   :  { %v2812_v31 = vsel %vm147_vm0, %v88_v7, 0  ;;  %v6331_v12 = vpop.permute.xlu1 %3646  ;;  %v1389_v19 = vmul.f32 %v6327_v27, %v6327_v27 }
 0x1af   :  { %8099 = vst [vmem:[#allocation41_spill] sm:$0xff] %v6305_v25  ;;  %v1675_v38 = vpop.f32.mrf.mxu2  ;;  %3112 = vmatmul.f32.gmra.mxu1 %v6262_v35  ;;  %v1167_v35 = vsub.f32 %v1135_v43, %v1151_v57  ;;  %v6333_v25 = vpop.permute.xlu2 %1067  ;;  %v6342_v7 = vand.u32 4294901760, %v2812_v31  ;;  %v1215_v57 = vmul.f32 1.442695, %v1198_v11 }
 0x1b0   :  { %v1872_v23 = vpop.f32.mrf.mxu3 }
 0x1b1   :  { %v1873_v36 = vadd.f32 %v1872_v23, %v1667_v13  ;;  %v2914_v23 = vand.u32 4294901760, %v2913_v14  ;;  %8103 = vst [vmem:[#allocation31_spill] sm:$0xff] %v6342_v7  ;;  %v6344_v43 = vmax.f32 %v1167_v35, 1e-30  ;;  %v89_v14 = vld [vmem:[%s7573_s2 + $0x40] sm:$0xff]  ;;  %v8104_v35 = vand.u32 4294901760, %v6325_v52 }
 0x1b2   :  { %v6358_v11 = vsub.f32 %v2812_v31, %v6342_v7  ;;  %4364 = vpow2.f32 %v1215_v57  ;;  %v2815_v41 = vsel %vm147_vm0, %v89_v14, 0  ;;  %v1341_v31 = vmul.f32 -10.0, %v6268_v40 }
 0x1b3   :  { %v1991_v24 = vadd.f32 %v1990_v60, %v1873_v36  ;;  %v1136_v36 = vadd.f32 %v6232_v2, %v6333_v25  ;;  %v1245_v60 = vmul.f32 -0.1, %v6268_v40 }
 0x1b4   :  { %2266 = vmatmul.f32.gmra.mxu2 %v8030_v16  ;;  %v2114_v6 = vpop.f32.mrf.mxu1  ;;  %8105 = vst [vmem:[#allocation49_spill] sm:$0xff] %v6358_v11  ;;  %v8109_v1 = vand.u32 4294901760, %v6358_v11 }
 0x1b5   :  { %v6335_v13 = vadd.f32 %v2108_v8, %v1991_v24  ;;  %2359 = vmatmul.f32.gmra.mxu3 %v8022_v53  ;;  %v2000_v0 = vpop.f32.mrf.mxu0  ;;  %v1152_v8 = vmul.f32 2.0, %v6044_v54  ;;  %2915 = vmatmul.f32.gmra.mxu0 %v2914_v23  ;;  %v2921_v54 = vsub.f32 %v6325_v52, %v8104_v35  ;;  %v1293_v35 = vsub.f32 0.0, %v6268_v40 }
 0x1b6   :  { %v6375_v57 = vpop.permute.xlu1 %1072  ;;  %v6384_v40 = vadd.f32 %v6366_v26, %v6238_v42 }
 0x1b7   :  { %8102 = vst [vmem:[#allocation45_spill] sm:$0xff] %v6335_v13  ;;  %v1683_v24 = vpop.f32.mrf.mxu2  ;;  %3116 = vmatmul.f32.gmra.mxu1 %v6285_v34  ;;  %v1405_v13 = vmul.f32 %v1389_v19, %v1389_v19  ;;  %v1168_v23 = vsub.f32 %v1136_v36, %v1152_v8  ;;  %v2922_v14 = vand.u32 4294901760, %v2921_v54  ;;  %v1309_v8 = vmul.f32 1.442695, %v1293_v35 }
 0x1b8   :  { %v1876_v53 = vpop.f32.mrf.mxu3  ;;  %8108 = vst [vmem:[#allocation53_spill] sm:$0xff] %v6384_v40  ;;  %v6392_v54 = vpop.eup %4364  ;;  %v1137_v46 = vadd.f32 %v6232_v2, %v6375_v57  ;;  %v1153_v35 = vmul.f32 2.0, %v6062_v44 }
 0x1b9   :  { %v1877_v62 = vadd.f32 %v1876_v53, %v1675_v38  ;;  %v1199_v38 = vmul.f32 -0.001, %v6344_v43  ;;  %v1261_v53 = vmul.f32 1.442695, %v1245_v60  ;;  %v6380_v60 = vand.u32 4294901760, %v2815_v41  ;;  %v6418_v44 = vpop.permute.xlu0 %1077 }
 0x1bb   :  { %v1996_v34 = vadd.f32 %v1995_v28, %v1877_v62  ;;  %v1421_v28 = vmul.f32 %v1405_v13, %v1405_v13  ;;  %8107 = vst [vmem:[#allocation89_spill] sm:$0xff] %v6380_v60  ;;  %v90_v13 = vld [vmem:[%s7573_s2 + $0x48] sm:$0xff]  ;;  %4366 = vpow2.f32 %v1261_v53  ;;  %v6402_v40 = vsub.f32 %v2815_v41, %v6380_v60 }
 0x1bc   :  { %2270 = vmatmul.f32.gmra.mxu2 %v8038_v59  ;;  %v2120_v62 = vpop.f32.mrf.mxu1  ;;  %v2818_v30 = vsel %vm147_vm0, %v90_v13, 0  ;;  %v1294_v41 = vsub.f32 0.0, %v6312_v56  ;;  %v1342_v53 = vmul.f32 -10.0, %v6312_v56  ;;  %v1263_v56 = vmul.f32 1.442695, %v1246_v63 }
 0x1bd   :  { %v6371_v52 = vadd.f32 %v2114_v6, %v1996_v34  ;;  %2363 = vmatmul.f32.gmra.mxu3 %v8030_v16  ;;  %v6377_v9 = vpop.f32.mrf.mxu0  ;;  %v1217_v34 = vmul.f32 1.442695, %v1199_v38  ;;  %v6386_v6 = vmax.f32 %v1168_v23, 1e-30  ;;  %v1437_v38 = vmul.f32 %v1421_v28, %v1389_v19  ;;  %v6396_v23 = vpop.permute.xlu2 %3661  ;;  %2923 = vmatmul.f32.gmra.mxu0 %v2922_v14  ;;  %8110 = vst [vmem:[#allocation39_spill] sm:$0xff] %v6402_v40 }
 0x1be   :  { %v6409_v19 = vmul.f32 %v6392_v54, %v6392_v54  ;;  %v1169_v13 = vsub.f32 %v1137_v46, %v1153_v35  ;;  %v1311_v46 = vmul.f32 1.442695, %v1294_v41  ;;  %v1359_v63 = vmul.f32 1.442695, %v1342_v53 }
 0x1bf   :  { %8106 = vst [vmem:[#allocation35_spill] sm:$0xff] %v6371_v52  ;;  %v1691_v36 = vpop.f32.mrf.mxu2  ;;  %3120 = vmatmul.f32.gmra.mxu1 %v6310_v37  ;;  %v1357_v52 = vmul.f32 1.442695, %v1341_v31  ;;  %v2929_v37 = vsub.f32 %v6358_v11, %v8109_v1  ;;  %4368 = vpow2.f32 %v1217_v34  ;;  %v1200_v1 = vmul.f32 -0.001, %v6386_v6 }
 0x1c0   :  { %v1880_v16 = vpop.f32.mrf.mxu3  ;;  %4370 = vpow2.f32 %v1309_v8  ;;  %v6450_v11 = vadd.f32 %v6366_v26, %v6294_v17 }
 0x1c1   :  { %v1881_v42 = vadd.f32 %v1880_v16, %v1683_v24  ;;  %v6413_v24 = vadd.f32 %v6366_v26, %v6277_v50  ;;  %v1453_v50 = vadd.f32 %v6327_v27, %v1437_v38  ;;  %v2930_v14 = vand.u32 4294901760, %v2929_v37 }
 0x1c2   :  { %v6428_v16 = vand.u32 4294901760, %v2818_v30  ;;  %4372 = vpow2.f32 %v1357_v52  ;;  %v1247_v27 = vmul.f32 -0.1, %v6344_v43  ;;  %v1219_v37 = vmul.f32 1.442695, %v1200_v1  ;;  %8115 = vst [vmem:[#allocation95_spill] sm:$0xff] %v6450_v11 }
 0x1c3   :  { %v2001_v31 = vadd.f32 %v2000_v0, %v1881_v42  ;;  %8111 = vst [vmem:[#allocation79_spill] sm:$0xff] %v6413_v24  ;;  %v4367_v42 = vpop.eup %4366  ;;  %v6439_v38 = vadd.f32 %v6232_v2, %v6418_v44  ;;  %v1295_v52 = vsub.f32 0.0, %v6344_v43  ;;  %4374 = vpow2.f32 %v1263_v56  ;;  %v6471_v56 = vpop.permute.xlu0 %3671 }
 0x1c4   :  { %2274 = vmatmul.f32.gmra.mxu2 %v8047_v45  ;;  %v2126_v28 = vpop.f32.mrf.mxu1  ;;  %8113 = vst [vmem:[#allocation67_spill] sm:$0xff] %v6428_v16  ;;  %v1469_v1 = vadd.f32 %v4367_v42, %v1453_v50  ;;  %v6458_v41 = vsub.f32 %v2818_v30, %v6428_v16  ;;  %v1265_v42 = vmul.f32 1.442695, %v1247_v27  ;;  %4376 = vpow2.f32 %v1219_v37 }
 0x1c5   :  { %v6420_v0 = vadd.f32 %v2120_v62, %v2001_v31  ;;  %2367 = vmatmul.f32.gmra.mxu3 %v8038_v59  ;;  %v6425_v34 = vpop.f32.mrf.mxu0  ;;  %v6432_v62 = vadd.f32 %v6232_v2, %v6302_v21  ;;  %v1406_v59 = vmul.f32 %v6409_v19, %v6409_v19  ;;  %v91_v21 = vld [vmem:[%s7573_s2 + $0x50] sm:$0xff]  ;;  %2931 = vmatmul.f32.gmra.mxu0 %v2930_v14  ;;  %v6465_v14 = vpop.permute.xlu2 %1082  ;;  %4378 = vpow2.f32 %v1311_v46 }
 0x1c6   :  { %8118 = vst [vmem:[#allocation64_spill] sm:$0xff] %v6458_v41  ;;  %v7781_v37 = vand.u32 4294901760, %v6458_v41  ;;  %4380 = vpow2.f32 %v1359_v63 }
 0x1c7   :  { %8112 = vst [vmem:[#allocation56_spill] sm:$0xff] %v6420_v0  ;;  %v1699_v31 = vpop.f32.mrf.mxu2  ;;  %3124 = vmatmul.f32.gmra.mxu1 %v6342_v7  ;;  %v6452_v0 = vpop.permute.xlu1 %3666  ;;  %v8117_v7 = vand.u32 4294901760, %v6402_v40  ;;  %v1422_v17 = vmul.f32 %v1406_v59, %v1406_v59  ;;  %4382 = vpow2.f32 %v1265_v42  ;;  %v1155_v42 = vmul.f32 2.0, %v6097_v15 }
 0x1c8   :  { %8114 = vst [vmem:[#allocation43_spill] sm:$0xff] %v6432_v62  ;;  %v1884_v8 = vpop.f32.mrf.mxu3  ;;  %v6446_v62 = vpop.eup %4368  ;;  %v1248_v15 = vmul.f32 -0.1, %v6386_v6 }
 0x1c9   :  { %v1885_v35 = vadd.f32 %v1884_v8, %v1691_v36  ;;  %8116 = vst [vmem:[#allocation76_spill] sm:$0xff] %v6452_v0  ;;  %v2937_v24 = vsub.f32 %v6402_v40, %v8117_v7  ;;  %v4371_v53 = vpop.eup %4370  ;;  %v6460_v36 = vmax.f32 %v1169_v13, 1e-30  ;;  %v2821_v8 = vsel %vm147_vm0, %v91_v21, 0 }
 0x1ca   :  { %v1343_v0 = vmul.f32 -10.0, %v6344_v43  ;;  %v4373_v11 = vpop.eup %4372  ;;  %v1313_v7 = vmul.f32 1.442695, %v1295_v52  ;;  %v6469_v30 = vmul.f32 %v6446_v62, %v6446_v62  ;;  %8119 = vst [vmem:[#allocation119_spill] sm:$0xff] %v6471_v56  ;;  %v1485_v43 = vadd.f32 %v4371_v53, %v1469_v1 }
 0x1cb   :  { %v2006_v50 = vadd.f32 %v6377_v9, %v1885_v35  ;;  %v2938_v59 = vand.u32 4294901760, %v2937_v24  ;;  %v6480_v21 = vand.u32 4294901760, %v2821_v8  ;;  %v1201_v46 = vmul.f32 -0.001, %v6460_v36  ;;  %v4375_v63 = vpop.eup %4374 }
 0x1cc   :  { %2278 = vmatmul.f32.gmra.mxu2 %v8056_v55  ;;  %v2132_v9 = vpop.f32.mrf.mxu1  ;;  %v1154_v52 = vmul.f32 2.0, %v6079_v61  ;;  %v1361_v35 = vmul.f32 1.442695, %v1343_v0  ;;  %v6491_v24 = vadd.f32 %v6366_v26, %v6333_v25  ;;  %v92_v61 = vld [vmem:[%s7573_s2 + $0x58] sm:$0xff]  ;;  %4384 = vpow2.f32 %v1313_v7  ;;  %v6503_v25 = vpop.eup %4376 }
 0x1cd   :  { %v6473_v13 = vadd.f32 %v2126_v28, %v2006_v50  ;;  %2371 = vmatmul.f32.gmra.mxu3 %v8047_v45  ;;  %v6477_v27 = vpop.f32.mrf.mxu0  ;;  %8121 = vst [vmem:[#allocation83_spill] sm:$0xff] %v6480_v21  ;;  %v6486_v28 = vadd.f32 %v6232_v2, %v6465_v14  ;;  %v1438_v45 = vmul.f32 %v1422_v17, %v6409_v19  ;;  %v1221_v40 = vmul.f32 1.442695, %v1201_v46 }
 0x1ce   :  { %8122 = vst [vmem:[#allocation86_spill] sm:$0xff] %v6491_v24  ;;  %v1407_v50 = vmul.f32 %v6469_v30, %v6469_v30  ;;  %v6501_v19 = vadd.f32 %v6232_v2, %v6331_v12  ;;  %v1501_v17 = vadd.f32 %v4373_v11, %v1485_v43  ;;  %2939 = vmatmul.f32.gmra.mxu0 %v2938_v59  ;;  %4386 = vpow2.f32 %v1361_v35  ;;  %v6579_v24 = vpop.permute.xlu2 %3676 }
 0x1cf   :  { %8120 = vst [vmem:[#allocation50_spill] sm:$0xff] %v6473_v13  ;;  %v1707_v1 = vpop.f32.mrf.mxu2  ;;  %3128 = vmatmul.f32.gmra.mxu1 %v6380_v60  ;;  %v2945_v56 = vsub.f32 %v6458_v41, %v7781_v37  ;;  %v6510_v7 = vsub.f32 %v2821_v8, %v6480_v21  ;;  %v4379_v60 = vpop.eup %4378  ;;  %v1170_v13 = vsub.f32 %v6439_v38, %v1154_v52  ;;  %v1296_v43 = vsub.f32 0.0, %v6386_v6 }
 0x1d0   :  { %v1888_v53 = vpop.f32.mrf.mxu3  ;;  %8123 = vst [vmem:[#allocation69_spill] sm:$0xff] %v6501_v19  ;;  %v1454_v11 = vadd.f32 %v6392_v54, %v1438_v45  ;;  %v6518_v59 = vpop.permute.xlu1 %1087  ;;  %v1423_v8 = vmul.f32 %v1407_v50, %v1407_v50  ;;  %v1344_v46 = vmul.f32 -10.0, %v6386_v6  ;;  %v6525_v38 = vmul.f32 %v6503_v25, %v6503_v25 }
 0x1d1   :  { %v1889_v0 = vadd.f32 %v1888_v53, %v1699_v31  ;;  %8124 = vst [vmem:[#allocation121_spill] sm:$0xff] %v6510_v7  ;;  %v2824_v31 = vsel %vm147_vm0, %v92_v61, 0  ;;  %v6520_v53 = vpop.eup %4380  ;;  %v1171_v45 = vsub.f32 %v6486_v28, %v1155_v42  ;;  %v2946_v35 = vand.u32 4294901760, %v2945_v56  ;;  %v6547_v37 = vpop.permute.xlu0 %1092 }
 0x1d2   :  { %v6531_v52 = vpop.eup %4382  ;;  %v6537_v50 = vand.u32 4294901760, %v2824_v31  ;;  %4388 = vpow2.f32 %v1221_v40  ;;  %v1470_v28 = vadd.f32 %v4375_v63, %v1454_v11  ;;  %v1267_v56 = vmul.f32 1.442695, %v1248_v15  ;;  %v93_v40 = vld [vmem:[%s7573_s2 + $0x60] sm:$0xff]  ;;  %8129 = vst [vmem:[#allocation84_spill] sm:$0xff] %v6579_v24 }
 0x1d3   :  { %v2011_v12 = vadd.f32 %v6425_v34, %v1889_v0  ;;  %v6539_v0 = vpop.eup %4384  ;;  %v1315_v42 = vmul.f32 1.442695, %v1296_v43  ;;  %v1156_v19 = vmul.f32 2.0, %v6109_v51  ;;  %v6561_v15 = vmax.f32 %v1171_v45, 1e-30 }
 0x1d4   :  { %2282 = vmatmul.f32.gmra.mxu2 %v8065_v32  ;;  %v2138_v54 = vpop.f32.mrf.mxu1  ;;  %8126 = vst [vmem:[#allocation7_spill] sm:$0xff] %v6537_v50  ;;  %v6559_v11 = vpop.eup %4386  ;;  %v1141_v51 = vadd.f32 %v6232_v2, %v6547_v37  ;;  %v8128_v43 = vand.u32 4294901760, %v6510_v7  ;;  %v1486_v45 = vadd.f32 %v4379_v60, %v1470_v28  ;;  %4390 = vpow2.f32 %v1267_v56 }
 0x1d5   :  { %v6527_v34 = vadd.f32 %v2132_v9, %v2011_v12  ;;  %2375 = vmatmul.f32.gmra.mxu3 %v8056_v55  ;;  %v6534_v61 = vpop.f32.mrf.mxu0  ;;  %v6541_v9 = vmul.f32 -0.03125, %v1501_v17  ;;  %v6543_v12 = vmax.f32 %v1170_v13, 1e-30  ;;  %v1140_v55 = vadd.f32 %v6232_v2, %v6518_v59 }
 0x1d6   :  { %v1439_v13 = vmul.f32 %v1423_v8, %v6469_v30  ;;  %v6555_v17 = vmul.f32 1.442695, %v1344_v46  ;;  %2947 = vmatmul.f32.gmra.mxu0 %v2946_v35  ;;  %v6569_v30 = vsub.f32 %v2824_v31, %v6537_v50  ;;  %v1157_v46 = vmul.f32 2.0, %v6127_v39 }
 0x1d7   :  { %8125 = vst [vmem:[#allocation54_spill] sm:$0xff] %v6527_v34  ;;  %v1715_v6 = vpop.f32.mrf.mxu2  ;;  %3132 = vmatmul.f32.gmra.mxu1 %v6428_v16  ;;  %v1408_v34 = vmul.f32 %v6525_v38, %v6525_v38  ;;  %v2953_v16 = vsub.f32 %v6510_v7, %v8128_v43  ;;  %v1202_v8 = vmul.f32 -0.001, %v6543_v12  ;;  %v6577_v35 = vadd.f32 %v6366_v26, %v6375_v57 }
 0x1d8   :  { %8127 = vst [vmem:[#allocation100_spill] sm:$0xff] %v6541_v9  ;;  %v1892_v41 = vpop.f32.mrf.mxu3  ;;  %v1172_v9 = vsub.f32 %v1140_v55, %v1156_v19  ;;  %v6581_v43 = vpop.eup %4388  ;;  %v1455_v31 = vadd.f32 %v6446_v62, %v1439_v13  ;;  %v1249_v39 = vmul.f32 -0.1, %v6460_v36  ;;  %v1203_v57 = vmul.f32 -0.001, %v6561_v15 }
 0x1d9   :  { %v1893_v63 = vadd.f32 %v1892_v41, %v1707_v1  ;;  %v2827_v1 = vsel %vm147_vm0, %v93_v40, 0  ;;  %v1424_v7 = vmul.f32 %v1408_v34, %v1408_v34  ;;  %v7790_v55 = vand.u32 4294901760, %v6569_v30 }
 0x1da   :  { %v6593_v28 = vand.u32 4294901760, %v2827_v1  ;;  %4392 = vpow2.f32 %v1315_v42  ;;  %v6597_v62 = vadd.f32 %v6232_v2, %v6360_v3  ;;  %v1223_v34 = vmul.f32 1.442695, %v1202_v8  ;;  %v94_v3 = vld [vmem:[%s7573_s2 + $0x68] sm:$0xff] }
 0x1db   :  { %v2016_v41 = vadd.f32 %v6477_v27, %v1893_v63  ;;  %v2954_v27 = vand.u32 4294901760, %v2953_v16  ;;  %v1502_v56 = vadd.f32 %v6520_v53, %v1486_v45  ;;  %v6603_v16 = vmul.f32 %v6581_v43, %v6581_v43 }
 0x1dc   :  { %2286 = vmatmul.f32.gmra.mxu2 %v5209_v18  ;;  %v2144_v60 = vpop.f32.mrf.mxu1  ;;  %8130 = vst [vmem:[#allocation74_spill] sm:$0xff] %v6593_v28  ;;  %v6605_v40 = vmax.f32 %v1172_v9, 1e-30  ;;  %v1471_v42 = vadd.f32 %v6531_v52, %v1455_v31  ;;  %v1440_v53 = vmul.f32 %v1424_v7, %v6525_v38  ;;  %v1225_v45 = vmul.f32 1.442695, %v1203_v57 }
 0x1dd   :  { %v6585_v33 = vadd.f32 %v2138_v54, %v2016_v41  ;;  %2379 = vmatmul.f32.gmra.mxu3 %v8065_v32  ;;  %v6590_v19 = vpop.f32.mrf.mxu0  ;;  %8131 = vst [vmem:[#allocation122_spill] sm:$0xff] %v6597_v62  ;;  %v1173_v54 = vsub.f32 %v1141_v51, %v1157_v46  ;;  %v1297_v32 = vsub.f32 0.0, %v6460_v36  ;;  %v1345_v51 = vmul.f32 -10.0, %v6460_v36  ;;  %v4391_v46 = vpop.eup %4390 }
 0x1de   :  { %v1269_v41 = vmul.f32 1.442695, %v1249_v39  ;;  %2955 = vmatmul.f32.gmra.mxu0 %v2954_v27  ;;  %v2961_v9 = vsub.f32 %v6569_v30, %v7790_v55  ;;  %v6618_v24 = vsub.f32 %v2827_v1, %v6593_v28  ;;  %4394 = vpow2.f32 %v1223_v34  ;;  %v6638_v34 = vpop.permute.xlu2 %1097 }
 0x1df   :  { %v1723_v13 = vpop.f32.mrf.mxu2  ;;  %3136 = vmatmul.f32.gmra.mxu1 %v6480_v21  ;;  %v6620_v62 = vmax.f32 %v1173_v54, 1e-30  ;;  %v2830_v7 = vsel %vm147_vm0, %v94_v3, 0  ;;  %v1317_v36 = vmul.f32 1.442695, %v1297_v32  ;;  %v1409_v38 = vmul.f32 %v6603_v16, %v6603_v16 }
 0x1e0   :  { %v1896_v63 = vpop.f32.mrf.mxu3  ;;  %8132 = vst [vmem:[#allocation58_spill] sm:$0xff] %v6618_v24  ;;  %v1204_v31 = vmul.f32 -0.001, %v6605_v40  ;;  %v4393_v39 = vpop.eup %4392  ;;  %v1487_v1 = vadd.f32 %v6539_v0, %v1471_v42  ;;  %4396 = vpow2.f32 %v6555_v17  ;;  %v1456_v57 = vadd.f32 %v6503_v25, %v1440_v53 }
 0x1e1   :  { %v1897_v8 = vadd.f32 %v1896_v63, %v1715_v6  ;;  %v6628_v6 = vadd.f32 %v6232_v2, %v6396_v23  ;;  %4398 = vpow2.f32 %v1225_v45  ;;  %v2962_v23 = vand.u32 4294901760, %v2961_v9 }
 0x1e2   :  { %v7791_v54 = vand.u32 4294901760, %v6618_v24  ;;  %v6641_v32 = vand.u32 4294901760, %v2830_v7  ;;  %v6643_v0 = vmul.f32 -0.03125, %v1502_v56  ;;  %4400 = vpow2.f32 %v1269_v41  ;;  %v95_v56 = vld [vmem:[%s7573_s2 + $0x70] sm:$0xff] }
 0x1e3   :  { %v2021_v52 = vadd.f32 %v6534_v61, %v1897_v8  ;;  %8133 = vst [vmem:[#allocation90_spill] sm:$0xff] %v6628_v6  ;;  %v1365_v17 = vmul.f32 1.442695, %v1345_v51  ;;  %v1205_v25 = vmul.f32 -0.001, %v6620_v62  ;;  %4402 = vpow2.f32 %v1317_v36 }
 0x1e4   :  { %2290 = vmatmul.f32.gmra.mxu2 %v5253_v58  ;;  %v2150_v27 = vpop.f32.mrf.mxu1  ;;  %8134 = vst [vmem:[#allocation93_spill] sm:$0xff] %v6641_v32  ;;  %v1250_v3 = vmul.f32 -0.1, %v6543_v12  ;;  %v1227_v42 = vmul.f32 1.442695, %v1204_v31  ;;  %v6655_v51 = vpop.eup %4394  ;;  %v1503_v41 = vadd.f32 %v6559_v11, %v1487_v1  ;;  %v1472_v45 = vadd.f32 %v4391_v46, %v1456_v57 }
 0x1e5   :  { %v6634_v61 = vadd.f32 %v2144_v60, %v2021_v52  ;;  %2383 = vmatmul.f32.gmra.mxu3 %v5209_v18  ;;  %v6646_v60 = vpop.permute.xlu1 %3681  ;;  %v6648_v63 = vpop.f32.mrf.mxu0  ;;  %v1425_v18 = vmul.f32 %v1409_v38, %v1409_v38  ;;  %v1298_v9 = vsub.f32 0.0, %v6543_v12  ;;  %v1158_v36 = vmul.f32 2.0, %v6140_v5 }
 0x1e6   :  { %8135 = vst [vmem:[#allocation8_spill] sm:$0xff] %v6646_v60  ;;  %v1142_v38 = vadd.f32 %v6232_v2, %v6638_v34  ;;  %2963 = vmatmul.f32.gmra.mxu0 %v2962_v23  ;;  %v2969_v31 = vsub.f32 %v6618_v24, %v7791_v54  ;;  %v6666_v55 = vsub.f32 %v2830_v7, %v6641_v32  ;;  %v4397_v60 = vpop.eup %4396  ;;  %v1346_v11 = vmul.f32 -10.0, %v6543_v12  ;;  %v6678_v12 = vpop.permute.xlu0 %3686 }
 0x1e7   :  { %v1731_v53 = vpop.f32.mrf.mxu2  ;;  %3140 = vmatmul.f32.gmra.mxu1 %v6537_v50  ;;  %v1229_v46 = vmul.f32 1.442695, %v1205_v25  ;;  %v6671_v5 = vpop.eup %4398  ;;  %v1441_v57 = vmul.f32 %v1425_v18, %v6603_v16  ;;  %v1271_v23 = vmul.f32 1.442695, %v1250_v3  ;;  %4404 = vpow2.f32 %v1227_v42  ;;  %8137 = vst [vmem:[#allocation10_spill] sm:$0xff] %v6678_v12 }
 0x1e8   :  { %v1900_v8 = vpop.f32.mrf.mxu3  ;;  %8136 = vst [vmem:[#allocation78_spill] sm:$0xff] %v6666_v55  ;;  %v4401_v7 = vpop.eup %4400  ;;  %v1488_v54 = vadd.f32 %v4393_v39, %v1472_v45  ;;  %4406 = vpow2.f32 %v1365_v17  ;;  %v1319_v6 = vmul.f32 1.442695, %v1298_v9  ;;  %v1174_v18 = vsub.f32 %v1142_v38, %v1158_v36 }
 0x1e9   :  { %v1901_v52 = vadd.f32 %v1900_v8, %v1723_v13  ;;  %v2833_v13 = vsel %vm147_vm0, %v95_v56, 0  ;;  %v6676_v8 = vmul.f32 %v6655_v51, %v6655_v51  ;;  %v4403_v16 = vpop.eup %4402  ;;  %v2970_v3 = vand.u32 4294901760, %v2969_v31 }
 0x1ea   :  { %v7792_v56 = vand.u32 4294901760, %v6666_v55  ;;  %v6687_v42 = vmul.f32 -0.03125, %v1503_v41  ;;  %v6691_v39 = vadd.f32 %v6366_v26, %v6418_v44  ;;  %4408 = vpow2.f32 %v1229_v46  ;;  %v96_v44 = vld [vmem:[%s7573_s2 + $0x78] sm:$0xff] }
 0x1eb   :  { %v2026_v1 = vadd.f32 %v6590_v19, %v1901_v52  ;;  %v6685_v52 = vand.u32 4294901760, %v2833_v13  ;;  %4410 = vpow2.f32 %v1271_v23  ;;  %v1367_v17 = vmul.f32 1.442695, %v1346_v11 }
 0x1ec   :  { %2294 = vmatmul.f32.gmra.mxu2 %v5297_v10  ;;  %v2156_v19 = vpop.f32.mrf.mxu1  ;;  %v1410_v45 = vmul.f32 %v6676_v8, %v6676_v8  ;;  %4412 = vpow2.f32 %v1319_v6  ;;  %v1251_v41 = vmul.f32 -0.1, %v6561_v15  ;;  %v6707_v38 = vadd.f32 %v6366_v26, %v6465_v14 }
 0x1ed   :  { %v6680_v25 = vadd.f32 %v2150_v27, %v2026_v1  ;;  %2387 = vmatmul.f32.gmra.mxu3 %v5253_v58  ;;  %8139 = vst [vmem:[#allocation91_spill] sm:$0xff] %v6685_v52  ;;  %v6695_v27 = vmul.f32 %v6671_v5, %v6671_v5  ;;  %v1457_v58 = vadd.f32 %v6581_v43, %v1441_v57  ;;  %v6709_v43 = vpop.permute.xlu1 %1102  ;;  %v2035_v11 = vpop.f32.mrf.mxu0  ;;  %v6713_v57 = vmax.f32 %v1174_v18, 1e-30 }
 0x1ee   :  { %v6711_v46 = vpop.eup %4404  ;;  %v1504_v1 = vadd.f32 %v4397_v60, %v1488_v54  ;;  %2971 = vmatmul.f32.gmra.mxu0 %v2970_v3  ;;  %v2977_v6 = vsub.f32 %v6666_v55, %v7792_v56  ;;  %v6719_v23 = vsub.f32 %v2833_v13, %v6685_v52  ;;  %v1299_v14 = vsub.f32 0.0, %v6561_v15 }
 0x1ef   :  { %8138 = vst [vmem:[#allocation107_spill] sm:$0xff] %v6680_v25  ;;  %v1739_v9 = vpop.f32.mrf.mxu2  ;;  %3144 = vmatmul.f32.gmra.mxu1 %v6593_v28  ;;  %v4407_v12 = vpop.eup %4406  ;;  %v2836_v54 = vsel %vm147_vm0, %v96_v44, 0  ;;  %v1473_v60 = vadd.f32 %v4401_v7, %v1457_v58  ;;  %v1426_v18 = vmul.f32 %v1410_v45, %v1410_v45  ;;  %v1159_v3 = vmul.f32 2.0, %v6155_v49 }
 0x1f0   :  { %v1904_v36 = vpop.f32.mrf.mxu3  ;;  %8140 = vst [vmem:[#allocation9_spill] sm:$0xff] %v6719_v23  ;;  %v1143_v56 = vadd.f32 %v6232_v2, %v6709_v43  ;;  %v6729_v28 = vpop.eup %4408  ;;  %v1273_v13 = vmul.f32 1.442695, %v1251_v41  ;;  %v1347_v55 = vmul.f32 -10.0, %v6561_v15  ;;  %v6734_v50 = vmul.f32 %v6711_v46, %v6711_v46 }
 0x1f1   :  { %v1905_v31 = vadd.f32 %v1904_v36, %v1731_v53  ;;  %v1411_v53 = vmul.f32 %v6695_v27, %v6695_v27  ;;  %v4411_v49 = vpop.eup %4410  ;;  %v1206_v7 = vmul.f32 -0.001, %v6713_v57  ;;  %v2978_v58 = vand.u32 4294901760, %v2977_v6 }
 0x1f2   :  { %v6742_v44 = vand.u32 4294901760, %v2836_v54  ;;  %v6744_v15 = vpop.eup %4412  ;;  %v6746_v41 = vmul.f32 -0.03125, %v1504_v1  ;;  %4414 = vpow2.f32 %v1367_v17  ;;  %v6753_v25 = vmul.f32 %v6729_v28, %v6729_v28 }
 0x1f3   :  { %v2031_v36 = vadd.f32 %v6648_v63, %v1905_v31  ;;  %v1427_v31 = vmul.f32 %v1411_v53, %v1411_v53  ;;  %v1175_v6 = vsub.f32 %v1143_v56, %v1159_v3  ;;  %4416 = vpow2.f32 %v1273_v13  ;;  %v6762_v53 = vpop.permute.xlu2 %3691 }
 0x1f4   :  { %2298 = vmatmul.f32.gmra.mxu2 %v5341_v20  ;;  %v2162_v63 = vpop.f32.mrf.mxu1  ;;  %8142 = vst [vmem:[#allocation96_spill] sm:$0xff] %v6742_v44  ;;  %v1369_v1 = vmul.f32 1.442695, %v1347_v55  ;;  %v6758_v17 = vadd.f32 %v6366_v26, %v6518_v59  ;;  %v8144_v56 = vand.u32 4294901760, %v6719_v23  ;;  %v1252_v59 = vmul.f32 -0.1, %v6605_v40 }
 0x1f5   :  { %v6736_v24 = vadd.f32 %v2156_v19, %v2031_v36  ;;  %2391 = vmatmul.f32.gmra.mxu3 %v5297_v10  ;;  %v1321_v19 = vmul.f32 1.442695, %v1299_v14  ;;  %v6748_v36 = vpop.permute.xlu0 %1107  ;;  %v1442_v10 = vmul.f32 %v1426_v18, %v6676_v8  ;;  %v1231_v8 = vmul.f32 1.442695, %v1206_v7  ;;  %8143 = vst [vmem:[#allocation98_spill] sm:$0xff] %v6762_v53  ;;  %v2040_v3 = vpop.f32.mrf.mxu0 }
 0x1f6   :  { %2979 = vmatmul.f32.gmra.mxu0 %v2978_v58  ;;  %v6768_v18 = vsub.f32 %v2836_v54, %v6742_v44  ;;  %v1443_v55 = vmul.f32 %v1427_v31, %v6695_v27  ;;  %v1413_v58 = vmul.f32 %v6753_v25, %v6753_v25  ;;  %v6777_v53 = vmax.f32 %v1175_v6, 1e-30 }
 0x1f7   :  { %8141 = vst [vmem:[#allocation11_spill] sm:$0xff] %v6736_v24  ;;  %v1489_v24 = vadd.f32 %v4403_v16, %v1473_v60  ;;  %v1747_v45 = vpop.f32.mrf.mxu2  ;;  %3148 = vmatmul.f32.gmra.mxu1 %v6641_v32  ;;  %v1412_v16 = vmul.f32 %v6734_v50, %v6734_v50  ;;  %v2985_v60 = vsub.f32 %v6719_v23, %v8144_v56  ;;  %v1300_v54 = vsub.f32 0.0, %v6605_v40 }
 0x1f8   :  { %v1908_v21 = vpop.f32.mrf.mxu3  ;;  %8145 = vst [vmem:[#allocation14_spill] sm:$0xff] %v6768_v18  ;;  %v1458_v7 = vadd.f32 %v6655_v51, %v1442_v10  ;;  %v6779_v56 = vpop.eup %4414  ;;  %v1253_v27 = vmul.f32 -0.1, %v6620_v62  ;;  %v1160_v31 = vmul.f32 2.0, %v6161_v48  ;;  %4418 = vpow2.f32 %v1231_v8 }
 0x1f9   :  { %v1909_v14 = vadd.f32 %v1908_v21, %v1739_v9  ;;  %v1144_v21 = vadd.f32 %v6232_v2, %v6748_v36  ;;  %v1505_v13 = vadd.f32 %v4407_v12, %v1489_v24  ;;  %v1428_v24 = vmul.f32 %v1412_v16, %v1412_v16 }
 0x1fa   :  { %v2986_v51 = vand.u32 4294901760, %v2985_v60  ;;  %4420 = vpow2.f32 %v1321_v19  ;;  %v1459_v10 = vadd.f32 %v6671_v5, %v1443_v55  ;;  %v1275_v6 = vmul.f32 1.442695, %v1252_v59 }
 0x1fb   :  { %v2036_v9 = vadd.f32 %v2035_v11, %v1909_v14  ;;  %v4417_v11 = vpop.eup %4416  ;;  %v1348_v14 = vmul.f32 -10.0, %v6605_v40  ;;  %v1474_v48 = vadd.f32 %v4411_v49, %v1458_v7  ;;  %4422 = vpow2.f32 %v1369_v1 }
 0x1fc   :  { %2302 = vmatmul.f32.gmra.mxu2 %v5385_v4  ;;  %v2168_v2 = vpop.f32.mrf.mxu1  ;;  %v1277_v16 = vmul.f32 1.442695, %v1253_v27  ;;  %v1301_v8 = vsub.f32 0.0, %v6620_v62  ;;  %v1176_v60 = vsub.f32 %v1144_v21, %v1160_v31  ;;  %v6794_v19 = vmul.f32 -0.03125, %v1505_v13  ;;  %v6808_v13 = vpop.permute.xlu2 %1112 }
 0x1fd   :  { %v6784_v32 = vadd.f32 %v2162_v63, %v2036_v9  ;;  %2395 = vmatmul.f32.gmra.mxu3 %v5341_v20  ;;  %v1429_v63 = vmul.f32 %v1413_v58, %v1413_v58  ;;  %v1207_v9 = vmul.f32 -0.001, %v6777_v53  ;;  %v1323_v5 = vmul.f32 1.442695, %v1300_v54  ;;  %v6810_v54 = vpop.permute.xlu1 %3696 }
 0x1fe   :  { %v1444_v55 = vmul.f32 %v1428_v24, %v6734_v50  ;;  %2987 = vmatmul.f32.gmra.mxu0 %v2986_v51  ;;  %v8146_v40 = vand.u32 4294901760, %v6768_v18  ;;  %v1475_v1 = vadd.f32 %v4417_v11, %v1459_v10  ;;  %4424 = vpow2.f32 %v1275_v6  ;;  %v6800_v58 = vpop.eup %4418  ;;  %8147 = vst [vmem:[#allocation13_spill] sm:$0xff] %v6810_v54 }
 0x1ff   :  { %v1755_v23 = vpop.f32.mrf.mxu2  ;;  %3152 = vmatmul.f32.gmra.mxu1 %v6685_v52  ;;  %v1371_v59 = vmul.f32 1.442695, %v1348_v14  ;;  %v1490_v27 = vadd.f32 %v6744_v15, %v1474_v48  ;;  %v6806_v21 = vadd.f32 %v6366_v26, %v6547_v37  ;;  %v1233_v50 = vmul.f32 1.442695, %v1207_v9 }
 0x200   :  { %v1912_v20 = vpop.f32.mrf.mxu3  ;;  %v2993_v49 = vsub.f32 %v6768_v18, %v8146_v40  ;;  %v4421_v31 = vpop.eup %4420  ;;  %4426 = vpow2.f32 %v1277_v16  ;;  %v1325_v24 = vmul.f32 1.442695, %v1301_v8  ;;  %v6812_v51 = vmax.f32 %v1176_v60, 1e-30 }
 0x201   :  { %v1913_v12 = vadd.f32 %v1912_v20, %v1747_v45  ;;  %v1445_v45 = vmul.f32 %v1429_v63, %v6753_v25  ;;  %v2045_v25 = vpop.f32.mrf.mxu0  ;;  %v4423_v37 = vpop.eup %4422  ;;  %4428 = vpow2.f32 %v1323_v5  ;;  %v1349_v11 = vmul.f32 -10.0, %v6620_v62 }
 0x202   :  { %v2994_v10 = vand.u32 4294901760, %v2993_v49  ;;  %v1491_v6 = vadd.f32 %v4421_v31, %v1475_v1  ;;  %v1254_v14 = vmul.f32 -0.1, %v6713_v57  ;;  %v1302_v63 = vsub.f32 0.0, %v6713_v57 }
 0x203   :  { %v2041_v7 = vadd.f32 %v2040_v3, %v1913_v12  ;;  %v1460_v12 = vadd.f32 %v6711_v46, %v1444_v55  ;;  %v1506_v46 = vadd.f32 %v6779_v56, %v1490_v27  ;;  %v1461_v62 = vadd.f32 %v6729_v28, %v1445_v45 }
 0x204   :  { %3210 = vmatmul.f32.vlgmr.msra.gmra.mxu2 %v6198_v29  ;;  %v2174_v15 = vpop.f32.mrf.mxu1  ;;  %4430 = vpow2.f32 %v1233_v50  ;;  %v4425_v16 = vpop.eup %4424  ;;  %v1208_v8 = vmul.f32 -0.001, %v6812_v51  ;;  %v1373_v40 = vmul.f32 1.442695, %v1349_v11  ;;  %v1350_v56 = vmul.f32 -10.0, %v6713_v57 }
 0x205   :  { %v6814_v3 = vadd.f32 %v2168_v2, %v2041_v7  ;;  %2399 = vmatmul.f32.gmra.mxu3 %v5385_v4  ;;  %v6823_v2 = vmul.f32 %v6800_v58, %v6800_v58  ;;  %v6828_v4 = vld [vmem:[%s7571_s7] ss:$0 sm:$0xff]  ;;  %4432 = vpow2.f32 %v1325_v24  ;;  %v1476_v55 = vadd.f32 %v4425_v16, %v1460_v12  ;;  %v8149_v12 = vld [vmem:[#allocation5_spill] sm:$0xff] }
 0x206   :  { %v6832_v48 = vadd.f32 %v6828_v4, %v6808_v13  ;;  %4434 = vpow2.f32 %v1371_v59  ;;  %2995 = vmatmul.f32.gmra.mxu0 %v2994_v10  ;;  %v4427_v28 = vpop.eup %4426  ;;  %v1507_v49 = vadd.f32 %v4423_v37, %v1491_v6  ;;  %v1279_v1 = vmul.f32 1.442695, %v1254_v14  ;;  %v6864_v14 = vpop.permute.xlu0 %3701 }
 0x207   :  { %v2243_v20 = vpop.f32.mrf.mxu2  ;;  %3156 = vmatmul.f32.gmra.mxu1 %v6742_v44  ;;  %v1414_v7 = vmul.f32 %v6823_v2, %v6823_v2  ;;  %v4429_v45 = vpop.eup %4428  ;;  %v1477_v50 = vadd.f32 %v4427_v28, %v1461_v62  ;;  %v1327_v31 = vmul.f32 1.442695, %v1302_v63  ;;  %v6848_v59 = vmul.f32 -0.03125, %v1506_v46  ;;  %8152 = vst [vmem:[#allocation18_spill] sm:$0xff] %v6864_v14  ;;  %v8155_v28 = vld [vmem:[#allocation32_spill] sm:$0xff]  ;;  %v8164_v14 = vld [vmem:[#allocation3_spill] sm:$0xff] }
 0x208   :  { %v1916_v9 = vpop.f32.mrf.mxu3  ;;  %v2244_v5 = vadd.f32 %v2243_v20, %v6234_v22  ;;  %v1161_v22 = vmul.f32 2.0, %v6169_v47  ;;  %v6852_v57 = vadd.f32 %v6366_v26, %v6709_v43  ;;  %v1235_v24 = vmul.f32 1.442695, %v1208_v8 }
 0x209   :  { %v1917_v60 = vadd.f32 %v1916_v9, %v1755_v23  ;;  %v6845_v23 = vadd.f32 %v6366_v26, %v6638_v34  ;;  %v1492_v10 = vadd.f32 %v4429_v45, %v1476_v55  ;;  %4436 = vpow2.f32 %v1373_v40  ;;  %v8154_v40 = vld [vmem:[#allocation15_spill] sm:$0xff] }
 0x20a   :  { %v6861_v34 = vpop.eup %4430  ;;  %v1375_v47 = vmul.f32 1.442695, %v1350_v56  ;;  %v1255_v6 = vmul.f32 -0.1, %v6777_v53  ;;  %v6866_v46 = vmul.f32 -0.03125, %v1507_v49  ;;  %4438 = vpow2.f32 %v1279_v1  ;;  %v6869_v63 = vpop.f32.mrf.mxu0 }
 0x20b   :  { %v2046_v27 = vadd.f32 %v2045_v25, %v1917_v60  ;;  %v8150_v25 = vand.u32 4294901760, %v6198_v29  ;;  %v4433_v43 = vpop.eup %4432  ;;  %v1303_v62 = vsub.f32 0.0, %v6777_v53  ;;  %v1118_v29 = vpop.permute.xlu1 %1117  ;;  %8153 = vst [vmem:[#allocation17_spill] sm:$0xff] %v6869_v63  ;;  %4440 = vpow2.f32 %v1327_v31 }
 0x20c   :  { %3215 = vmatmul.f32.gmra.mxu2 %v8149_v12  ;;  %v6859_v11 = vpop.f32.mrf.mxu1  ;;  %v4435_v9 = vpop.eup %4434  ;;  %v1493_v20 = vadd.f32 %v4433_v43, %v1477_v50  ;;  %v1351_v16 = vmul.f32 -10.0, %v6777_v53  ;;  %v1177_v8 = vsub.f32 %v6832_v48, %v1161_v22  ;;  %v6876_v56 = vmul.f32 %v6861_v34, %v6861_v34 }
 0x20d   :  { %v6854_v37 = vadd.f32 %v2174_v15, %v2046_v27  ;;  %3324 = vmatmul.f32.vlgmr.msra.gmra.mxu3 %v8150_v25  ;;  %8151 = vst [vmem:[#allocation97_spill] sm:$0xff] %v6859_v11  ;;  %v1430_v15 = vmul.f32 %v1414_v7, %v1414_v7  ;;  %4442 = vpow2.f32 %v1235_v24  ;;  %v1508_v7 = vadd.f32 %v4435_v9, %v1492_v10  ;;  %v6889_v22 = vpop.permute.xlu2 %3706  ;;  %v8158_v9 = vld [vmem:[#allocation25_spill] sm:$0xff] }
 0x20e   :  { %v1281_v27 = vmul.f32 1.442695, %v1255_v6  ;;  %v6881_v45 = vadd.f32 %v6366_v26, %v6748_v36  ;;  %v6884_v53 = vadd.f32 %v6828_v4, %v1118_v29  ;;  %3483 = vmatmul.f32.vlgmr.msra.gmra.mxu0 %v8154_v40  ;;  %v1329_v50 = vmul.f32 1.442695, %v1303_v62  ;;  %8156 = vst [vmem:[#allocation101_spill] sm:$0xff] %v6889_v22 }
 0x20f   :  { %8148 = vst [vmem:[#allocation114_spill] sm:$0xff] %v6854_v37  ;;  %v2247_v60 = vpop.f32.mrf.mxu2  ;;  %3580 = vmatmul.f32.vlgmr.msra.gmra.mxu1 %v8154_v40  ;;  %v1446_v48 = vmul.f32 %v1430_v15, %v6823_v2  ;;  %v1256_v31 = vmul.f32 -0.1, %v6812_v51  ;;  %v1377_v25 = vmul.f32 1.442695, %v1351_v16  ;;  %v1304_v10 = vsub.f32 0.0, %v6812_v51 }
 0x210   :  { %v2340_v55 = vpop.f32.mrf.mxu3  ;;  %v2248_v49 = vadd.f32 %v2247_v60, %v8155_v28  ;;  %v1352_v26 = vmul.f32 -10.0, %v6812_v51  ;;  %v6893_v36 = vmax.f32 %v1177_v8, 1e-30  ;;  %4444 = vpow2.f32 %v1375_v47  ;;  %v8157_v15 = vld [vmem:[#allocation53_spill] sm:$0xff]  ;;  %v6908_v51 = vld [vmem:[%s7572_s5] ss:$0 sm:$0xff] }
 0x211   :  { %v2341_v1 = vadd.f32 %v2340_v55, %v2244_v5  ;;  %v4437_v5 = vpop.eup %4436  ;;  %v1415_v2 = vmul.f32 %v6876_v56, %v6876_v56  ;;  %v8159_v60 = vand.u32 4294901760, %v8149_v12  ;;  %v6903_v40 = vmul.f32 -0.03125, %v1508_v7 }
 0x212   :  { %v4439_v6 = vpop.eup %4438  ;;  %v1509_v43 = vadd.f32 %v4437_v5, %v1493_v20  ;;  %4446 = vpow2.f32 %v1281_v27  ;;  %v6912_v47 = vadd.f32 %v6908_v51, %v6808_v13  ;;  %v6915_v20 = vadd.f32 %v6908_v51, %v1118_v29  ;;  %v6922_v7 = vpop.f32.mrf.mxu0 }
 0x213   :  { %v2422_v24 = vmul.f32 2.0, %v2341_v1  ;;  %v4441_v55 = vpop.eup %4440  ;;  %v1462_v8 = vadd.f32 %v6800_v58, %v1446_v48  ;;  %4448 = vpow2.f32 %v1329_v50  ;;  %v1283_v28 = vmul.f32 1.442695, %v1256_v31  ;;  %8162 = vst [vmem:[#allocation22_spill] sm:$0xff] %v6922_v7 }
 0x214   :  { %3220 = vmatmul.f32.gmra.mxu2 %v8158_v9  ;;  %v6901_v16 = vpop.f32.mrf.mxu1  ;;  %8161 = vst [vmem:[#allocation20_spill] sm:$0xff] %v6915_v20  ;;  %v6917_v12 = vpop.eup %4442  ;;  %4450 = vpow2.f32 %v1377_v25  ;;  %v1331_v27 = vmul.f32 1.442695, %v1304_v10  ;;  %v1209_v5 = vmul.f32 -0.001, %v6893_v36  ;;  %v6926_v29 = vmul.f32 -0.03125, %v1509_v43 }
 0x215   :  { %v2438_v62 = vsub.f32 %v8157_v15, %v2422_v24  ;;  %3330 = vmatmul.f32.gmra.mxu3 %v8159_v60  ;;  %8160 = vst [vmem:[#allocation104_spill] sm:$0xff] %v6901_v16  ;;  %v1379_v24 = vmul.f32 1.442695, %v1352_v26  ;;  %v8163_v60 = vld [vmem:[#allocation16_spill] sm:$0xff]  ;;  %v1431_v22 = vmul.f32 %v1415_v2, %v1415_v2  ;;  %v1162_v58 = vmul.f32 2.0, %v8164_v14  ;;  %v1123_v25 = vpop.permute.xlu0 %1122 }
 0x216   :  { %v6932_v50 = vmul.f32 %v6917_v12, %v6917_v12  ;;  %v1257_v31 = vmul.f32 -0.1, %v6893_v36  ;;  %v8165_v10 = vld [vmem:[#allocation36_spill] sm:$0xff]  ;;  %3487 = vmatmul.f32.gmra.mxu0 %v8163_v60  ;;  %v6937_v54 = vpop.eup %4444  ;;  %v1478_v43 = vadd.f32 %v4439_v6, %v1462_v8  ;;  %4452 = vpow2.f32 %v1283_v28  ;;  %v1128_v6 = vpop.permute.xlu2 %1127 }
 0x217   :  { %v6920_v1 = vmax.f32 %v2438_v62, 1e-30  ;;  %v2251_v13 = vpop.f32.mrf.mxu2  ;;  %3584 = vmatmul.f32.gmra.mxu1 %v8163_v60  ;;  %v1305_v14 = vsub.f32 0.0, %v6893_v36  ;;  %4454 = vpow2.f32 %v1331_v27  ;;  %v1237_v7 = vmul.f32 1.442695, %v1209_v5  ;;  %v8167_v8 = vld [vmem:[#allocation28_spill] sm:$0xff] }
 0x218   :  { %v2344_v15 = vpop.f32.mrf.mxu3  ;;  %v2252_v26 = vadd.f32 %v2251_v13, %v8165_v10  ;;  %v4447_v16 = vpop.eup %4446  ;;  %v1353_v44 = vmul.f32 -10.0, %v6893_v36  ;;  %v1178_v13 = vsub.f32 %v6884_v53, %v1162_v58  ;;  %v8168_v28 = vand.u32 4294901760, %v8158_v9  ;;  %v8171_v58 = vld [vmem:[#allocation79_spill] sm:$0xff] }
 0x219   :  { %v2470_v48 = vmul.f32 -0.001, %v6920_v1  ;;  %v2345_v62 = vadd.f32 %v2344_v15, %v2248_v49  ;;  %v6941_v63 = vpop.eup %4448  ;;  %v6945_v49 = vadd.f32 %v6828_v4, %v1123_v25  ;;  %v6948_v15 = vadd.f32 %v6908_v51, %v1123_v25 }
 0x21a   :  { %v6955_v36 = vpop.eup %4450  ;;  %v1447_v5 = vmul.f32 %v1431_v22, %v6876_v56  ;;  %v1416_v53 = vmul.f32 %v6932_v50, %v6932_v50  ;;  %v1285_v60 = vmul.f32 1.442695, %v1257_v31  ;;  %v6961_v25 = vadd.f32 %v4441_v55, %v1478_v43  ;;  %v6964_v9 = vpop.f32.mrf.mxu0  ;;  %v8173_v31 = vld [vmem:[#allocation6_spill] sm:$0xff]  ;;  %v8174_v43 = vld [vmem:[#allocation41_spill] sm:$0xff] }
 0x21b   :  { %v2486_v2 = vmul.f32 1.442695, %v2470_v48  ;;  %v2423_v11 = vmul.f32 2.0, %v2345_v62  ;;  %8166 = vst [vmem:[#allocation117_spill] sm:$0xff] %v6948_v15  ;;  %v1333_v10 = vmul.f32 1.442695, %v1305_v14 }
 0x21c   :  { %3225 = vmatmul.f32.gmra.mxu2 %v8167_v8  ;;  %v6953_v27 = vpop.f32.mrf.mxu1  ;;  %8170 = vst [vmem:[#allocation26_spill] sm:$0xff] %v6955_v36  ;;  %v2518_v62 = vmul.f32 -0.1, %v6920_v1  ;;  %v1194_v55 = vmax.f32 %v1178_v13, 1e-30  ;;  %v2614_v13 = vmul.f32 -10.0, %v6920_v1 }
 0x21d   :  { %4456 = vpow2.f32 %v2486_v2  ;;  %3336 = vmatmul.f32.gmra.mxu3 %v8168_v28  ;;  %8169 = vst [vmem:[#allocation102_spill] sm:$0xff] %v6953_v27  ;;  %v2439_v48 = vsub.f32 %v8171_v58, %v2423_v11  ;;  %v1381_v2 = vmul.f32 1.442695, %v1353_v44  ;;  %v6967_v28 = vadd.f32 %v6828_v4, %v1128_v6  ;;  %v6972_v11 = vpop.eup %4452 }
 0x21e   :  { %4458 = vpow2.f32 %v1379_v24  ;;  %8172 = vst [vmem:[#allocation24_spill] sm:$0xff] %v6964_v9  ;;  %v2566_v24 = vsub.f32 0.0, %v6920_v1  ;;  %v6976_v9 = vpop.eup %4454  ;;  %v1463_v44 = vadd.f32 %v6861_v34, %v1447_v5  ;;  %v1432_v4 = vmul.f32 %v1416_v53, %v1416_v53  ;;  %3491 = vmatmul.f32.gmra.mxu0 %v8173_v31 }
 0x21f   :  { %4460 = vpow2.f32 %v1237_v7  ;;  %v6969_v56 = vmax.f32 %v2439_v48, 1e-30  ;;  %v2255_v22 = vpop.f32.mrf.mxu2  ;;  %3588 = vmatmul.f32.gmra.mxu1 %v8173_v31  ;;  %8175 = vst [vmem:[#allocation108_spill] sm:$0xff] %v6976_v9  ;;  %v2534_v15 = vmul.f32 1.442695, %v2518_v62  ;;  %v8179_v31 = vld [vmem:[#allocation75_spill] sm:$0xff] }
 0x220   :  { %v2348_v27 = vpop.f32.mrf.mxu3  ;;  %v2256_v14 = vadd.f32 %v2255_v22, %v8174_v43  ;;  %4462 = vpow2.f32 %v1285_v60  ;;  %v6983_v22 = vadd.f32 %v6908_v51, %v1128_v6  ;;  %v1210_v34 = vmul.f32 -0.001, %v1194_v55  ;;  %v8178_v60 = vld [vmem:[#allocation95_spill] sm:$0xff]  ;;  %v143_v9 = vld [vmem:[%s7570_s6 + $0x68] sm:$0xff] }
 0x221   :  { %v2349_v58 = vadd.f32 %v2348_v27, %v2252_v26  ;;  %v2471_v7 = vmul.f32 -0.001, %v6969_v56  ;;  %4464 = vpow2.f32 %v1333_v10  ;;  %v1258_v5 = vmul.f32 -0.1, %v1194_v55  ;;  %3711 = vperm.xlu1 %4358, %v143_v9  }
 0x222   :  { %4466 = vpow2.f32 %v1381_v2  ;;  %8176 = vst [vmem:[#allocation113_spill] sm:$0xff] %v6983_v22  ;;  %v2582_v53 = vmul.f32 1.442695, %v2566_v24  ;;  %v8180_v10 = vand.u32 4294901760, %v8167_v8  ;;  %v6995_v51 = vadd.f32 %v4447_v16, %v1463_v44 }
 0x223   :  { %v4457_v48 = vpop.eup %4456  ;;  %v2424_v37 = vmul.f32 2.0, %v2349_v58  ;;  %v2488_v27 = vmul.f32 1.442695, %v2471_v7  ;;  %v1306_v6 = vsub.f32 0.0, %v1194_v55  ;;  %v1448_v58 = vmul.f32 %v1432_v4, %v6932_v50 }
 0x224   :  { %v2662_v26 = vmul.f32 %v4457_v48, %v4457_v48  ;;  %v6985_v43 = vpop.eup %4458  ;;  %3230 = vmatmul.f32.gmra.mxu2 %v8179_v31  ;;  %v6991_v1 = vpop.f32.mrf.mxu1  ;;  %v2630_v24 = vmul.f32 1.442695, %v2614_v13  ;;  %v1354_v8 = vmul.f32 -10.0, %v1194_v55  ;;  %v2519_v16 = vmul.f32 -0.1, %v6969_v56 }
 0x225   :  { %8177 = vst [vmem:[#allocation30_spill] sm:$0xff] %v6985_v43  ;;  %v2440_v36 = vsub.f32 %v8178_v60, %v2424_v37  ;;  %3342 = vmatmul.f32.gmra.mxu3 %v8180_v10  ;;  %v6993_v62 = vpop.eup %4460  ;;  %4468 = vpow2.f32 %v2488_v27  ;;  %v7000_v37 = vpop.f32.mrf.mxu0  ;;  %v8184_v10 = vld [vmem:[#allocation4_spill] sm:$0xff] }
 0x226   :  { %8181 = vst [vmem:[#allocation29_spill] sm:$0xff] %v6991_v1  ;;  %v2678_v2 = vmul.f32 %v2662_v26, %v2662_v26  ;;  %4470 = vpow2.f32 %v2534_v15  ;;  %v7002_v60 = vpop.eup %4462  ;;  %v7005_v1 = vmul.f32 2.0, %v8184_v10  ;;  %v8185_v27 = vld [vmem:[#allocation12_spill] sm:$0xff]  ;;  %v1239_v15 = vmul.f32 1.442695, %v1210_v34 }
 0x227   :  { %v6998_v7 = vmax.f32 %v2440_v36, 1e-30  ;;  %8182 = vst [vmem:[#allocation71_spill] sm:$0xff] %v7000_v37  ;;  %v2259_v44 = vpop.f32.mrf.mxu2  ;;  %3592 = vmatmul.f32.gmra.mxu1 %v8185_v27  ;;  %v7009_v50 = vpop.eup %4464  ;;  %v1287_v36 = vmul.f32 1.442695, %v1258_v5  ;;  %4472 = vpow2.f32 %v2582_v53  ;;  %v2567_v10 = vsub.f32 0.0, %v6969_v56  ;;  %3495 = vmatmul.f32.gmra.mxu0 %v8185_v27 }
 0x228   :  { %8183 = vst [vmem:[#allocation110_spill] sm:$0xff] %v7002_v60  ;;  %v2694_v22 = vmul.f32 %v2678_v2, %v2678_v2  ;;  %v2352_v43 = vpop.f32.mrf.mxu3  ;;  %v7012_v13 = vpop.eup %4466  ;;  %v8188_v37 = vld [vmem:[#allocation45_spill] sm:$0xff]  ;;  %v7021_v34 = vadd.f32 %v6917_v12, %v1448_v58  ;;  %v1335_v5 = vmul.f32 1.442695, %v1306_v6  ;;  %4474 = vpow2.f32 %v2630_v24 }
 0x229   :  { %8186 = vst [vmem:[#allocation34_spill] sm:$0xff] %v7009_v50  ;;  %v2472_v4 = vmul.f32 -0.001, %v6998_v7  ;;  %v2260_v2 = vadd.f32 %v2259_v44, %v8188_v37  ;;  %v2353_v52 = vadd.f32 %v2352_v43, %v2256_v14  ;;  %v2615_v50 = vmul.f32 -10.0, %v6969_v56  ;;  %v8189_v12 = vld [vmem:[#allocation61_spill] sm:$0xff]  ;;  %v8192_v56 = vld [vmem:[#allocation86_spill] sm:$0xff] }
 0x22a   :  { %8187 = vst [vmem:[#allocation33_spill] sm:$0xff] %v7012_v13  ;;  %v2710_v55 = vmul.f32 %v2694_v22, %v2662_v26  ;;  %v2536_v26 = vmul.f32 1.442695, %v2519_v16  ;;  %v7024_v43 = vmul.f32 1.442695, %v1354_v8  ;;  %v1179_v44 = vsub.f32 %v6945_v49, %v7005_v1 }
 0x22b   :  { %v2490_v53 = vmul.f32 1.442695, %v2472_v4  ;;  %v4469_v13 = vpop.eup %4468  ;;  %v2425_v37 = vmul.f32 2.0, %v2353_v52  ;;  %v8190_v6 = vand.u32 4294901760, %v8179_v31  ;;  %v2584_v58 = vmul.f32 1.442695, %v2567_v10 }
 0x22c   :  { %v2726_v22 = vadd.f32 %v4457_v48, %v2710_v55  ;;  %v4471_v14 = vpop.eup %4470  ;;  %v2663_v27 = vmul.f32 %v4469_v13, %v4469_v13  ;;  %3235 = vmatmul.f32.gmra.mxu2 %v8189_v12  ;;  %v7031_v9 = vpop.f32.mrf.mxu1  ;;  %v7036_v8 = vmul.f32 %v6993_v62, %v6993_v62  ;;  %v2520_v1 = vmul.f32 -0.1, %v6998_v7 }
 0x22d   :  { %4476 = vpow2.f32 %v2490_v53  ;;  %3348 = vmatmul.f32.gmra.mxu3 %v8190_v6  ;;  %8191 = vst [vmem:[#allocation115_spill] sm:$0xff] %v7031_v9  ;;  %v2441_v52 = vsub.f32 %v8192_v56, %v2425_v37  ;;  %v4473_v24 = vpop.eup %4472  ;;  %v7039_v16 = vpop.f32.mrf.mxu0  ;;  %v2632_v4 = vmul.f32 1.442695, %v2615_v50  ;;  %v8194_v53 = vld [vmem:[#allocation19_spill] sm:$0xff]  ;;  %v2616_v50 = vmul.f32 -10.0, %v6998_v7 }
 0x22e   :  { %4478 = vpow2.f32 %v1239_v15  ;;  %v2742_v48 = vadd.f32 %v4471_v14, %v2726_v22  ;;  %v2679_v49 = vmul.f32 %v2663_v27, %v2663_v27  ;;  %8193 = vst [vmem:[#allocation118_spill] sm:$0xff] %v7039_v16  ;;  %v144_v22 = vld [vmem:[%s7570_s6 + $0x70] sm:$0xff]  ;;  %v4475_v37 = vpop.eup %4474  ;;  %v2568_v14 = vsub.f32 0.0, %v6998_v7  ;;  %v8195_v6 = vld [vmem:[#allocation35_spill] sm:$0xff] }
 0x22f   :  { %4480 = vpow2.f32 %v1287_v36  ;;  %v7041_v55 = vmax.f32 %v2441_v52, 1e-30  ;;  %v2263_v15 = vpop.f32.mrf.mxu2  ;;  %3596 = vmatmul.f32.gmra.mxu1 %v8194_v53  ;;  %3716 = vperm.xlu0 %4357, %v144_v22   ;;  %v145_v52 = vld [vmem:[%s7570_s6 + $0x78] sm:$0xff]  ;;  %v2538_v60 = vmul.f32 1.442695, %v2520_v1  ;;  %v8200_v1 = vld [vmem:[#allocation100_spill] sm:$0xff] }
 0x230   :  { %v2758_v31 = vadd.f32 %v4473_v24, %v2742_v48  ;;  %4482 = vpow2.f32 %v2536_v26  ;;  %v2356_v10 = vpop.f32.mrf.mxu3  ;;  %v2695_v36 = vmul.f32 %v2679_v49, %v2679_v49  ;;  %v2264_v56 = vadd.f32 %v2263_v15, %v8195_v6  ;;  %3499 = vmatmul.f32.gmra.mxu0 %v8194_v53  ;;  %3721 = vperm.xlu1 %4358, %v145_v52   ;;  %v8197_v6 = vld [vmem:[#allocation82_spill] sm:$0xff] }
 0x231   :  { %v2357_v9 = vadd.f32 %v2356_v10, %v2260_v2  ;;  %4484 = vpow2.f32 %v2584_v58  ;;  %v2473_v48 = vmul.f32 -0.001, %v7041_v55  ;;  %v7055_v49 = vmax.f32 %v1179_v44, 1e-30 }
 0x232   :  { %v2774_v26 = vadd.f32 %v4475_v37, %v2758_v31  ;;  %v2711_v16 = vmul.f32 %v2695_v36, %v2663_v27  ;;  %4486 = vpow2.f32 %v2632_v4  ;;  %v2586_v22 = vmul.f32 1.442695, %v2568_v14 }
 0x233   :  { %v4477_v24 = vpop.eup %4476  ;;  %v2426_v15 = vmul.f32 2.0, %v2357_v9  ;;  %v2492_v31 = vmul.f32 1.442695, %v2473_v48  ;;  %4488 = vpow2.f32 %v1335_v5  ;;  %v8198_v44 = vand.u32 4294901760, %v8189_v12 }
 0x234   :  { %v7057_v2 = vpop.eup %4478  ;;  %v4126_v58 = vmul.f32 0.015625, %v2774_v26  ;;  %v2664_v7 = vmul.f32 %v4477_v24, %v4477_v24  ;;  %v2727_v53 = vadd.f32 %v4469_v13, %v2711_v16  ;;  %3240 = vmatmul.f32.gmra.mxu2 %v8197_v6  ;;  %v7065_v27 = vpop.f32.mrf.mxu1  ;;  %v2634_v4 = vmul.f32 1.442695, %v2616_v50 }
 0x235   :  { %v7059_v10 = vpop.eup %4480  ;;  %v2442_v37 = vsub.f32 %v6577_v35, %v2426_v15  ;;  %3354 = vmatmul.f32.gmra.mxu3 %v8198_v44  ;;  %8199 = vst [vmem:[#allocation38_spill] sm:$0xff] %v7065_v27  ;;  %4490 = vpow2.f32 %v2492_v31  ;;  %v1417_v13 = vmul.f32 %v7036_v8, %v7036_v8  ;;  %v7074_v16 = vpop.f32.mrf.mxu0  ;;  %v1211_v14 = vmul.f32 -0.001, %v7055_v49 }
 0x236   :  { %8196 = vst [vmem:[#allocation57_spill] sm:$0xff] %v7059_v10  ;;  %v4483_v9 = vpop.eup %4482  ;;  %v7068_v36 = vadd.f32 %v4126_v58, %v8200_v1  ;;  %v2680_v26 = vmul.f32 %v2664_v7, %v2664_v7  ;;  %4492 = vpow2.f32 %v2538_v60  ;;  %v2521_v52 = vmul.f32 -0.1, %v7041_v55  ;;  %v8203_v58 = vld [vmem:[#allocation23_spill] sm:$0xff] }
 0x237   :  { %v2743_v5 = vadd.f32 %v4483_v9, %v2727_v53  ;;  %v7072_v35 = vmax.f32 %v2442_v37, 1e-30  ;;  %8202 = vst [vmem:[#allocation80_spill] sm:$0xff] %v7074_v16  ;;  %v4485_v12 = vpop.eup %4484  ;;  %4494 = vpow2.f32 %v7024_v43  ;;  %v2267_v50 = vpop.f32.mrf.mxu2  ;;  %3600 = vmatmul.f32.gmra.mxu1 %v8203_v58  ;;  %v7081_v31 = vmul.f32 -0.1, %v7055_v49  ;;  %v8204_v9 = vld [vmem:[#allocation56_spill] sm:$0xff] }
 0x238   :  { %8201 = vst [vmem:[#allocation37_spill] sm:$0xff] %v7068_v36  ;;  %v2696_v48 = vmul.f32 %v2680_v26, %v2680_v26  ;;  %v2360_v15 = vpop.f32.mrf.mxu3  ;;  %4496 = vpow2.f32 %v2586_v22  ;;  %v4487_v37 = vpop.eup %4486  ;;  %v2569_v43 = vsub.f32 0.0, %v7041_v55  ;;  %v2268_v1 = vadd.f32 %v2267_v50, %v8204_v9  ;;  %3503 = vmatmul.f32.gmra.mxu0 %v8203_v58  ;;  %v8206_v58 = vld [vmem:[#allocation49_spill] sm:$0xff] }
 0x239   :  { %v2759_v60 = vadd.f32 %v4485_v12, %v2743_v5  ;;  %v2474_v53 = vmul.f32 -0.001, %v7072_v35  ;;  %4498 = vpow2.f32 %v2634_v4  ;;  %v7087_v26 = vpop.eup %4488  ;;  %v2617_v27 = vmul.f32 -10.0, %v7041_v55 }
 0x23a   :  { %v2712_v44 = vmul.f32 %v2696_v48, %v2664_v7  ;;  %8205 = vst [vmem:[#allocation52_spill] sm:$0xff] %v7087_v26  ;;  %v2361_v10 = vadd.f32 %v2360_v15, %v2264_v56  ;;  %v7090_v22 = vmul.f32 %v1417_v13, %v1417_v13  ;;  %v1307_v12 = vsub.f32 0.0, %v7055_v49 }
 0x23b   :  { %v2775_v36 = vadd.f32 %v4487_v37, %v2759_v60  ;;  %v2494_v16 = vmul.f32 1.442695, %v2474_v53  ;;  %v4491_v5 = vpop.eup %4490  ;;  %v2540_v7 = vmul.f32 1.442695, %v2521_v52  ;;  %v8207_v60 = vand.u32 4294901760, %v8197_v6 }
 0x23c   :  { %v2728_v4 = vadd.f32 %v4477_v24, %v2712_v44  ;;  %v4493_v48 = vpop.eup %4492  ;;  %v2665_v20 = vmul.f32 %v4491_v5, %v4491_v5  ;;  %v2427_v50 = vmul.f32 2.0, %v2361_v10  ;;  %3245 = vmatmul.f32.gmra.mxu2 %v8206_v58  ;;  %v7096_v55 = vpop.f32.mrf.mxu1  ;;  %v1355_v13 = vmul.f32 -10.0, %v7055_v49 }
 0x23d   :  { %v4127_v18 = vmul.f32 0.015625, %v2775_v36  ;;  %4500 = vpow2.f32 %v2494_v16  ;;  %3360 = vmatmul.f32.gmra.mxu3 %v8207_v60  ;;  %8208 = vst [vmem:[#allocation40_spill] sm:$0xff] %v7096_v55  ;;  %v7098_v56 = vpop.eup %4494  ;;  %v2588_v53 = vmul.f32 1.442695, %v2569_v43  ;;  %v2522_v24 = vmul.f32 -0.1, %v7072_v35  ;;  %v7106_v6 = vpop.f32.mrf.mxu0 }
 0x23e   :  { %8209 = vst [vmem:[#allocation42_spill] sm:$0xff] %v7098_v56  ;;  %v2744_v15 = vadd.f32 %v4493_v48, %v2728_v4  ;;  %v4497_v52 = vpop.eup %4496  ;;  %v2636_v10 = vmul.f32 1.442695, %v2617_v27  ;;  %v2681_v16 = vmul.f32 %v2665_v20, %v2665_v20  ;;  %v2443_v37 = vsub.f32 %v6691_v39, %v2427_v50  ;;  %v8212_v48 = vld [vmem:[#allocation27_spill] sm:$0xff] }
 0x23f   :  { %v7103_v36 = vadd.f32 %v4127_v18, %v6643_v0  ;;  %8211 = vst [vmem:[#allocation68_spill] sm:$0xff] %v7106_v6  ;;  %v4499_v44 = vpop.eup %4498  ;;  %v1241_v9 = vmul.f32 1.442695, %v1211_v14  ;;  %4502 = vpow2.f32 %v2540_v7  ;;  %v2570_v49 = vsub.f32 0.0, %v7072_v35  ;;  %v2271_v4 = vpop.f32.mrf.mxu2  ;;  %3604 = vmatmul.f32.gmra.mxu1 %v8212_v48  ;;  %v8213_v0 = vld [vmem:[#allocation50_spill] sm:$0xff] }
 0x240   :  { %v2760_v60 = vadd.f32 %v4497_v52, %v2744_v15  ;;  %v2364_v43 = vpop.f32.mrf.mxu3  ;;  %v2697_v55 = vmul.f32 %v2681_v16, %v2681_v16  ;;  %v7110_v56 = vmax.f32 %v2443_v37, 1e-30  ;;  %v2272_v18 = vadd.f32 %v2271_v4, %v8213_v0  ;;  %3507 = vmatmul.f32.gmra.mxu0 %v8212_v48 }
 0x241   :  { %8210 = vst [vmem:[#allocation62_spill] sm:$0xff] %v7103_v36  ;;  %v2365_v27 = vadd.f32 %v2364_v43, %v2268_v1  ;;  %v8214_v36 = vld [vmem:[#allocation21_spill] sm:$0xff]  ;;  %4504 = vpow2.f32 %v2588_v53  ;;  %v2542_v14 = vmul.f32 1.442695, %v2522_v24  ;;  %v2618_v52 = vmul.f32 -10.0, %v7072_v35  ;;  %v8215_v53 = vld [vmem:[#allocation39_spill] sm:$0xff] }
 0x242   :  { %v7114_v39 = vmul.f32 2.0, %v8214_v36  ;;  %v2776_v50 = vadd.f32 %v4499_v44, %v2760_v60  ;;  %4506 = vpow2.f32 %v2636_v10  ;;  %v2713_v15 = vmul.f32 %v2697_v55, %v2665_v20 }
 0x243   :  { %v4501_v7 = vpop.eup %4500  ;;  %v2475_v16 = vmul.f32 -0.001, %v7110_v56  ;;  %v2590_v6 = vmul.f32 1.442695, %v2570_v49  ;;  %v2428_v4 = vmul.f32 2.0, %v2365_v27  ;;  %4508 = vpow2.f32 %v1241_v9 }
 0x244   :  { %v4128_v37 = vmul.f32 0.015625, %v2776_v50  ;;  %v2666_v26 = vmul.f32 %v4501_v7, %v4501_v7  ;;  %v1289_v1 = vmul.f32 1.442695, %v7081_v31  ;;  %v2729_v36 = vadd.f32 %v4491_v5, %v2713_v15  ;;  %3250 = vmatmul.f32.gmra.mxu2 %v8215_v53  ;;  %v7123_v10 = vpop.f32.mrf.mxu1 }
 0x245   :  { %v2496_v44 = vmul.f32 1.442695, %v2475_v16  ;;  %v8216_v24 = vand.u32 4294901760, %v8206_v58  ;;  %v4503_v20 = vpop.eup %4502  ;;  %4510 = vpow2.f32 %v2542_v14  ;;  %v2444_v60 = vsub.f32 %v6707_v38, %v2428_v4  ;;  %v7129_v5 = vpop.f32.mrf.mxu0 }
 0x246   :  { %v7126_v35 = vadd.f32 %v4128_v37, %v6687_v42  ;;  %v2682_v55 = vmul.f32 %v2666_v26, %v2666_v26  ;;  %v1337_v9 = vmul.f32 1.442695, %v1307_v12  ;;  %v2745_v49 = vadd.f32 %v4503_v20, %v2729_v36  ;;  %v8217_v42 = vld [vmem:[#allocation31_spill] sm:$0xff]  ;;  %v8218_v12 = vld [vmem:[#allocation54_spill] sm:$0xff] }
 0x247   :  { %3366 = vmatmul.f32.gmra.mxu3 %v8216_v24  ;;  %v2638_v31 = vmul.f32 1.442695, %v2618_v52  ;;  %4512 = vpow2.f32 %v2496_v44  ;;  %v4505_v43 = vpop.eup %4504  ;;  %v1385_v48 = vmul.f32 1.442695, %v1355_v13  ;;  %v7131_v0 = vmax.f32 %v2444_v60, 1e-30  ;;  %v2275_v27 = vpop.f32.mrf.mxu2  ;;  %3608 = vmatmul.f32.gmra.mxu1 %v8217_v42 }
 0x248   :  { %4514 = vpow2.f32 %v2590_v6  ;;  %v2698_v58 = vmul.f32 %v2682_v55, %v2682_v55  ;;  %v2368_v50 = vpop.f32.mrf.mxu3  ;;  %v4507_v14 = vpop.eup %4506  ;;  %v2761_v15 = vadd.f32 %v4505_v43, %v2745_v49  ;;  %v2523_v38 = vmul.f32 -0.1, %v7110_v56  ;;  %3511 = vmatmul.f32.gmra.mxu0 %v8217_v42 }
 0x249   :  { %v2276_v16 = vadd.f32 %v2275_v27, %v8218_v12  ;;  %v2369_v52 = vadd.f32 %v2368_v50, %v2272_v18  ;;  %4516 = vpow2.f32 %v1289_v1  ;;  %v2571_v4 = vsub.f32 0.0, %v7110_v56  ;;  %v7139_v6 = vpop.eup %4508 }
 0x24a   :  { %v2714_v37 = vmul.f32 %v2698_v58, %v2666_v26  ;;  %v2476_v13 = vmul.f32 -0.001, %v7131_v0  ;;  %v2777_v36 = vadd.f32 %v4507_v14, %v2761_v15  ;;  %4518 = vpow2.f32 %v2638_v31  ;;  %v8219_v58 = vld [vmem:[#allocation64_spill] sm:$0xff] }
 0x24b   :  { %v2619_v44 = vmul.f32 -10.0, %v7110_v56  ;;  %v2429_v24 = vmul.f32 2.0, %v2369_v52  ;;  %v4511_v20 = vpop.eup %4510  ;;  %4520 = vpow2.f32 %v1337_v9  ;;  %v1180_v18 = vsub.f32 %v6967_v28, %v7114_v39 }
 0x24c   :  { %v2730_v1 = vadd.f32 %v4501_v7, %v2714_v37  ;;  %v2498_v26 = vmul.f32 1.442695, %v2476_v13  ;;  %4522 = vpow2.f32 %v1385_v48  ;;  %v4129_v60 = vmul.f32 0.015625, %v2777_v36  ;;  %3255 = vmatmul.f32.gmra.mxu2 %v8219_v58  ;;  %v3129_v56 = vpop.f32.mrf.mxu1 }
 0x24d   :  { %v4513_v55 = vpop.eup %4512  ;;  %v2544_v49 = vmul.f32 1.442695, %v2523_v38  ;;  %v2445_v43 = vsub.f32 %v6758_v17, %v2429_v24  ;;  %v8220_v31 = vand.u32 4294901760, %v8215_v53  ;;  %v2592_v9 = vmul.f32 1.442695, %v2571_v4  ;;  %v2940_v17 = vpop.f32.mrf.mxu0  ;;  %v8221_v4 = vld [vmem:[#allocation89_spill] sm:$0xff] }
 0x24e   :  { %v4515_v27 = vpop.eup %4514  ;;  %v2746_v50 = vadd.f32 %v4511_v20, %v2730_v1  ;;  %v2667_v42 = vmul.f32 %v4513_v55, %v4513_v55  ;;  %4524 = vpow2.f32 %v2498_v26  ;;  %v7149_v28 = vadd.f32 %v4129_v60, %v6746_v41 }
 0x24f   :  { %3372 = vmatmul.f32.gmra.mxu3 %v8220_v31  ;;  %v2640_v39 = vmul.f32 1.442695, %v2619_v44  ;;  %v2524_v7 = vmul.f32 -0.1, %v7131_v0  ;;  %v7152_v48 = vmax.f32 %v2445_v43, 1e-30  ;;  %v7154_v14 = vpop.eup %4516  ;;  %v2279_v12 = vpop.f32.mrf.mxu2  ;;  %v7157_v37 = vadd.f32 %v3129_v56, %v2940_v17  ;;  %3612 = vmatmul.f32.gmra.mxu1 %v8221_v4 }
 0x250   :  { %v2762_v15 = vadd.f32 %v4515_v27, %v2746_v50  ;;  %v2683_v53 = vmul.f32 %v2667_v42, %v2667_v42  ;;  %v2572_v38 = vsub.f32 0.0, %v7131_v0  ;;  %v2372_v52 = vpop.f32.mrf.mxu3  ;;  %v4519_v41 = vpop.eup %4518  ;;  %v7162_v13 = vmul.f32 %v7057_v2, %v7057_v2  ;;  %3515 = vmatmul.f32.gmra.mxu0 %v8221_v4 }
 0x251   :  { %v7164_v36 = vmax.f32 %v1180_v18, 1e-30  ;;  %4526 = vpow2.f32 %v2544_v49  ;;  %v2477_v44 = vmul.f32 -0.001, %v7152_v48  ;;  %v7167_v24 = vpop.eup %4520  ;;  %v2620_v26 = vmul.f32 -10.0, %v7131_v0 }
 0x252   :  { %v2778_v20 = vadd.f32 %v4519_v41, %v2762_v15  ;;  %v2699_v1 = vmul.f32 %v2683_v53, %v2683_v53  ;;  %v2280_v60 = vadd.f32 %v2279_v12, %v6585_v33  ;;  %v7172_v43 = vpop.eup %4522  ;;  %4528 = vpow2.f32 %v2592_v9  ;;  %v8222_v53 = vld [vmem:[#allocation121_spill] sm:$0xff] }
 0x253   :  { %v2546_v31 = vmul.f32 1.442695, %v2524_v7  ;;  %v2500_v56 = vmul.f32 1.442695, %v2477_v44  ;;  %v2373_v18 = vadd.f32 %v2372_v52, %v2276_v16  ;;  %4530 = vpow2.f32 %v2640_v39 }
 0x254   :  { %v4525_v27 = vpop.eup %4524  ;;  %v4130_v49 = vmul.f32 0.015625, %v2778_v20  ;;  %v2715_v50 = vmul.f32 %v2699_v1, %v2667_v42  ;;  %v2594_v17 = vmul.f32 1.442695, %v2572_v38  ;;  %v7176_v15 = vmul.f32 %v7162_v13, %v7162_v13  ;;  %3260 = vmatmul.f32.gmra.mxu2 %v8222_v53  ;;  %v3133_v9 = vpop.f32.mrf.mxu1 }
 0x255   :  { %v2668_v0 = vmul.f32 %v4525_v27, %v4525_v27  ;;  %4532 = vpow2.f32 %v2500_v56  ;;  %v2430_v33 = vmul.f32 2.0, %v2373_v18  ;;  %v8223_v12 = vand.u32 4294901760, %v8219_v58  ;;  %v2948_v44 = vpop.f32.mrf.mxu0 }
 0x256   :  { %v1212_v16 = vmul.f32 -0.001, %v7164_v36  ;;  %v7183_v7 = vadd.f32 %v4130_v49, %v6794_v19  ;;  %v2731_v42 = vadd.f32 %v4513_v55, %v2715_v50  ;;  %v2642_v39 = vmul.f32 1.442695, %v2620_v26  ;;  %v8225_v19 = vld [vmem:[#allocation67_spill] sm:$0xff] }
 0x257   :  { %3378 = vmatmul.f32.gmra.mxu3 %v8223_v12  ;;  %v4527_v38 = vpop.eup %4526  ;;  %v1260_v52 = vmul.f32 -0.1, %v7164_v36  ;;  %4534 = vpow2.f32 %v2546_v31  ;;  %v2684_v4 = vmul.f32 %v2668_v0, %v2668_v0  ;;  %v2446_v41 = vsub.f32 %v6806_v21, %v2430_v33  ;;  %v2283_v1 = vpop.f32.mrf.mxu2  ;;  %3616 = vmatmul.f32.gmra.mxu1 %v8225_v19 }
 0x258   :  { %v2747_v20 = vadd.f32 %v4527_v38, %v2731_v42  ;;  %4536 = vpow2.f32 %v2594_v17  ;;  %v2525_v58 = vmul.f32 -0.1, %v7152_v48  ;;  %v2376_v56 = vpop.f32.mrf.mxu3  ;;  %v7188_v18 = vadd.f32 %v3133_v9, %v2948_v44  ;;  %v4529_v55 = vpop.eup %4528  ;;  %3519 = vmatmul.f32.gmra.mxu0 %v8225_v19 }
 0x259   :  { %v2700_v26 = vmul.f32 %v2684_v4, %v2684_v4  ;;  %v7191_v49 = vmax.f32 %v2446_v41, 1e-30  ;;  %v2284_v31 = vadd.f32 %v2283_v1, %v6634_v61  ;;  %v2377_v50 = vadd.f32 %v2376_v56, %v2280_v60  ;;  %v4531_v12 = vpop.eup %4530 }
 0x25a   :  { %8224 = vst [vmem:[#allocation120_spill] sm:$0xff] %v7188_v18  ;;  %v1243_v21 = vmul.f32 1.442695, %v1212_v16  ;;  %v2763_v17 = vadd.f32 %v4529_v55, %v2747_v20  ;;  %4538 = vpow2.f32 %v2642_v39  ;;  %v2573_v38 = vsub.f32 0.0, %v7152_v48 }
 0x25b   :  { %v4533_v42 = vpop.eup %4532  ;;  %v2716_v9 = vmul.f32 %v2700_v26, %v2668_v0  ;;  %v2621_v44 = vmul.f32 -10.0, %v7152_v48  ;;  %v2478_v4 = vmul.f32 -0.001, %v7191_v49  ;;  %v2548_v18 = vmul.f32 1.442695, %v2525_v58 }
 0x25c   :  { %v2779_v41 = vadd.f32 %v4531_v12, %v2763_v17  ;;  %v2669_v61 = vmul.f32 %v4533_v42, %v4533_v42  ;;  %v2431_v60 = vmul.f32 2.0, %v2377_v50  ;;  %v1291_v16 = vmul.f32 1.442695, %v1260_v52  ;;  %3265 = vmatmul.f32.gmra.mxu2 %v6569_v30  ;;  %v3137_v19 = vpop.f32.mrf.mxu1 }
 0x25d   :  { %v4535_v1 = vpop.eup %4534  ;;  %v7200_v56 = vmul.f32 -10.0, %v7164_v36  ;;  %v2732_v39 = vadd.f32 %v4525_v27, %v2716_v9  ;;  %v2502_v20 = vmul.f32 1.442695, %v2478_v4  ;;  %v8226_v0 = vand.u32 4294901760, %v8222_v53  ;;  %v2956_v17 = vpop.f32.mrf.mxu0 }
 0x25e   :  { %v4537_v48 = vpop.eup %4536  ;;  %4540 = vpow2.f32 %v1243_v21  ;;  %v4131_v55 = vmul.f32 0.015625, %v2779_v41  ;;  %v2685_v26 = vmul.f32 %v2669_v61, %v2669_v61  ;;  %v2447_v58 = vsub.f32 %v6845_v23, %v2431_v60  ;;  %v8227_v21 = vld [vmem:[#allocation83_spill] sm:$0xff] }
 0x25f   :  { %3384 = vmatmul.f32.gmra.mxu3 %v8226_v0  ;;  %v2748_v50 = vadd.f32 %v4535_v1, %v2732_v39  ;;  %v2596_v12 = vmul.f32 1.442695, %v2573_v38  ;;  %v2644_v52 = vmul.f32 1.442695, %v2621_v44  ;;  %4542 = vpow2.f32 %v2502_v20  ;;  %v2287_v4 = vpop.f32.mrf.mxu2  ;;  %3620 = vmatmul.f32.gmra.mxu1 %v8227_v21  ;;  %v8228_v60 = vld [vmem:[#allocation107_spill] sm:$0xff] }
 0x260   :  { %v4539_v33 = vpop.eup %4538  ;;  %v7207_v27 = vadd.f32 %v4131_v55, %v6848_v59  ;;  %4544 = vpow2.f32 %v2548_v18  ;;  %v2701_v9 = vmul.f32 %v2685_v26, %v2685_v26  ;;  %v7209_v53 = vmax.f32 %v2447_v58, 1e-30  ;;  %v2380_v0 = vpop.f32.mrf.mxu3  ;;  %3523 = vmatmul.f32.gmra.mxu0 %v8227_v21 }
 0x261   :  { %v2764_v41 = vadd.f32 %v4537_v48, %v2748_v50  ;;  %v2526_v23 = vmul.f32 -0.1, %v7191_v49  ;;  %v2288_v38 = vadd.f32 %v2287_v4, %v8228_v60  ;;  %v2381_v44 = vadd.f32 %v2380_v0, %v2284_v31  ;;  %v8229_v0 = vld [vmem:[#allocation58_spill] sm:$0xff] }
 0x262   :  { %4546 = vpow2.f32 %v1291_v16  ;;  %v2717_v1 = vmul.f32 %v2701_v9, %v2669_v61  ;;  %v2479_v39 = vmul.f32 -0.001, %v7209_v53  ;;  %v7218_v59 = vmul.f32 %v7139_v6, %v7139_v6 }
 0x263   :  { %v2780_v18 = vadd.f32 %v4539_v33, %v2764_v41  ;;  %4548 = vpow2.f32 %v2596_v12  ;;  %v2574_v20 = vsub.f32 0.0, %v7191_v49  ;;  %v2432_v48 = vmul.f32 2.0, %v2381_v44 }
 0x264   :  { %v7221_v55 = vpop.eup %4540  ;;  %v2733_v26 = vadd.f32 %v4533_v42, %v2717_v1  ;;  %v2622_v31 = vmul.f32 -10.0, %v7191_v49  ;;  %v2504_v16 = vmul.f32 1.442695, %v2479_v39  ;;  %v7224_v61 = vadd.f32 %v3137_v19, %v2956_v17  ;;  %3270 = vmatmul.f32.gmra.mxu2 %v8229_v0  ;;  %v3141_v12 = vpop.f32.mrf.mxu1 }
 0x265   :  { %v4543_v58 = vpop.eup %4542  ;;  %v4132_v50 = vmul.f32 0.015625, %v2780_v18  ;;  %4550 = vpow2.f32 %v2644_v52  ;;  %v2550_v9 = vmul.f32 1.442695, %v2526_v23  ;;  %v2448_v4 = vsub.f32 %v6852_v57, %v2432_v48  ;;  %v2964_v60 = vpop.f32.mrf.mxu0 }
 0x266   :  { %v8230_v33 = vand.u32 4294901760, %v6569_v30  ;;  %v4545_v21 = vpop.eup %4544  ;;  %v8231_v42 = vsub.f32 0.0, %v7164_v36  ;;  %v2670_v49 = vmul.f32 %v4543_v58, %v4543_v58  ;;  %4552 = vpow2.f32 %v2504_v16  ;;  %v8234_v16 = vld [vmem:[#allocation7_spill] sm:$0xff] }
 0x267   :  { %v1434_v19 = vmul.f32 %v7176_v15, %v7176_v15  ;;  %v7235_v52 = vadd.f32 %v4132_v50, %v6866_v46  ;;  %v2749_v17 = vadd.f32 %v4545_v21, %v2733_v26  ;;  %v2598_v57 = vmul.f32 1.442695, %v2574_v20  ;;  %v2291_v39 = vpop.f32.mrf.mxu2  ;;  %3624 = vmatmul.f32.gmra.mxu1 %v8234_v16  ;;  %v8235_v50 = vld [vmem:[#allocation11_spill] sm:$0xff] }
 0x268   :  { %3390 = vmatmul.f32.gmra.mxu3 %v8230_v33  ;;  %v1339_v41 = vmul.f32 1.442695, %v8231_v42  ;;  %v7237_v23 = vmax.f32 %v2448_v4, 1e-30  ;;  %v7239_v30 = vpop.eup %4546  ;;  %v2646_v44 = vmul.f32 1.442695, %v2622_v31  ;;  %v2686_v1 = vmul.f32 %v2670_v49, %v2670_v49  ;;  %v2384_v18 = vpop.f32.mrf.mxu3  ;;  %3527 = vmatmul.f32.gmra.mxu0 %v8234_v16 }
 0x269   :  { %8232 = vst [vmem:[#allocation44_spill] sm:$0xff] %v7235_v52  ;;  %v2527_v36 = vmul.f32 -0.1, %v7209_v53  ;;  %v7242_v48 = vadd.f32 %v3141_v12, %v2964_v60  ;;  %v4549_v15 = vpop.eup %4548  ;;  %v7246_v46 = vmul.f32 1.442695, %v7200_v56  ;;  %4554 = vpow2.f32 %v2550_v9 }
 0x26a   :  { %v2480_v20 = vmul.f32 -0.001, %v7237_v23  ;;  %v1419_v26 = vmul.f32 %v7218_v59, %v7218_v59  ;;  %4556 = vpow2.f32 %v1339_v41  ;;  %v2702_v31 = vmul.f32 %v2686_v1, %v2686_v1 }
 0x26b   :  { %8233 = vst [vmem:[#allocation46_spill] sm:$0xff] %v7242_v48  ;;  %v2292_v4 = vadd.f32 %v2291_v39, %v8235_v50  ;;  %v1449_v33 = vmul.f32 %v7090_v22, %v7036_v8  ;;  %v4551_v12 = vpop.eup %4550  ;;  %v2765_v21 = vadd.f32 %v4549_v15, %v2749_v17  ;;  %4558 = vpow2.f32 %v2598_v57  ;;  %v8236_v39 = vld [vmem:[#allocation78_spill] sm:$0xff] }
 0x26c   :  { %v2506_v56 = vmul.f32 1.442695, %v2480_v20  ;;  %v2385_v42 = vadd.f32 %v2384_v18, %v2288_v38  ;;  %v4553_v9 = vpop.eup %4552  ;;  %4560 = vpow2.f32 %v2646_v44  ;;  %v2718_v60 = vmul.f32 %v2702_v31, %v2670_v49  ;;  %3275 = vmatmul.f32.gmra.mxu2 %v8236_v39  ;;  %v3145_v8 = vpop.f32.mrf.mxu1 }
 0x26d   :  { %v2552_v52 = vmul.f32 1.442695, %v2527_v36  ;;  %v2575_v48 = vsub.f32 0.0, %v7209_v53  ;;  %v2671_v41 = vmul.f32 %v4553_v9, %v4553_v9  ;;  %v8237_v16 = vand.u32 4294901760, %v8229_v0  ;;  %v2972_v20 = vpop.f32.mrf.mxu0 }
 0x26e   :  { %4562 = vpow2.f32 %v2506_v56  ;;  %v2433_v1 = vmul.f32 2.0, %v2385_v42  ;;  %v7259_v22 = vmul.f32 %v1419_v26, %v1419_v26  ;;  %v2734_v17 = vadd.f32 %v4543_v58, %v2718_v60 }
 0x26f   :  { %v2528_v38 = vmul.f32 -0.1, %v7237_v23  ;;  %v7263_v57 = vmul.f32 %v1434_v19, %v7162_v13  ;;  %v7266_v49 = vadd.f32 %v6993_v62, %v1449_v33  ;;  %v4555_v44 = vpop.eup %4554  ;;  %v2781_v36 = vadd.f32 %v4551_v12, %v2765_v21  ;;  %v2295_v50 = vpop.f32.mrf.mxu2  ;;  %v8238_v19 = vld [vmem:[#allocation74_spill] sm:$0xff] }
 0x270   :  { %3396 = vmatmul.f32.gmra.mxu3 %v8237_v16  ;;  %v2623_v18 = vmul.f32 -10.0, %v7209_v53  ;;  %v2687_v15 = vmul.f32 %v2671_v41, %v2671_v41  ;;  %v2449_v0 = vsub.f32 %v6881_v45, %v2433_v1  ;;  %v7270_v31 = vpop.eup %4556  ;;  %v2750_v26 = vadd.f32 %v4555_v44, %v2734_v17  ;;  %v2388_v56 = vpop.f32.mrf.mxu3  ;;  %3628 = vmatmul.f32.gmra.mxu1 %v8238_v19 }
 0x271   :  { %4564 = vpow2.f32 %v2552_v52  ;;  %v2600_v58 = vmul.f32 1.442695, %v2575_v48  ;;  %v7272_v13 = vadd.f32 %v3145_v8, %v2972_v20  ;;  %v4559_v62 = vpop.eup %4558  ;;  %v2296_v53 = vadd.f32 %v2295_v50, %v6784_v32  ;;  %3531 = vmatmul.f32.gmra.mxu0 %v8238_v19 }
 0x272   :  { %v2703_v33 = vmul.f32 %v2687_v15, %v2687_v15  ;;  %v7275_v12 = vmax.f32 %v2449_v0, 1e-30  ;;  %v2389_v21 = vadd.f32 %v2388_v56, %v2292_v4  ;;  %v4561_v45 = vpop.eup %4560  ;;  %v2766_v42 = vadd.f32 %v4559_v62, %v2750_v26 }
 0x273   :  { %v2554_v60 = vmul.f32 1.442695, %v2528_v38  ;;  %v7281_v52 = vadd.f32 %v6972_v11, %v7021_v34  ;;  %v7285_v48 = vadd.f32 %v6941_v63, %v6995_v51  ;;  %v4133_v16 = vmul.f32 0.015625, %v2781_v36  ;;  %v8239_v63 = vld [vmem:[#allocation9_spill] sm:$0xff] }
 0x274   :  { %v4563_v1 = vpop.eup %4562  ;;  %v2719_v8 = vmul.f32 %v2703_v33, %v2671_v41  ;;  %v2576_v17 = vsub.f32 0.0, %v7237_v23  ;;  %v2481_v32 = vmul.f32 -0.001, %v7275_v12  ;;  %v2782_v4 = vadd.f32 %v4561_v45, %v2766_v42  ;;  %3280 = vmatmul.f32.gmra.mxu2 %v8239_v63  ;;  %v3149_v41 = vpop.f32.mrf.mxu1 }
 0x275   :  { %v2672_v44 = vmul.f32 %v4563_v1, %v4563_v1  ;;  %v2434_v38 = vmul.f32 2.0, %v2389_v21  ;;  %v7291_v15 = vadd.f32 %v6937_v54, %v6961_v25  ;;  %4566 = vpow2.f32 %v2600_v58  ;;  %v2980_v25 = vpop.f32.mrf.mxu0  ;;  %v8241_v21 = vld [vmem:[#allocation93_spill] sm:$0xff] }
 0x276   :  { %v2648_v11 = vmul.f32 1.442695, %v2623_v18  ;;  %v2735_v34 = vadd.f32 %v4553_v9, %v2719_v8  ;;  %v2508_v0 = vmul.f32 1.442695, %v2481_v32  ;;  %v8240_v51 = vand.u32 4294901760, %v8236_v39 }
 0x277   :  { %v4565_v36 = vpop.eup %4564  ;;  %4568 = vpow2.f32 %v2554_v60  ;;  %v2624_v20 = vmul.f32 -10.0, %v7237_v23  ;;  %v2688_v26 = vmul.f32 %v2672_v44, %v2672_v44  ;;  %v2450_v50 = vsub.f32 %v6912_v47, %v2434_v38  ;;  %v2299_v39 = vpop.f32.mrf.mxu2 }
 0x278   :  { %3402 = vmatmul.f32.gmra.mxu3 %v8240_v51  ;;  %v4134_v56 = vmul.f32 0.015625, %v2782_v4  ;;  %v2602_v54 = vmul.f32 1.442695, %v2576_v17  ;;  %4570 = vpow2.f32 %v2508_v0  ;;  %v7299_v9 = vadd.f32 %v4133_v16, %v6903_v40  ;;  %v2392_v62 = vpop.f32.mrf.mxu3  ;;  %3632 = vmatmul.f32.gmra.mxu1 %v8241_v21  ;;  %v8242_v51 = vld [vmem:[#allocation20_spill] sm:$0xff] }
 0x279   :  { %v2751_v18 = vadd.f32 %v4565_v36, %v2735_v34  ;;  %v2704_v58 = vmul.f32 %v2688_v26, %v2688_v26  ;;  %v7301_v19 = vmax.f32 %v2450_v50, 1e-30  ;;  %v7303_v33 = vadd.f32 %v3149_v41, %v2980_v25  ;;  %3535 = vmatmul.f32.gmra.mxu0 %v8241_v21  ;;  %v8243_v36 = vld [vmem:[#allocation14_spill] sm:$0xff] }
 0x27a   :  { %4572 = vpow2.f32 %v2648_v11  ;;  %v2529_v47 = vmul.f32 -0.1, %v7275_v12  ;;  %v2300_v23 = vadd.f32 %v2299_v39, %v6814_v3  ;;  %v2393_v45 = vadd.f32 %v2392_v62, %v2296_v53 }
 0x27b   :  { %v2720_v42 = vmul.f32 %v2704_v58, %v2672_v44  ;;  %v2482_v40 = vmul.f32 -0.001, %v7301_v19  ;;  %v7312_v60 = vmul.f32 %v7221_v55, %v7221_v55  ;;  %v7316_v16 = vmul.f32 %v7259_v22, %v7218_v59  ;;  %v4567_v8 = vpop.eup %4566 }
 0x27c   :  { %4574 = vpow2.f32 %v2602_v54  ;;  %v2650_v17 = vmul.f32 1.442695, %v2624_v20  ;;  %v2577_v32 = vsub.f32 0.0, %v7275_v12  ;;  %v2435_v3 = vmul.f32 2.0, %v2393_v45  ;;  %3285 = vmatmul.f32.gmra.mxu2 %v8243_v36  ;;  %v3153_v22 = vpop.f32.mrf.mxu1 }
 0x27d   :  { %v4569_v53 = vpop.eup %4568  ;;  %v2767_v4 = vadd.f32 %v4567_v8, %v2751_v18  ;;  %v2736_v44 = vadd.f32 %v4563_v1, %v2720_v42  ;;  %v2510_v38 = vmul.f32 1.442695, %v2482_v40  ;;  %v7320_v11 = vadd.f32 %v4134_v56, %v6926_v29  ;;  %v8245_v1 = vld [vmem:[#allocation110_spill] sm:$0xff]  ;;  %v2988_v58 = vpop.f32.mrf.mxu0 }
 0x27e   :  { %v4571_v34 = vpop.eup %4570  ;;  %v2556_v0 = vmul.f32 1.442695, %v2529_v47  ;;  %v2451_v41 = vsub.f32 %v8242_v51, %v2435_v3  ;;  %v8244_v59 = vand.u32 4294901760, %v8239_v63  ;;  %v7328_v20 = vadd.f32 %v7057_v2, %v7263_v57  ;;  %v8246_v2 = vld [vmem:[#allocation108_spill] sm:$0xff]  ;;  %v8247_v47 = vld [vmem:[#allocation91_spill] sm:$0xff]  ;;  %v8248_v40 = vld [vmem:[#allocation26_spill] sm:$0xff] }
 0x27f   :  { %v7332_v26 = vadd.f32 %v8245_v1, %v7266_v49  ;;  %v2625_v29 = vmul.f32 -10.0, %v7275_v12  ;;  %v2673_v50 = vmul.f32 %v4571_v34, %v4571_v34  ;;  %4576 = vpow2.f32 %v2510_v38  ;;  %v2303_v12 = vpop.f32.mrf.mxu2  ;;  %v8250_v1 = vld [vmem:[#allocation17_spill] sm:$0xff] }
 0x280   :  { %3408 = vmatmul.f32.gmra.mxu3 %v8244_v59  ;;  %v7337_v56 = vmul.f32 %v7312_v60, %v7312_v60  ;;  %v4573_v54 = vpop.eup %4572  ;;  %v2752_v63 = vadd.f32 %v4569_v53, %v2736_v44  ;;  %v2604_v25 = vmul.f32 1.442695, %v2577_v32  ;;  %v7339_v18 = vmax.f32 %v2451_v41, 1e-30  ;;  %v2396_v62 = vpop.f32.mrf.mxu3  ;;  %3636 = vmatmul.f32.gmra.mxu1 %v8247_v47  ;;  %v8249_v53 = vld [vmem:[#allocation114_spill] sm:$0xff] }
 0x281   :  { %v7343_v57 = vadd.f32 %v8246_v2, %v7281_v52  ;;  %v2783_v49 = vadd.f32 %v4573_v54, %v2767_v4  ;;  %4578 = vpow2.f32 %v2650_v17  ;;  %v2689_v39 = vmul.f32 %v2673_v50, %v2673_v50  ;;  %3539 = vmatmul.f32.gmra.mxu0 %v8247_v47 }
 0x282   :  { %v7345_v21 = vadd.f32 %v3153_v22, %v2988_v58  ;;  %v4575_v45 = vpop.eup %4574  ;;  %4580 = vpow2.f32 %v2556_v0  ;;  %v2483_v42 = vmul.f32 -0.001, %v7339_v18  ;;  %v1511_v8 = vadd.f32 %v8248_v40, %v7285_v48 }
 0x283   :  { %v1526_v32 = vmul.f32 -0.03125, %v7291_v15  ;;  %v2652_v52 = vmul.f32 1.442695, %v2625_v29  ;;  %v2705_v3 = vmul.f32 %v2689_v39, %v2689_v39  ;;  %v2304_v17 = vadd.f32 %v2303_v12, %v8249_v53  ;;  %v8251_v15 = vld [vmem:[#allocation97_spill] sm:$0xff] }
 0x284   :  { %v2397_v4 = vadd.f32 %v2396_v62, %v2300_v23  ;;  %v2768_v44 = vadd.f32 %v4575_v45, %v2752_v63  ;;  %4582 = vpow2.f32 %v2604_v25  ;;  %v2530_v38 = vmul.f32 -0.1, %v7301_v19  ;;  %v3157_v58 = vpop.f32.mrf.mxu1  ;;  %v8253_v39 = vld [vmem:[#allocation117_spill] sm:$0xff] }
 0x285   :  { %v2512_v51 = vmul.f32 1.442695, %v2483_v42  ;;  %v4577_v0 = vpop.eup %4576  ;;  %v2721_v41 = vmul.f32 %v2705_v3, %v2673_v50  ;;  %v2578_v59 = vsub.f32 0.0, %v7301_v19  ;;  %v4135_v48 = vmul.f32 0.015625, %v2783_v49  ;;  %v2996_v42 = vpop.f32.mrf.mxu0 }
 0x286   :  { %v2436_v22 = vmul.f32 2.0, %v2397_v4  ;;  %v3098_v29 = vadd.f32 %v8251_v15, %v8250_v1  ;;  %v2674_v54 = vmul.f32 %v4577_v0, %v4577_v0  ;;  %v8252_v23 = vand.u32 4294901760, %v8243_v36 }
 0x287   :  { %4584 = vpow2.f32 %v2512_v51  ;;  %v1527_v63 = vmul.f32 -0.03125, %v1511_v8  ;;  %v4579_v25 = vpop.eup %4578  ;;  %v2737_v2 = vadd.f32 %v4571_v34, %v2721_v41  ;;  %v7361_v50 = vadd.f32 %v4135_v48, %v1526_v32  ;;  %v3211_v8 = vpop.f32.mrf.mxu2  ;;  %v8254_v34 = vld [vmem:[#allocation96_spill] sm:$0xff]  ;;  %v8255_v48 = vld [vmem:[#allocation34_spill] sm:$0xff] }
 0x288   :  { %3414 = vmatmul.f32.gmra.mxu3 %v8252_v23  ;;  %4586 = vpow2.f32 %v2652_v52  ;;  %v2452_v12 = vsub.f32 %v8253_v39, %v2436_v22  ;;  %v4581_v62 = vpop.eup %4580  ;;  %v2558_v47 = vmul.f32 1.442695, %v2530_v38  ;;  %v2626_v49 = vmul.f32 -10.0, %v7301_v19  ;;  %v2400_v4 = vpop.f32.mrf.mxu3  ;;  %3640 = vmatmul.f32.gmra.mxu1 %v8254_v34 }
 0x289   :  { %v2690_v45 = vmul.f32 %v2674_v54, %v2674_v54  ;;  %v2784_v40 = vadd.f32 %v4579_v25, %v2768_v44  ;;  %v2753_v3 = vadd.f32 %v4581_v62, %v2737_v2  ;;  %v2606_v53 = vmul.f32 1.442695, %v2578_v59  ;;  %3543 = vmatmul.f32.gmra.mxu0 %v8254_v34  ;;  %v8260_v34 = vld [vmem:[#allocation104_spill] sm:$0xff] }
 0x28a   :  { %v7364_v36 = vmax.f32 %v2452_v12, 1e-30  ;;  %v7366_v51 = vadd.f32 %v3157_v58, %v2996_v42  ;;  %v4583_v52 = vpop.eup %4582  ;;  %v2401_v41 = vadd.f32 %v2400_v4, %v2304_v17  ;;  %v3212_v22 = vadd.f32 %v3211_v8, %v3098_v29  ;;  %v8259_v8 = vld [vmem:[#allocation22_spill] sm:$0xff] }
 0x28b   :  { %v2706_v32 = vmul.f32 %v2690_v45, %v2690_v45  ;;  %v4136_v38 = vmul.f32 0.015625, %v2784_v40  ;;  %v1436_v44 = vmul.f32 %v7337_v56, %v7337_v56  ;;  %v1467_v59 = vadd.f32 %v7139_v6, %v7316_v16  ;;  %v8256_v56 = vld [vmem:[#allocation30_spill] sm:$0xff]  ;;  %v8257_v16 = vld [vmem:[#allocation113_spill] sm:$0xff] }
 0x28c   :  { %v2484_v19 = vmul.f32 -0.001, %v7364_v36  ;;  %v1497_v1 = vadd.f32 %v8255_v48, %v7332_v26  ;;  %v2531_v17 = vmul.f32 -0.1, %v7339_v18  ;;  %v2437_v29 = vmul.f32 2.0, %v2401_v41  ;;  %v3581_v62 = vpop.f32.mrf.mxu1 }
 0x28d   :  { %v7377_v15 = vpop.eup %4584  ;;  %v2722_v23 = vmul.f32 %v2706_v32, %v2674_v54  ;;  %v7380_v58 = vadd.f32 %v4136_v38, %v1527_v63  ;;  %4588 = vpow2.f32 %v2558_v47  ;;  %v2654_v2 = vmul.f32 1.442695, %v2626_v49  ;;  %v8258_v47 = vld [vmem:[#allocation57_spill] sm:$0xff] }
 0x28e   :  { %v4587_v25 = vpop.eup %4586  ;;  %v2514_v39 = vmul.f32 1.442695, %v2484_v19  ;;  %v1512_v12 = vadd.f32 %v8256_v56, %v7343_v57  ;;  %4590 = vpow2.f32 %v2606_v53  ;;  %v2675_v6 = vmul.f32 %v7377_v15, %v7377_v15  ;;  %v3484_v57 = vpop.f32.mrf.mxu0  ;;  %v8261_v38 = vld [vmem:[#allocation33_spill] sm:$0xff] }
 0x28f   :  { %v2453_v26 = vsub.f32 %v8257_v16, %v2437_v29  ;;  %v2769_v54 = vadd.f32 %v4583_v52, %v2753_v3  ;;  %v2579_v45 = vsub.f32 0.0, %v7339_v18  ;;  %v2627_v63 = vmul.f32 -10.0, %v7339_v18  ;;  %v3216_v41 = vpop.f32.mrf.mxu2  ;;  %v8262_v16 = vld [vmem:[#allocation52_spill] sm:$0xff] }
 0x290   :  { %4592 = vpow2.f32 %v2514_v39  ;;  %v1482_v49 = vadd.f32 %v8258_v47, %v7328_v20  ;;  %v2738_v42 = vadd.f32 %v4577_v0, %v2722_v23  ;;  %v2560_v40 = vmul.f32 1.442695, %v2531_v17  ;;  %v3325_v3 = vpop.f32.mrf.mxu3 }
 0x291   :  { %v7391_v4 = vmax.f32 %v2453_v26, 1e-30  ;;  %v2785_v53 = vadd.f32 %v4587_v25, %v2769_v54  ;;  %v3102_v32 = vadd.f32 %v8260_v34, %v8259_v8  ;;  %4594 = vpow2.f32 %v2654_v2 }
 0x292   :  { %v1483_v52 = vadd.f32 %v7154_v14, %v1467_v59  ;;  %v1513_v18 = vadd.f32 %v8261_v38, %v1497_v1  ;;  %v2691_v19 = vmul.f32 %v2675_v6, %v2675_v6  ;;  %v1452_v20 = vmul.f32 %v1436_v44, %v7312_v60 }
 0x293   :  { %v2485_v48 = vmul.f32 -0.001, %v7391_v4  ;;  %v1528_v0 = vmul.f32 -0.03125, %v1512_v12  ;;  %v4589_v23 = vpop.eup %4588  ;;  %v2608_v17 = vmul.f32 1.442695, %v2579_v45  ;;  %v3217_v29 = vadd.f32 %v3216_v41, %v3102_v32 }
 0x294   :  { %v3326_v25 = vadd.f32 %v3325_v3, %v3212_v22  ;;  %v4137_v39 = vmul.f32 0.015625, %v2785_v53  ;;  %v4591_v56 = vpop.eup %4590  ;;  %4596 = vpow2.f32 %v2560_v40  ;;  %v2656_v2 = vmul.f32 1.442695, %v2627_v63  ;;  %v3585_v60 = vpop.f32.mrf.mxu1  ;;  %v8263_v40 = vld [vmem:[#allocation24_spill] sm:$0xff]  ;;  %v8264_v63 = vld [vmem:[#allocation102_spill] sm:$0xff] }
 0x295   :  { %v1498_v26 = vadd.f32 %v8262_v16, %v1482_v49  ;;  %v2754_v54 = vadd.f32 %v4589_v23, %v2738_v42  ;;  %v2532_v59 = vmul.f32 -0.1, %v7364_v36  ;;  %v2516_v1 = vmul.f32 1.442695, %v2485_v48 }
 0x296   :  { %v7400_v14 = vpop.eup %4592  ;;  %v3485_v47 = vadd.f32 %v3484_v57, %v3326_v25  ;;  %v7403_v8 = vadd.f32 %v4137_v39, %v1528_v0  ;;  %v1499_v44 = vadd.f32 %v7167_v24, %v1483_v52  ;;  %v1529_v12 = vmul.f32 -0.03125, %v1513_v18  ;;  %v3488_v32 = vpop.f32.mrf.mxu0  ;;  %v8266_v39 = vld [vmem:[#allocation42_spill] sm:$0xff] }
 0x297   :  { %v2707_v22 = vmul.f32 %v2691_v19, %v2691_v19  ;;  %v2770_v45 = vadd.f32 %v4591_v56, %v2754_v54  ;;  %v4595_v53 = vpop.eup %4594  ;;  %v3106_v34 = vadd.f32 %v8264_v63, %v8263_v40  ;;  %4598 = vpow2.f32 %v2608_v17  ;;  %v3221_v18 = vpop.f32.mrf.mxu2  ;;  %v8265_v17 = vld [vmem:[#allocation69_spill] sm:$0xff] }
 0x298   :  { %v3582_v49 = vadd.f32 %v3581_v62, %v3485_v47  ;;  %v1468_v42 = vadd.f32 %v7221_v55, %v1452_v20  ;;  %4600 = vpow2.f32 %v2656_v2  ;;  %v2676_v57 = vmul.f32 %v7400_v14, %v7400_v14  ;;  %v3331_v19 = vpop.f32.mrf.mxu3 }
 0x299   :  { %v2723_v41 = vmul.f32 %v2707_v22, %v2675_v6  ;;  %v2786_v3 = vadd.f32 %v4595_v53, %v2770_v45  ;;  %v2562_v38 = vmul.f32 1.442695, %v2532_v59  ;;  %v2580_v24 = vsub.f32 0.0, %v7364_v36 }
 0x29a   :  { %4602 = vpow2.f32 %v2516_v1  ;;  %v3740_v52 = vmul.f32 2.0, %v3582_v49  ;;  %v4597_v48 = vpop.eup %4596  ;;  %v3222_v0 = vadd.f32 %v3221_v18, %v3106_v34  ;;  %v3332_v23 = vadd.f32 %v3331_v19, %v3217_v29  ;;  %v8267_v49 = vld [vmem:[#allocation71_spill] sm:$0xff] }
 0x29b   :  { %v2739_v62 = vadd.f32 %v7377_v15, %v2723_v41  ;;  %v4138_v55 = vmul.f32 0.015625, %v2786_v3  ;;  %v2628_v20 = vmul.f32 -10.0, %v7364_v36  ;;  %v1484_v6 = vadd.f32 %v7239_v30, %v1468_v42  ;;  %v8269_v19 = vld [vmem:[#allocation43_spill] sm:$0xff] }
 0x29c   :  { %v3756_v25 = vsub.f32 %v8265_v17, %v3740_v52  ;;  %v1514_v56 = vadd.f32 %v8266_v39, %v1498_v26  ;;  %v3489_v2 = vadd.f32 %v3488_v32, %v3332_v23  ;;  %v2692_v16 = vmul.f32 %v2676_v57, %v2676_v57  ;;  %v3589_v45 = vpop.f32.mrf.mxu1 }
 0x29d   :  { %v2755_v54 = vadd.f32 %v4597_v48, %v2739_v62  ;;  %v7417_v59 = vadd.f32 %v4138_v55, %v1529_v12  ;;  %v4599_v1 = vpop.eup %4598  ;;  %4604 = vpow2.f32 %v7246_v46  ;;  %v2610_v29 = vmul.f32 1.442695, %v2580_v24  ;;  %v8268_v46 = vld [vmem:[#allocation29_spill] sm:$0xff] }
 0x29e   :  { %v3772_v47 = vmax.f32 %v3756_v25, 1e-30  ;;  %v1515_v15 = vadd.f32 %v7172_v43, %v1499_v44  ;;  %v4601_v22 = vpop.eup %4600  ;;  %4606 = vpow2.f32 %v2562_v38  ;;  %v3586_v36 = vadd.f32 %v3585_v60, %v3489_v2  ;;  %v3492_v43 = vpop.f32.mrf.mxu0 }
 0x29f   :  { %v2708_v53 = vmul.f32 %v2692_v16, %v2692_v16  ;;  %v2771_v30 = vadd.f32 %v4599_v1, %v2755_v54  ;;  %v2533_v26 = vmul.f32 -0.1, %v7391_v4  ;;  %v1500_v12 = vadd.f32 %v7270_v31, %v1484_v6  ;;  %v3226_v38 = vpop.f32.mrf.mxu2  ;;  %v8270_v54 = vld [vmem:[#allocation118_spill] sm:$0xff] }
 0x2a0   :  { %v7421_v40 = vpop.eup %4602  ;;  %v3788_v63 = vmul.f32 -0.001, %v3772_v47  ;;  %v1530_v34 = vmul.f32 -0.03125, %v1514_v56  ;;  %v3110_v42 = vadd.f32 %v8268_v46, %v8267_v49  ;;  %v2658_v32 = vmul.f32 1.442695, %v2628_v20  ;;  %v3337_v24 = vpop.f32.mrf.mxu3 }
 0x2a1   :  { %v3741_v41 = vmul.f32 2.0, %v3586_v36  ;;  %v2724_v44 = vmul.f32 %v2708_v53, %v2676_v57  ;;  %4608 = vpow2.f32 %v2610_v29  ;;  %v2581_v60 = vsub.f32 0.0, %v7391_v4 }
 0x2a2   :  { %v3804_v3 = vmul.f32 1.442695, %v3788_v63  ;;  %v2787_v52 = vadd.f32 %v4601_v22, %v2771_v30  ;;  %v2629_v18 = vmul.f32 -10.0, %v7391_v4  ;;  %v3227_v31 = vadd.f32 %v3226_v38, %v3110_v42 }
 0x2a3   :  { %v3757_v48 = vsub.f32 %v8269_v19, %v3741_v41  ;;  %v3338_v23 = vadd.f32 %v3337_v24, %v3222_v0  ;;  %v4605_v62 = vpop.eup %4604  ;;  %v2564_v55 = vmul.f32 1.442695, %v2533_v26  ;;  %v2677_v20 = vmul.f32 %v7421_v40, %v7421_v40  ;;  %v8271_v0 = vld [vmem:[#allocation115_spill] sm:$0xff] }
 0x2a4   :  { %4610 = vpow2.f32 %v3804_v3  ;;  %v2740_v57 = vadd.f32 %v7400_v14, %v2724_v44  ;;  %v4607_v17 = vpop.eup %4606  ;;  %v3836_v25 = vmul.f32 -0.1, %v3772_v47  ;;  %v3884_v56 = vsub.f32 0.0, %v3772_v47  ;;  %v3593_v22 = vpop.f32.mrf.mxu1 }
 0x2a5   :  { %4612 = vpow2.f32 %v2658_v32  ;;  %v7433_v6 = vmax.f32 %v3757_v48, 1e-30  ;;  %v3493_v39 = vadd.f32 %v3492_v43, %v3338_v23  ;;  %v2693_v4 = vmul.f32 %v2677_v20, %v2677_v20 }
 0x2a6   :  { %v2756_v2 = vadd.f32 %v4607_v17, %v2740_v57  ;;  %v4139_v16 = vmul.f32 0.015625, %v2787_v52  ;;  %v3114_v1 = vadd.f32 %v8271_v0, %v8270_v54  ;;  %v7438_v36 = vadd.f32 %v4605_v62, %v1500_v12  ;;  %v3496_v32 = vpop.f32.mrf.mxu0 }
 0x2a7   :  { %v3789_v29 = vmul.f32 -0.001, %v7433_v6  ;;  %v1531_v53 = vmul.f32 -0.03125, %v1515_v15  ;;  %v4609_v14 = vpop.eup %4608  ;;  %4614 = vpow2.f32 %v2564_v55  ;;  %v2612_v30 = vmul.f32 1.442695, %v2581_v60  ;;  %v3231_v38 = vpop.f32.mrf.mxu2 }
 0x2a8   :  { %v2660_v26 = vmul.f32 1.442695, %v2629_v18  ;;  %v3590_v63 = vadd.f32 %v3589_v45, %v3493_v39  ;;  %v3852_v49 = vmul.f32 1.442695, %v3836_v25  ;;  %v3932_v46 = vmul.f32 -10.0, %v3772_v47  ;;  %v3343_v24 = vpop.f32.mrf.mxu3  ;;  %v8272_v18 = vld [vmem:[#allocation122_spill] sm:$0xff] }
 0x2a9   :  { %v3806_v42 = vmul.f32 1.442695, %v3789_v29  ;;  %v2709_v41 = vmul.f32 %v2693_v4, %v2693_v4  ;;  %v3900_v44 = vmul.f32 1.442695, %v3884_v56  ;;  %v2772_v52 = vadd.f32 %v4609_v14, %v2756_v2 }
 0x2aa   :  { %v4611_v43 = vpop.eup %4610  ;;  %v3742_v3 = vmul.f32 2.0, %v3590_v63  ;;  %v7440_v19 = vadd.f32 %v4139_v16, %v1530_v34  ;;  %v3232_v48 = vadd.f32 %v3231_v38, %v3114_v1  ;;  %v3344_v60 = vadd.f32 %v3343_v24, %v3227_v31  ;;  %v8274_v38 = vld [vmem:[#allocation90_spill] sm:$0xff] }
 0x2ab   :  { %v4613_v12 = vpop.eup %4612  ;;  %v3980_v15 = vmul.f32 %v4611_v43, %v4611_v43  ;;  %4616 = vpow2.f32 %v3806_v42  ;;  %v3837_v45 = vmul.f32 -0.1, %v7433_v6  ;;  %v2725_v23 = vmul.f32 %v2709_v41, %v2677_v20 }
 0x2ac   :  { %v3758_v47 = vsub.f32 %v8272_v18, %v3742_v3  ;;  %v2788_v62 = vadd.f32 %v4613_v12, %v2772_v52  ;;  %4618 = vpow2.f32 %v2612_v30  ;;  %v3948_v55 = vmul.f32 1.442695, %v3932_v46  ;;  %v3597_v16 = vpop.f32.mrf.mxu1 }
 0x2ad   :  { %v3996_v57 = vmul.f32 %v3980_v15, %v3980_v15  ;;  %v3497_v17 = vadd.f32 %v3496_v32, %v3344_v60  ;;  %v4615_v25 = vpop.eup %4614  ;;  %4620 = vpow2.f32 %v3852_v49  ;;  %v2741_v34 = vadd.f32 %v7421_v40, %v2725_v23  ;;  %v7455_v40 = vld [vmem:[%s7571_s7] ss:$0 sm:$0xff] }
 0x2ae   :  { %v7444_v39 = vmax.f32 %v3758_v47, 1e-30  ;;  %v4140_v56 = vmul.f32 0.015625, %v2788_v62  ;;  %4622 = vpow2.f32 %v2660_v26  ;;  %v3885_v31 = vsub.f32 0.0, %v7433_v6  ;;  %v3500_v30 = vpop.f32.mrf.mxu0 }
 0x2af   :  { %v4012_v4 = vmul.f32 %v3996_v57, %v3996_v57  ;;  %v3594_v2 = vadd.f32 %v3593_v22, %v3497_v17  ;;  %4624 = vpow2.f32 %v3900_v44  ;;  %v3854_v20 = vmul.f32 1.442695, %v3837_v45  ;;  %v8273_v22 = vld [vmem:[#allocation76_spill] sm:$0xff]  ;;  %v3236_v42 = vpop.f32.mrf.mxu2 }
 0x2b0   :  { %v3933_v54 = vmul.f32 -10.0, %v7433_v6  ;;  %v3790_v0 = vmul.f32 -0.001, %v7444_v39  ;;  %v2757_v63 = vadd.f32 %v4615_v25, %v2741_v34  ;;  %v7450_v49 = vadd.f32 %v4140_v56, %v1531_v53  ;;  %v3349_v32 = vpop.f32.mrf.mxu3 }
 0x2b1   :  { %v4617_v1 = vpop.eup %4616  ;;  %v4028_v29 = vmul.f32 %v4012_v4, %v3980_v15  ;;  %v3743_v14 = vmul.f32 2.0, %v3594_v2  ;;  %v7459_v26 = vadd.f32 %v7455_v40, %v8273_v22  ;;  %4626 = vpow2.f32 %v3948_v55  ;;  %v8275_v4 = vld [vmem:[#allocation80_spill] sm:$0xff] }
 0x2b2   :  { %v3981_v6 = vmul.f32 %v4617_v1, %v4617_v1  ;;  %v3808_v46 = vmul.f32 1.442695, %v3790_v0  ;;  %v4619_v41 = vpop.eup %4618  ;;  %v3902_v3 = vmul.f32 1.442695, %v3885_v31  ;;  %v1532_v24 = vmul.f32 -0.03125, %v7438_v36  ;;  %v8276_v31 = vld [vmem:[#allocation38_spill] sm:$0xff] }
 0x2b3   :  { %v4044_v44 = vadd.f32 %v4611_v43, %v4028_v29  ;;  %v3759_v53 = vsub.f32 %v8274_v38, %v3743_v14  ;;  %v4621_v52 = vpop.eup %4620  ;;  %v3350_v15 = vadd.f32 %v3349_v32, %v3232_v48  ;;  %v2773_v60 = vadd.f32 %v4619_v41, %v2757_v63 }
 0x2b4   :  { %v3997_v12 = vmul.f32 %v3981_v6, %v3981_v6  ;;  %4628 = vpow2.f32 %v3808_v46  ;;  %v4623_v45 = vpop.eup %4622  ;;  %v3950_v47 = vmul.f32 1.442695, %v3933_v54  ;;  %v3838_v43 = vmul.f32 -0.1, %v7444_v39  ;;  %v3601_v48 = vpop.f32.mrf.mxu1 }
 0x2b5   :  { %v4060_v18 = vadd.f32 %v4621_v52, %v4044_v44  ;;  %4630 = vpow2.f32 %v3854_v20  ;;  %v7463_v23 = vmax.f32 %v3759_v53, 1e-30  ;;  %v4625_v62 = vpop.eup %4624  ;;  %v3501_v57 = vadd.f32 %v3500_v30, %v3350_v15 }
 0x2b6   :  { %v4013_v55 = vmul.f32 %v3997_v12, %v3997_v12  ;;  %v2789_v17 = vadd.f32 %v4623_v45, %v2773_v60  ;;  %4632 = vpow2.f32 %v3902_v3  ;;  %v3886_v36 = vsub.f32 0.0, %v7444_v39  ;;  %v3504_v30 = vpop.f32.mrf.mxu0 }
 0x2b7   :  { %v4076_v25 = vadd.f32 %v4625_v62, %v4060_v18  ;;  %v3791_v34 = vmul.f32 -0.001, %v7463_v23  ;;  %v4627_v56 = vpop.eup %4626  ;;  %v3118_v2 = vadd.f32 %v8276_v31, %v8275_v4  ;;  %v3934_v54 = vmul.f32 -10.0, %v7444_v39  ;;  %v3241_v3 = vpop.f32.mrf.mxu2  ;;  %v8277_v18 = vld [vmem:[#allocation37_spill] sm:$0xff] }
 0x2b8   :  { %v4029_v20 = vmul.f32 %v4013_v55, %v3981_v6  ;;  %v3598_v0 = vadd.f32 %v3597_v16, %v3501_v57  ;;  %4634 = vpow2.f32 %v3950_v47  ;;  %v4141_v63 = vmul.f32 0.015625, %v2789_v17  ;;  %v3355_v38 = vpop.f32.mrf.mxu3 }
 0x2b9   :  { %v4092_v29 = vadd.f32 %v4627_v56, %v4076_v25  ;;  %v3810_v14 = vmul.f32 1.442695, %v3791_v34  ;;  %v3856_v32 = vmul.f32 1.442695, %v3838_v43  ;;  %v3237_v41 = vadd.f32 %v3236_v42, %v3118_v2  ;;  %v8278_v25 = vld [vmem:[#allocation119_spill] sm:$0xff] }
 0x2ba   :  { %v4629_v22 = vpop.eup %4628  ;;  %v4045_v46 = vadd.f32 %v4617_v1, %v4029_v20  ;;  %v3744_v44 = vmul.f32 2.0, %v3598_v0  ;;  %v3904_v12 = vmul.f32 1.442695, %v3886_v36  ;;  %v3952_v39 = vmul.f32 1.442695, %v3934_v54  ;;  %v8279_v20 = vld [vmem:[#allocation68_spill] sm:$0xff] }
 0x2bb   :  { %v4631_v53 = vpop.eup %4630  ;;  %v4158_v52 = vmul.f32 0.015625, %v4092_v29  ;;  %v3982_v15 = vmul.f32 %v4629_v22, %v4629_v22  ;;  %4636 = vpow2.f32 %v3810_v14  ;;  %v3356_v60 = vadd.f32 %v3355_v38, %v3237_v41  ;;  %v8280_v54 = vld [vmem:[#allocation40_spill] sm:$0xff] }
 0x2bc   :  { %v4061_v6 = vadd.f32 %v4631_v53, %v4045_v46  ;;  %v3760_v16 = vsub.f32 %v7459_v26, %v3744_v44  ;;  %v4633_v45 = vpop.eup %4632  ;;  %v3839_v1 = vmul.f32 -0.1, %v7463_v23  ;;  %v7474_v42 = vadd.f32 %v4141_v63, %v1532_v24  ;;  %v3605_v56 = vpop.f32.mrf.mxu1 }
 0x2bd   :  { %v4174_v47 = vadd.f32 %v4158_v52, %v8277_v18  ;;  %v3998_v62 = vmul.f32 %v3982_v15, %v3982_v15  ;;  %4638 = vpow2.f32 %v3856_v32  ;;  %v3505_v57 = vadd.f32 %v3504_v30, %v3356_v60 }
 0x2be   :  { %v4077_v55 = vadd.f32 %v4633_v45, %v4061_v6  ;;  %v7476_v43 = vmax.f32 %v3760_v16, 1e-30  ;;  %v4635_v17 = vpop.eup %4634  ;;  %v3729_v36 = vadd.f32 %v7455_v40, %v8278_v25  ;;  %v3887_v26 = vsub.f32 0.0, %v7463_v23  ;;  %v3508_v63 = vpop.f32.mrf.mxu0  ;;  %v8281_v16 = vld [vmem:[#allocation62_spill] sm:$0xff] }
 0x2bf   :  { %v4014_v34 = vmul.f32 %v3998_v62, %v3998_v62  ;;  %4640 = vpow2.f32 %v3904_v12  ;;  %v3935_v31 = vmul.f32 -10.0, %v7463_v23  ;;  %v3122_v0 = vadd.f32 %v8280_v54, %v8279_v20  ;;  %v3246_v44 = vpop.f32.mrf.mxu2 }
 0x2c0   :  { %v4093_v4 = vadd.f32 %v4635_v17, %v4077_v55  ;;  %v3792_v24 = vmul.f32 -0.001, %v7476_v43  ;;  %v3858_v14 = vmul.f32 1.442695, %v3839_v1  ;;  %v3602_v30 = vadd.f32 %v3601_v48, %v3505_v57  ;;  %v3361_v38 = vpop.f32.mrf.mxu3 }
 0x2c1   :  { %v4637_v2 = vpop.eup %4636  ;;  %v4030_v29 = vmul.f32 %v4014_v34, %v3982_v15  ;;  %4642 = vpow2.f32 %v3952_v39  ;;  %v3906_v52 = vmul.f32 1.442695, %v3887_v26  ;;  %v3242_v12 = vadd.f32 %v3241_v3, %v3122_v0 }
 0x2c2   :  { %v4159_v46 = vmul.f32 0.015625, %v4093_v4  ;;  %v3983_v32 = vmul.f32 %v4637_v2, %v4637_v2  ;;  %v3812_v41 = vmul.f32 1.442695, %v3792_v24  ;;  %v3745_v23 = vmul.f32 2.0, %v3602_v30 }
 0x2c3   :  { %v4046_v53 = vadd.f32 %v4629_v22, %v4030_v29  ;;  %v4639_v6 = vpop.eup %4638  ;;  %v3954_v45 = vmul.f32 1.442695, %v3935_v31  ;;  %v3362_v62 = vadd.f32 %v3361_v38, %v3242_v12  ;;  %v3840_v57 = vmul.f32 -0.1, %v7476_v43 }
 0x2c4   :  { %v4175_v60 = vadd.f32 %v4159_v46, %v8281_v16  ;;  %v3999_v18 = vmul.f32 %v3983_v32, %v3983_v32  ;;  %4644 = vpow2.f32 %v3812_v41  ;;  %v3761_v48 = vsub.f32 %v3729_v36, %v3745_v23  ;;  %v3609_v25 = vpop.f32.mrf.mxu1 }
 0x2c5   :  { %v4062_v15 = vadd.f32 %v4639_v6, %v4046_v53  ;;  %4646 = vpow2.f32 %v3858_v14  ;;  %v4641_v1 = vpop.eup %4640  ;;  %v3509_v3 = vadd.f32 %v3508_v63, %v3362_v62  ;;  %v3888_v4 = vsub.f32 0.0, %v7476_v43 }
 0x2c6   :  { %v4292_v39 = vadd.f32 %v4175_v60, %v4174_v47  ;;  %v4015_v55 = vmul.f32 %v3999_v18, %v3999_v18  ;;  %4648 = vpow2.f32 %v3906_v52  ;;  %v7487_v22 = vmax.f32 %v3761_v48, 1e-30  ;;  %v3512_v47 = vpop.f32.mrf.mxu0 }
 0x2c7   :  { %v4078_v17 = vadd.f32 %v4641_v1, %v4062_v15  ;;  %v4643_v34 = vpop.eup %4642  ;;  %4650 = vpow2.f32 %v3954_v45  ;;  %v3936_v36 = vmul.f32 -10.0, %v7476_v43  ;;  %v3126_v54 = vadd.f32 %v7123_v10, %v7129_v5  ;;  %v3251_v30 = vpop.f32.mrf.mxu2 }
 0x2c8   :  { %v4031_v26 = vmul.f32 %v4015_v55, %v3983_v32  ;;  %v3793_v24 = vmul.f32 -0.001, %v7487_v22  ;;  %v3860_v29 = vmul.f32 1.442695, %v3840_v57  ;;  %v3606_v14 = vadd.f32 %v3605_v56, %v3509_v3  ;;  %v8282_v32 = vld [vmem:[#allocation84_spill] sm:$0xff] }
 0x2c9   :  { %v4094_v31 = vadd.f32 %v4643_v34, %v4078_v17  ;;  %v3730_v41 = vadd.f32 %v7455_v40, %v8282_v32  ;;  %v3908_v12 = vmul.f32 1.442695, %v3888_v4  ;;  %v3247_v23 = vadd.f32 %v3246_v44, %v3126_v54  ;;  %v8283_v32 = vld [vmem:[#allocation8_spill] sm:$0xff] }
 0x2ca   :  { %v4645_v20 = vpop.eup %4644  ;;  %v4047_v0 = vadd.f32 %v4637_v2, %v4031_v26  ;;  %v3367_v63 = vpop.f32.mrf.mxu3  ;;  %v3814_v52 = vmul.f32 1.442695, %v3793_v24  ;;  %v3746_v6 = vmul.f32 2.0, %v3606_v14  ;;  %v3956_v10 = vmul.f32 1.442695, %v3936_v36 }
 0x2cb   :  { %v4647_v46 = vpop.eup %4646  ;;  %v4160_v38 = vmul.f32 0.015625, %v4094_v31  ;;  %v3984_v53 = vmul.f32 %v4645_v20, %v4645_v20  ;;  %v3368_v45 = vadd.f32 %v3367_v63, %v3247_v23  ;;  %v3841_v62 = vmul.f32 -0.1, %v7487_v22 }
 0x2cc   :  { %v4063_v43 = vadd.f32 %v4647_v46, %v4047_v0  ;;  %v4649_v16 = vpop.eup %4648  ;;  %4652 = vpow2.f32 %v3814_v52  ;;  %v3762_v2 = vsub.f32 %v3730_v41, %v3746_v6  ;;  %v3613_v1 = vpop.f32.mrf.mxu1  ;;  %v3937_v54 = vmul.f32 -10.0, %v7487_v22 }
 0x2cd   :  { %v4176_v60 = vadd.f32 %v4160_v38, %v7126_v35  ;;  %v4000_v5 = vmul.f32 %v3984_v53, %v3984_v53  ;;  %4654 = vpow2.f32 %v3860_v29  ;;  %v4651_v18 = vpop.eup %4650  ;;  %v3513_v57 = vadd.f32 %v3512_v47, %v3368_v45 }
 0x2ce   :  { %v4079_v56 = vadd.f32 %v4649_v16, %v4063_v43  ;;  %4656 = vpow2.f32 %v3908_v12  ;;  %v3778_v44 = vmax.f32 %v3762_v2, 1e-30  ;;  %v3889_v35 = vsub.f32 0.0, %v7487_v22  ;;  %v3516_v3 = vpop.f32.mrf.mxu0 }
 0x2cf   :  { %v4293_v15 = vadd.f32 %v4292_v39, %v4176_v60  ;;  %v4016_v48 = vmul.f32 %v4000_v5, %v4000_v5  ;;  %4658 = vpow2.f32 %v3956_v10  ;;  %v3256_v4 = vpop.f32.mrf.mxu2  ;;  %v3862_v39 = vmul.f32 1.442695, %v3841_v62  ;;  %v8284_v62 = vld [vmem:[#allocation10_spill] sm:$0xff] }
 0x2d0   :  { %v4095_v55 = vadd.f32 %v4651_v18, %v4079_v56  ;;  %v3794_v26 = vmul.f32 -0.001, %v3778_v44  ;;  %v3610_v0 = vadd.f32 %v3609_v25, %v3513_v57  ;;  %v3252_v46 = vadd.f32 %v3251_v30, %v7157_v37 }
 0x2d1   :  { %v4032_v17 = vmul.f32 %v4016_v48, %v3984_v53  ;;  %v3731_v41 = vadd.f32 %v7455_v40, %v8283_v32  ;;  %v3910_v53 = vmul.f32 1.442695, %v3889_v35  ;;  %v3958_v23 = vmul.f32 1.442695, %v3937_v54 }
 0x2d2   :  { %v4161_v34 = vmul.f32 0.015625, %v4095_v55  ;;  %v3373_v31 = vpop.f32.mrf.mxu3  ;;  %v4653_v36 = vpop.eup %4652  ;;  %v3816_v47 = vmul.f32 1.442695, %v3794_v26  ;;  %v3747_v52 = vmul.f32 2.0, %v3610_v0  ;;  %v3842_v37 = vmul.f32 -0.1, %v3778_v44 }
 0x2d3   :  { %v4048_v24 = vadd.f32 %v4645_v20, %v4032_v17  ;;  %v4655_v29 = vpop.eup %4654  ;;  %v3985_v63 = vmul.f32 %v4653_v36, %v4653_v36  ;;  %v3374_v22 = vadd.f32 %v3373_v31, %v3252_v46  ;;  %v3890_v45 = vsub.f32 0.0, %v3778_v44 }
 0x2d4   :  { %v4177_v14 = vadd.f32 %v4161_v34, %v7149_v28  ;;  %v4657_v43 = vpop.eup %4656  ;;  %4660 = vpow2.f32 %v3816_v47  ;;  %v3763_v28 = vsub.f32 %v3731_v41, %v3747_v52  ;;  %v3617_v6 = vpop.f32.mrf.mxu1  ;;  %v3732_v55 = vadd.f32 %v7455_v40, %v8284_v62 }
 0x2d5   :  { %v4064_v38 = vadd.f32 %v4655_v29, %v4048_v24  ;;  %v4001_v20 = vmul.f32 %v3985_v63, %v3985_v63  ;;  %4662 = vpow2.f32 %v3862_v39  ;;  %v4659_v16 = vpop.eup %4658  ;;  %v3517_v30 = vadd.f32 %v3516_v3, %v3374_v22  ;;  %v8285_v29 = vld [vmem:[#allocation120_spill] sm:$0xff] }
 0x2d6   :  { %v7504_v12 = vadd.f32 %v4293_v15, %v4177_v14  ;;  %4664 = vpow2.f32 %v3910_v53  ;;  %v3779_v5 = vmax.f32 %v3763_v28, 1e-30  ;;  %v3520_v56 = vpop.f32.mrf.mxu0  ;;  %v3864_v26 = vmul.f32 1.442695, %v3842_v37 }
 0x2d7   :  { %v4080_v25 = vadd.f32 %v4657_v43, %v4064_v38  ;;  %v4017_v60 = vmul.f32 %v4001_v20, %v4001_v20  ;;  %v3614_v18 = vadd.f32 %v3613_v1, %v3517_v30  ;;  %v3261_v15 = vpop.f32.mrf.mxu2  ;;  %4666 = vpow2.f32 %v3958_v23 }
 0x2d8   :  { %v3795_v17 = vmul.f32 -0.001, %v3779_v5  ;;  %v3938_v31 = vmul.f32 -10.0, %v3778_v44  ;;  %v3257_v1 = vadd.f32 %v3256_v4, %v8285_v29  ;;  %v3843_v20 = vmul.f32 -0.1, %v3779_v5 }
 0x2d9   :  { %v4096_v10 = vadd.f32 %v4659_v16, %v4080_v25  ;;  %v4033_v2 = vmul.f32 %v4017_v60, %v3985_v63  ;;  %v3748_v3 = vmul.f32 2.0, %v3614_v18  ;;  %v3912_v63 = vmul.f32 1.442695, %v3890_v45  ;;  %v8286_v60 = vld [vmem:[#allocation98_spill] sm:$0xff] }
 0x2da   :  { %v3379_v48 = vpop.f32.mrf.mxu3  ;;  %v4661_v35 = vpop.eup %4660  ;;  %v3818_v0 = vmul.f32 1.442695, %v3795_v17  ;;  %v3733_v37 = vadd.f32 %v7455_v40, %v8286_v60 }
 0x2db   :  { %v4162_v57 = vmul.f32 0.015625, %v4096_v10  ;;  %v4049_v34 = vadd.f32 %v4653_v36, %v4033_v2  ;;  %v4663_v24 = vpop.eup %4662  ;;  %v3986_v54 = vmul.f32 %v4661_v35, %v4661_v35  ;;  %v3764_v47 = vsub.f32 %v3732_v55, %v3748_v3 }
 0x2dc   :  { %v4665_v46 = vpop.eup %4664  ;;  %4668 = vpow2.f32 %v3818_v0  ;;  %v3380_v41 = vadd.f32 %v3379_v48, %v3257_v1  ;;  %v3621_v38 = vpop.f32.mrf.mxu1  ;;  %v3960_v36 = vmul.f32 1.442695, %v3938_v31  ;;  %v3939_v10 = vmul.f32 -10.0, %v3779_v5 }
 0x2dd   :  { %v4178_v39 = vadd.f32 %v4162_v57, %v7183_v7  ;;  %v4065_v14 = vadd.f32 %v4663_v24, %v4049_v34  ;;  %v4002_v32 = vmul.f32 %v3986_v54, %v3986_v54  ;;  %4670 = vpow2.f32 %v3864_v26  ;;  %v4667_v52 = vpop.eup %4666 }
 0x2de   :  { %v3780_v44 = vmax.f32 %v3764_v47, 1e-30  ;;  %v3891_v7 = vsub.f32 0.0, %v3779_v5  ;;  %v3521_v22 = vadd.f32 %v3520_v56, %v3380_v41  ;;  %v3524_v25 = vpop.f32.mrf.mxu0  ;;  %4672 = vpow2.f32 %v3912_v63 }
 0x2df   :  { %v4081_v53 = vadd.f32 %v4665_v46, %v4065_v14  ;;  %v4018_v43 = vmul.f32 %v4002_v32, %v4002_v32  ;;  %v3266_v28 = vpop.f32.mrf.mxu2  ;;  %4674 = vpow2.f32 %v3960_v36  ;;  %v3262_v48 = vadd.f32 %v3261_v15, %v7224_v61 }
 0x2e0   :  { %v3796_v4 = vmul.f32 -0.001, %v3780_v44  ;;  %v3618_v2 = vadd.f32 %v3617_v6, %v3521_v22  ;;  %v3866_v56 = vmul.f32 1.442695, %v3843_v20  ;;  %v3914_v57 = vmul.f32 1.442695, %v3891_v7 }
 0x2e1   :  { %v4097_v23 = vadd.f32 %v4667_v52, %v4081_v53  ;;  %v4034_v30 = vmul.f32 %v4018_v43, %v3986_v54  ;;  %v3962_v54 = vmul.f32 1.442695, %v3939_v10  ;;  %v4295_v0 = vadd.f32 %v7504_v12, %v4178_v39  ;;  %v8287_v52 = vld [vmem:[#allocation13_spill] sm:$0xff] }
 0x2e2   :  { %v3385_v16 = vpop.f32.mrf.mxu3  ;;  %v3820_v18 = vmul.f32 1.442695, %v3796_v4  ;;  %v4669_v62 = vpop.eup %4668  ;;  %v3749_v17 = vmul.f32 2.0, %v3618_v2  ;;  %v3844_v61 = vmul.f32 -0.1, %v3780_v44  ;;  %v3892_v14 = vsub.f32 0.0, %v3780_v44 }
 0x2e3   :  { %v4163_v45 = vmul.f32 0.015625, %v4097_v23  ;;  %v4050_v55 = vadd.f32 %v4661_v35, %v4034_v30  ;;  %v4671_v34 = vpop.eup %4670  ;;  %v3987_v31 = vmul.f32 %v4669_v62, %v4669_v62  ;;  %v3386_v3 = vadd.f32 %v3385_v16, %v3262_v48 }
 0x2e4   :  { %4676 = vpow2.f32 %v3820_v18  ;;  %v3765_v5 = vsub.f32 %v3733_v37, %v3749_v17  ;;  %v3625_v6 = vpop.f32.mrf.mxu1  ;;  %v4673_v29 = vpop.eup %4672  ;;  %v3940_v32 = vmul.f32 -10.0, %v3780_v44  ;;  %v3734_v12 = vadd.f32 %v7455_v40, %v8287_v52 }
 0x2e5   :  { %v4179_v26 = vadd.f32 %v4163_v45, %v7207_v27  ;;  %v4066_v24 = vadd.f32 %v4671_v34, %v4050_v55  ;;  %v4003_v1 = vmul.f32 %v3987_v31, %v3987_v31  ;;  %v3525_v15 = vadd.f32 %v3524_v25, %v3386_v3  ;;  %v4675_v27 = vpop.eup %4674  ;;  %v8288_v25 = vld [vmem:[#allocation46_spill] sm:$0xff] }
 0x2e6   :  { %4678 = vpow2.f32 %v3866_v56  ;;  %v7515_v63 = vmax.f32 %v3765_v5, 1e-30  ;;  %v3528_v47 = vpop.f32.mrf.mxu0  ;;  %v3868_v22 = vmul.f32 1.442695, %v3844_v61  ;;  %v3267_v23 = vadd.f32 %v3266_v28, %v8288_v25 }
 0x2e7   :  { %v4082_v35 = vadd.f32 %v4673_v29, %v4066_v24  ;;  %4680 = vpow2.f32 %v3914_v57  ;;  %v4019_v46 = vmul.f32 %v4003_v1, %v4003_v1  ;;  %v3622_v41 = vadd.f32 %v3621_v38, %v3525_v15  ;;  %v3271_v53 = vpop.f32.mrf.mxu2  ;;  %v8289_v24 = vld [vmem:[#allocation44_spill] sm:$0xff] }
 0x2e8   :  { %4682 = vpow2.f32 %v3962_v54  ;;  %v3797_v43 = vmul.f32 -0.001, %v7515_v63  ;;  %v3916_v60 = vmul.f32 1.442695, %v3892_v14  ;;  %v3964_v30 = vmul.f32 1.442695, %v3940_v32 }
 0x2e9   :  { %v4098_v39 = vadd.f32 %v4675_v27, %v4082_v35  ;;  %v4035_v7 = vmul.f32 %v4019_v46, %v3987_v31  ;;  %v3750_v4 = vmul.f32 2.0, %v3622_v41  ;;  %v4296_v48 = vadd.f32 %v4295_v0, %v4179_v26  ;;  %v8290_v41 = vld [vmem:[#allocation18_spill] sm:$0xff] }
 0x2ea   :  { %v4677_v20 = vpop.eup %4676  ;;  %v3822_v44 = vmul.f32 1.442695, %v3797_v43  ;;  %v3845_v57 = vmul.f32 -0.1, %v7515_v63  ;;  %v3893_v1 = vsub.f32 0.0, %v7515_v63  ;;  %v3941_v61 = vmul.f32 -10.0, %v7515_v63 }
 0x2eb   :  { %v3391_v36 = vpop.f32.mrf.mxu3  ;;  %v4164_v16 = vmul.f32 0.015625, %v4098_v39  ;;  %v3988_v37 = vmul.f32 %v4677_v20, %v4677_v20  ;;  %v4051_v38 = vadd.f32 %v4669_v62, %v4035_v7  ;;  %v3766_v10 = vsub.f32 %v3734_v12, %v3750_v4 }
 0x2ec   :  { %v4679_v2 = vpop.eup %4678  ;;  %4684 = vpow2.f32 %v3822_v44  ;;  %v3392_v18 = vadd.f32 %v3391_v36, %v3267_v23  ;;  %v3870_v27 = vmul.f32 1.442695, %v3845_v57  ;;  %v3735_v36 = vadd.f32 %v7455_v40, %v8290_v41 }
 0x2ed   :  { %v4004_v45 = vmul.f32 %v3988_v37, %v3988_v37  ;;  %v4681_v55 = vpop.eup %4680  ;;  %v4067_v56 = vadd.f32 %v4679_v2, %v4051_v38  ;;  %4686 = vpow2.f32 %v3868_v22  ;;  %v7522_v17 = vmax.f32 %v3766_v10, 1e-30  ;;  %v3629_v28 = vpop.f32.mrf.mxu1 }
 0x2ee   :  { %v4683_v34 = vpop.eup %4682  ;;  %4688 = vpow2.f32 %v3916_v60  ;;  %v3529_v3 = vadd.f32 %v3528_v47, %v3392_v18  ;;  %v3532_v62 = vpop.f32.mrf.mxu0  ;;  %v4180_v54 = vadd.f32 %v4164_v16, %v8289_v24  ;;  %v3272_v47 = vadd.f32 %v3271_v53, %v7272_v13 }
 0x2ef   :  { %v4020_v31 = vmul.f32 %v4004_v45, %v4004_v45  ;;  %v4083_v5 = vadd.f32 %v4681_v55, %v4067_v56  ;;  %4690 = vpow2.f32 %v3964_v30  ;;  %v3798_v29 = vmul.f32 -0.001, %v7522_v17  ;;  %v3276_v35 = vpop.f32.mrf.mxu2 }
 0x2f0   :  { %v3626_v15 = vadd.f32 %v3625_v6, %v3529_v3  ;;  %v3918_v6 = vmul.f32 1.442695, %v3893_v1  ;;  %v4297_v4 = vadd.f32 %v4296_v48, %v4180_v54  ;;  %v3966_v60 = vmul.f32 1.442695, %v3941_v61  ;;  %v8291_v48 = vld [vmem:[#allocation101_spill] sm:$0xff] }
 0x2f1   :  { %v4036_v0 = vmul.f32 %v4020_v31, %v3988_v37  ;;  %v4099_v14 = vadd.f32 %v4683_v34, %v4083_v5  ;;  %v3824_v46 = vmul.f32 1.442695, %v3798_v29  ;;  %v3846_v44 = vmul.f32 -0.1, %v7522_v17 }
 0x2f2   :  { %v4685_v32 = vpop.eup %4684  ;;  %v3751_v12 = vmul.f32 2.0, %v3626_v15  ;;  %v3894_v2 = vsub.f32 0.0, %v7522_v17  ;;  %v3736_v56 = vadd.f32 %v7455_v40, %v8291_v48  ;;  %v3277_v24 = vadd.f32 %v3276_v35, %v7303_v33 }
 0x2f3   :  { %v3397_v26 = vpop.f32.mrf.mxu3  ;;  %v4052_v52 = vadd.f32 %v4677_v20, %v4036_v0  ;;  %v4687_v39 = vpop.eup %4686  ;;  %v4165_v43 = vmul.f32 0.015625, %v4099_v14  ;;  %v3989_v7 = vmul.f32 %v4685_v32, %v4685_v32  ;;  %4692 = vpow2.f32 %v3824_v46 }
 0x2f4   :  { %v3398_v22 = vadd.f32 %v3397_v26, %v3272_v47  ;;  %v4689_v25 = vpop.eup %4688  ;;  %v3767_v23 = vsub.f32 %v3735_v36, %v3751_v12  ;;  %4694 = vpow2.f32 %v3870_v27  ;;  %v3872_v54 = vmul.f32 1.442695, %v3846_v44  ;;  %v3717_v14 = vpop.permute.xlu0 %3716 }
 0x2f5   :  { %v4068_v63 = vadd.f32 %v4687_v39, %v4052_v52  ;;  %v4691_v16 = vpop.eup %4690  ;;  %v4005_v13 = vmul.f32 %v3989_v7, %v3989_v7  ;;  %v4181_v30 = vadd.f32 %v4165_v43, %v7299_v9  ;;  %v3633_v55 = vpop.f32.mrf.mxu1  ;;  %4696 = vpow2.f32 %v3918_v6 }
 0x2f6   :  { %v3533_v53 = vadd.f32 %v3532_v62, %v3398_v22  ;;  %v7532_v20 = vmax.f32 %v3767_v23, 1e-30  ;;  %v3536_v38 = vpop.f32.mrf.mxu0  ;;  %v3942_v62 = vmul.f32 -10.0, %v7522_v17  ;;  %4698 = vpow2.f32 %v3966_v60  ;;  %v3712_v23 = vpop.permute.xlu1 %3711 }
 0x2f7   :  { %v4084_v37 = vadd.f32 %v4689_v25, %v4068_v63  ;;  %v4021_v10 = vmul.f32 %v4005_v13, %v4005_v13  ;;  %v3281_v29 = vpop.f32.mrf.mxu2  ;;  %v3920_v1 = vmul.f32 1.442695, %v3894_v2  ;;  %v4298_v47 = vadd.f32 %v4297_v4, %v4181_v30 }
 0x2f8   :  { %v3630_v45 = vadd.f32 %v3629_v28, %v3533_v53  ;;  %v3799_v34 = vmul.f32 -0.001, %v7532_v20  ;;  %v3968_v17 = vmul.f32 1.442695, %v3942_v62  ;;  %v3847_v12 = vmul.f32 -0.1, %v7532_v20 }
 0x2f9   :  { %v4100_v57 = vadd.f32 %v4691_v16, %v4084_v37  ;;  %v4693_v31 = vpop.eup %4692  ;;  %v4037_v3 = vmul.f32 %v4021_v10, %v3989_v7  ;;  %v3738_v43 = vadd.f32 %v7455_v40, %v3717_v14  ;;  %v3282_v25 = vadd.f32 %v3281_v29, %v7345_v21 }
 0x2fa   :  { %v3752_v9 = vmul.f32 2.0, %v3630_v45  ;;  %v3990_v5 = vmul.f32 %v4693_v31, %v4693_v31  ;;  %v3826_v28 = vmul.f32 1.442695, %v3799_v34  ;;  %v4695_v26 = vpop.eup %4694  ;;  %v3895_v16 = vsub.f32 0.0, %v7532_v20 }
 0x2fb   :  { %v3403_v18 = vpop.f32.mrf.mxu3  ;;  %v4053_v0 = vadd.f32 %v4685_v32, %v4037_v3  ;;  %v4166_v46 = vmul.f32 0.015625, %v4100_v57  ;;  %v4697_v35 = vpop.eup %4696  ;;  %v3737_v13 = vadd.f32 %v7455_v40, %v3712_v23  ;;  %v3874_v30 = vmul.f32 1.442695, %v3847_v12 }
 0x2fc   :  { %v3768_v61 = vsub.f32 %v3736_v56, %v3752_v9  ;;  %v3404_v15 = vadd.f32 %v3403_v18, %v3277_v24  ;;  %v4006_v27 = vmul.f32 %v3990_v5, %v3990_v5  ;;  %4700 = vpow2.f32 %v3826_v28  ;;  %v4699_v6 = vpop.eup %4698 }
 0x2fd   :  { %v4069_v41 = vadd.f32 %v4695_v26, %v4053_v0  ;;  %4702 = vpow2.f32 %v3872_v54  ;;  %v4182_v32 = vadd.f32 %v4166_v46, %v7320_v11  ;;  %v3637_v37 = vpop.f32.mrf.mxu1  ;;  %v3943_v10 = vmul.f32 -10.0, %v7532_v20 }
 0x2fe   :  { %v7541_v36 = vmax.f32 %v3768_v61, 1e-30  ;;  %v3537_v33 = vadd.f32 %v3536_v38, %v3404_v15  ;;  %v4022_v52 = vmul.f32 %v4006_v27, %v4006_v27  ;;  %v3540_v39 = vpop.f32.mrf.mxu0  ;;  %4704 = vpow2.f32 %v3920_v1 }
 0x2ff   :  { %v4085_v7 = vadd.f32 %v4697_v35, %v4069_v41  ;;  %4706 = vpow2.f32 %v3968_v17  ;;  %v3922_v56 = vmul.f32 1.442695, %v3895_v16  ;;  %v3286_v34 = vpop.f32.mrf.mxu2  ;;  %v4299_v3 = vadd.f32 %v4298_v47, %v4182_v32 }
 0x300   :  { %v3800_v22 = vmul.f32 -0.001, %v7541_v36  ;;  %v4038_v4 = vmul.f32 %v4022_v52, %v3990_v5  ;;  %v3634_v60 = vadd.f32 %v3633_v55, %v3537_v33  ;;  %v3848_v55 = vmul.f32 -0.1, %v7541_v36 }
 0x301   :  { %v4101_v18 = vadd.f32 %v4699_v6, %v4085_v7  ;;  %v3970_v5 = vmul.f32 1.442695, %v3943_v10  ;;  %v3896_v20 = vsub.f32 0.0, %v7541_v36  ;;  %v3944_v28 = vmul.f32 -10.0, %v7541_v36 }
 0x302   :  { %v3828_v53 = vmul.f32 1.442695, %v3800_v22  ;;  %v4701_v44 = vpop.eup %4700  ;;  %v4054_v38 = vadd.f32 %v4693_v31, %v4038_v4  ;;  %v3753_v21 = vmul.f32 2.0, %v3634_v60  ;;  %v3287_v1 = vadd.f32 %v3286_v34, %v7366_v51 }
 0x303   :  { %v3409_v63 = vpop.f32.mrf.mxu3  ;;  %v3991_v2 = vmul.f32 %v4701_v44, %v4701_v44  ;;  %v4703_v48 = vpop.eup %4702  ;;  %v4167_v54 = vmul.f32 0.015625, %v4101_v18  ;;  %v3876_v27 = vmul.f32 1.442695, %v3848_v55  ;;  %v3924_v36 = vmul.f32 1.442695, %v3896_v20 }
 0x304   :  { %v3410_v11 = vadd.f32 %v3409_v63, %v3282_v25  ;;  %4708 = vpow2.f32 %v3828_v53  ;;  %v3769_v57 = vsub.f32 %v3737_v13, %v3753_v21  ;;  %v4070_v62 = vadd.f32 %v4703_v48, %v4054_v38  ;;  %v4705_v31 = vpop.eup %4704  ;;  %v3722_v25 = vpop.permute.xlu1 %3721 }
 0x305   :  { %v4007_v24 = vmul.f32 %v3991_v2, %v3991_v2  ;;  %v4707_v26 = vpop.eup %4706  ;;  %v4183_v14 = vadd.f32 %v4167_v54, %v7361_v50  ;;  %4710 = vpow2.f32 %v3874_v30  ;;  %v3972_v32 = vmul.f32 1.442695, %v3944_v28  ;;  %v3641_v22 = vpop.f32.mrf.mxu1 }
 0x306   :  { %v3541_v45 = vadd.f32 %v3540_v39, %v3410_v11  ;;  %v3785_v29 = vmax.f32 %v3769_v57, 1e-30  ;;  %v3544_v47 = vpop.f32.mrf.mxu0  ;;  %v4086_v52 = vadd.f32 %v4705_v31, %v4070_v62  ;;  %4712 = vpow2.f32 %v3922_v56 }
 0x307   :  { %v4023_v0 = vmul.f32 %v4007_v24, %v4007_v24  ;;  %4714 = vpow2.f32 %v3970_v5  ;;  %v4300_v6 = vadd.f32 %v4299_v3, %v4183_v14  ;;  %v3739_v11 = vadd.f32 %v7455_v40, %v3722_v25 }
 0x308   :  { %v3638_v9 = vadd.f32 %v3637_v37, %v3541_v45  ;;  %v3801_v46 = vmul.f32 -0.001, %v3785_v29  ;;  %v3849_v23 = vmul.f32 -0.1, %v3785_v29  ;;  %v3897_v60 = vsub.f32 0.0, %v3785_v29 }
 0x309   :  { %v4039_v17 = vmul.f32 %v4023_v0, %v3991_v2  ;;  %v3945_v30 = vmul.f32 -10.0, %v3785_v29 }
 0x30a   :  { %v3754_v61 = vmul.f32 2.0, %v3638_v9  ;;  %v4709_v41 = vpop.eup %4708  ;;  %v3830_v39 = vmul.f32 1.442695, %v3801_v46  ;;  %v3878_v45 = vmul.f32 1.442695, %v3849_v23 }
 0x30b   :  { %v3415_v15 = vpop.f32.mrf.mxu3  ;;  %v3992_v12 = vmul.f32 %v4709_v41, %v4709_v41  ;;  %v4055_v50 = vadd.f32 %v4701_v44, %v4039_v17  ;;  %v4711_v16 = vpop.eup %4710  ;;  %v3926_v56 = vmul.f32 1.442695, %v3897_v60  ;;  %v3974_v54 = vmul.f32 1.442695, %v3945_v30 }
 0x30c   :  { %v3770_v33 = vsub.f32 %v3738_v43, %v3754_v61  ;;  %v3416_v35 = vadd.f32 %v3415_v15, %v3287_v1  ;;  %4716 = vpow2.f32 %v3830_v39  ;;  %v4102_v43 = vadd.f32 %v4707_v26, %v4086_v52  ;;  %v4713_v38 = vpop.eup %4712 }
 0x30d   :  { %v4008_v63 = vmul.f32 %v3992_v12, %v3992_v12  ;;  %4718 = vpow2.f32 %v3876_v27  ;;  %v4071_v21 = vadd.f32 %v4711_v16, %v4055_v50  ;;  %v4715_v2 = vpop.eup %4714 }
 0x30e   :  { %v3786_v51 = vmax.f32 %v3770_v33, 1e-30  ;;  %v3545_v7 = vadd.f32 %v3544_v47, %v3416_v35  ;;  %4720 = vpow2.f32 %v3924_v36  ;;  %v4168_v18 = vmul.f32 0.015625, %v4102_v43 }
 0x30f   :  { %v4024_v53 = vmul.f32 %v4008_v63, %v4008_v63  ;;  %4722 = vpow2.f32 %v3972_v32  ;;  %v4087_v34 = vadd.f32 %v4713_v38, %v4071_v21 }
 0x310   :  { %v3802_v4 = vmul.f32 -0.001, %v3786_v51  ;;  %v3642_v13 = vadd.f32 %v3641_v22, %v3545_v7  ;;  %v3850_v24 = vmul.f32 -0.1, %v3786_v51  ;;  %v4184_v40 = vadd.f32 %v4168_v18, %v7380_v58 }
 0x311   :  { %v4040_v44 = vmul.f32 %v4024_v53, %v3992_v12  ;;  %v4103_v20 = vadd.f32 %v4715_v2, %v4087_v34  ;;  %v3898_v29 = vsub.f32 0.0, %v3786_v51  ;;  %v3946_v1 = vmul.f32 -10.0, %v3786_v51 }
 0x312   :  { %v3832_v37 = vmul.f32 1.442695, %v3802_v4  ;;  %v3755_v10 = vmul.f32 2.0, %v3642_v13  ;;  %v4717_v48 = vpop.eup %4716  ;;  %v4301_v0 = vadd.f32 %v4300_v6, %v4184_v40  ;;  %v3880_v14 = vmul.f32 1.442695, %v3850_v24 }
 0x313   :  { %v4056_v57 = vadd.f32 %v4709_v41, %v4040_v44  ;;  %v4719_v3 = vpop.eup %4718  ;;  %v3993_v62 = vmul.f32 %v4717_v48, %v4717_v48  ;;  %v4169_v47 = vmul.f32 0.015625, %v4103_v20  ;;  %v3928_v17 = vmul.f32 1.442695, %v3898_v29 }
 0x314   :  { %4724 = vpow2.f32 %v3832_v37  ;;  %v3771_v55 = vsub.f32 %v3739_v11, %v3755_v10  ;;  %v4721_v9 = vpop.eup %4720  ;;  %v3976_v36 = vmul.f32 1.442695, %v3946_v1 }
 0x315   :  { %v4072_v5 = vadd.f32 %v4719_v3, %v4056_v57  ;;  %v4723_v28 = vpop.eup %4722  ;;  %4726 = vpow2.f32 %v3878_v45  ;;  %v4009_v26 = vmul.f32 %v3993_v62, %v3993_v62  ;;  %v4185_v52 = vadd.f32 %v4169_v47, %v7403_v8 }
 0x316   :  { %v3787_v31 = vmax.f32 %v3771_v55, 1e-30  ;;  %4728 = vpow2.f32 %v3926_v56 }
 0x317   :  { %v4025_v27 = vmul.f32 %v4009_v26, %v4009_v26  ;;  %v4088_v46 = vadd.f32 %v4721_v9, %v4072_v5  ;;  %4730 = vpow2.f32 %v3974_v54  ;;  %v4302_v7 = vadd.f32 %v4301_v0, %v4185_v52 }
 0x318   :  { %v3803_v61 = vmul.f32 -0.001, %v3787_v31  ;;  %v3851_v25 = vmul.f32 -0.1, %v3787_v31  ;;  %v3899_v4 = vsub.f32 0.0, %v3787_v31  ;;  %v3947_v53 = vmul.f32 -10.0, %v3787_v31 }
 0x319   :  { %v4041_v33 = vmul.f32 %v4025_v27, %v3993_v62  ;;  %v4104_v35 = vadd.f32 %v4723_v28, %v4088_v46 }
 0x31a   :  { %v4725_v15 = vpop.eup %4724  ;;  %v3834_v58 = vmul.f32 1.442695, %v3803_v61  ;;  %v3882_v13 = vmul.f32 1.442695, %v3851_v25  ;;  %v3930_v10 = vmul.f32 1.442695, %v3899_v4 }
 0x31b   :  { %v3994_v41 = vmul.f32 %v4725_v15, %v4725_v15  ;;  %v4727_v39 = vpop.eup %4726  ;;  %v4057_v32 = vadd.f32 %v4717_v48, %v4041_v33  ;;  %v4170_v51 = vmul.f32 0.015625, %v4104_v35 }
 0x31c   :  { %4732 = vpow2.f32 %v3834_v58  ;;  %v4729_v22 = vpop.eup %4728 }
 0x31d   :  { %v4010_v12 = vmul.f32 %v3994_v41, %v3994_v41  ;;  %4734 = vpow2.f32 %v3880_v14  ;;  %v4073_v63 = vadd.f32 %v4727_v39, %v4057_v32  ;;  %v4186_v6 = vadd.f32 %v4170_v51, %v7417_v59  ;;  %v4731_v23 = vpop.eup %4730 }
 0x31e   :  { %4736 = vpow2.f32 %v3928_v17  ;;  %v3978_v59 = vmul.f32 1.442695, %v3947_v53 }
 0x31f   :  { %v4026_v50 = vmul.f32 %v4010_v12, %v4010_v12  ;;  %4738 = vpow2.f32 %v3976_v36  ;;  %v4089_v8 = vadd.f32 %v4729_v22, %v4073_v63  ;;  %v4303_v16 = vadd.f32 %v4302_v7, %v4186_v6 }
 0x320   :  { %4740 = vpow2.f32 %v3882_v13 }
 0x321   :  { %v4042_v43 = vmul.f32 %v4026_v50, %v3994_v41  ;;  %v4105_v30 = vadd.f32 %v4731_v23, %v4089_v8  ;;  %4742 = vpow2.f32 %v3930_v10 }
 0x322   :  { %v4733_v60 = vpop.eup %4732  ;;  %4744 = vpow2.f32 %v3978_v59 }
 0x323   :  { %v4058_v11 = vadd.f32 %v4725_v15, %v4042_v43  ;;  %v4735_v37 = vpop.eup %4734  ;;  %v3995_v38 = vmul.f32 %v4733_v60, %v4733_v60  ;;  %v4171_v45 = vmul.f32 0.015625, %v4105_v30 }
 0x324   :  { %v4737_v21 = vpop.eup %4736 }
 0x325   :  { %v4074_v44 = vadd.f32 %v4735_v37, %v4058_v11  ;;  %v4011_v2 = vmul.f32 %v3995_v38, %v3995_v38  ;;  %v4739_v48 = vpop.eup %4738  ;;  %v4187_v55 = vadd.f32 %v4171_v45, %v7440_v19 }
 0x326   :  { %v4741_v40 = vpop.eup %4740 }
 0x327   :  { %v4090_v18 = vadd.f32 %v4737_v21, %v4074_v44  ;;  %v4027_v56 = vmul.f32 %v4011_v2, %v4011_v2  ;;  %v4304_v3 = vadd.f32 %v4303_v16, %v4187_v55  ;;  %v4743_v31 = vpop.eup %4742 }
 0x328   :  { %v4745_v28 = vpop.eup %4744 }
 0x329   :  { %v4106_v57 = vadd.f32 %v4739_v48, %v4090_v18  ;;  %v4043_v34 = vmul.f32 %v4027_v56, %v3995_v38 }
 0x32b   :  { %v4172_v62 = vmul.f32 0.015625, %v4106_v57  ;;  %v4059_v24 = vadd.f32 %v4733_v60, %v4043_v34 }
 0x32d   :  { %v4188_v9 = vadd.f32 %v4172_v62, %v7450_v49  ;;  %v4075_v54 = vadd.f32 %v4741_v40, %v4059_v24 }
 0x32f   :  { %v4305_v5 = vadd.f32 %v4304_v3, %v4188_v9  ;;  %v4091_v20 = vadd.f32 %v4743_v31, %v4075_v54 }
 0x331   :  { %v4107_v29 = vadd.f32 %v4745_v28, %v4091_v20 }
 0x333   :  { %v4173_v26 = vmul.f32 0.015625, %v4107_v29 }
 0x335   :  { %v4189_v0 = vadd.f32 %v4173_v26, %v7474_v42 }
 0x337   :  { %v4306_v19 = vadd.f32 %v4305_v5, %v4189_v0 }
 0x339   :  { %4307 = vadd.xlane.f32.xlu2 %v4306_v19 }
 0x3ac   :  { %v4308_v1 = vpop.xlane.xlu2 %4307 }
 0x3ad   :  { %v4309_v61 = vrot.slane %v4308_v1, 4 }
 0x3af   :  { %v4310_v15 = vadd.f32 %v4309_v61, %v4308_v1 }
 0x3b1   :  { %v4311_v14 = vrot.slane %v4310_v15, 2 }
 0x3b3   :  { %v4312_v27 = vadd.f32 %v4311_v14, %v4310_v15 }
 0x3b5   :  { %v4313_v46 = vrot.slane %v4312_v27, 1 }
 0x3b7   :  { %v4314_v47 = vadd.f32 %v4313_v46, %v4312_v27 }
 0x3b9   :  { %4354 = vpush %v4314_v47 }
 0x3ea   :  { %s4355_s7 = spop %4354 }
 0x3eb   :  { %v4316_v49 = vstv %s4355_s7 }
 0x3ec   :  { %4317 = vst [vmem:[%s7574_s8] sm:$0xff] %v4316_v49 }

</bundles_post_ra>
